<compile_context>
chip_gen: v7x
topology: tpu7x:2x2x1
jax: 0.10.0
libtpu: 0.0.40
codegen_flags: <defaults>
</compile_context>

<pallas_src>
import math
import jax
import jax.numpy as jnp
from jax.experimental import pallas as pl
from jax.experimental.pallas import tpu as pltpu

_MiB = 1024 * 1024


def _tpu_vmem_capacity_bytes():
    """Per-TensorCore VMEM capacity; fall back to the v7x-safe 64 MiB if unknown."""
    try:
        info = pltpu.get_tpu_info()
        cap = getattr(info, "vmem_capacity_bytes", None)
        if cap:
            return int(cap)
    except Exception:
        pass
    return 64 * _MiB


def _divisor_at_most(B, bt):
    bt = max(1, min(B, bt))
    while B % bt:
        bt -= 1
    return bt


def _choose_batch_tile(B, n, target_rows, min_steps):
    """How many batches to pack into one grid step (bt*n rows per step)."""
    if n % 8 != 0:
        # Keep in-kernel (bt, n, d) <-> (bt*n, d) reshapes layout-trivial when the
        # sequence dim is not sublane-aligned.
        return 1
    bt = _divisor_at_most(B, max(1, target_rows // max(n, 1)))
    # Keep >= min_steps grid steps when B allows: hides the per-step input DMA and,
    # on v7x, gives both TensorCores work via dimension_semantics=("parallel",).
    while bt > 1 and B // bt < min(min_steps, B):
        bt = _divisor_at_most(B, bt - 1)
    return bt


def _vmem_estimate_bytes(bt, n, d_model, d_ff, h, d_k, d_v,
                         weight_bytes, weight_buffers, cd_size):
    rows = bt * n
    est = weight_bytes * weight_buffers
    # pipelined activation tiles (double-buffered): q(f32) + k/v(cd) + out(f32)
    est += 2 * rows * d_model * (4 + 2 * cd_size + 4)
    # f32 intermediates: q/k/v projections, y, hid, ff
    est += rows * (2 * h * d_k + h * d_v + 2 * d_model + d_ff) * 4
    # one head's score matrix (+exp copy) and the head-output scratch slab
    est += 2 * bt * n * n * 4
    est += rows * h * d_v * cd_size
    return est


def make_encoder_layer_kernel(d_model, d_k, d_v, h, bt, n, compute_dtype, eps=1e-5):
    rows = bt * n
    cd = compute_dtype

    def kernel(q_ref, k_ref, v_ref,
               wq_ref, bq_ref, wk_ref, bk_ref, wv_ref, bv_ref, wo_ref, bo_ref,
               ln1g_ref, ln1b_ref,
               w1_ref, b1_ref, w2_ref, b2_ref,
               ln2g_ref, ln2b_ref,
               out_ref, att_scr):
        # (bt, n, d_model) -> (rows, d_model): pure leading-dim merge.
        x_q = q_ref[...].reshape(rows, d_model)   # stays f32 -> exact residual path
        x_k = k_ref[...].reshape(rows, d_model)   # already compute dtype
        x_v = v_ref[...].reshape(rows, d_model)

        # ---- fused QKV projections (bf16 operands, f32 accumulation) ----
        # 1/sqrt(d_k) is already folded into wq/bq by the wrapper.
        q = jnp.dot(x_q.astype(cd), wq_ref[...],
                    preferred_element_type=jnp.float32) + bq_ref[...]
        k = jnp.dot(x_k, wk_ref[...], preferred_element_type=jnp.float32) + bk_ref[...]
        v = jnp.dot(x_v, wv_ref[...], preferred_element_type=jnp.float32) + bv_ref[...]

        # ---- attention: heads unrolled, batch tile handled by rank-3 einsums ----
        # TODO(synk): single fused multi-batch contraction over (bt, h) once portable.
        for hh in range(h):
            qh = q[:, hh * d_k:(hh + 1) * d_k].astype(cd).reshape(bt, n, d_k)
            kh = k[:, hh * d_k:(hh + 1) * d_k].astype(cd).reshape(bt, n, d_k)
            vh = v[:, hh * d_v:(hh + 1) * d_v].astype(cd).reshape(bt, n, d_v)

            # scores: transpose folded into dot_general (no explicit kh.T)
            s = jnp.einsum('bqd,bkd->bqk', qh, kh, preferred_element_type=jnp.float32)
            s = s - jnp.max(s, axis=-1, keepdims=True)
            p = jnp.exp(s)
            # approx reciprocal (EUP slot); ~1e-3 rel err vs exact divide, inside tol.
            p = p * pl.reciprocal(jnp.sum(p, axis=-1, keepdims=True), approx=True)

            o = jnp.einsum('bqk,bkd->bqd', p.astype(cd), vh,
                           preferred_element_type=jnp.float32)
            # Write this head's output into its lane slot (no concatenate/relayout chain).
            att_scr[:, hh * d_v:(hh + 1) * d_v] = o.reshape(rows, d_v).astype(att_scr.dtype)

        mh = jnp.dot(att_scr[...], wo_ref[...],
                     preferred_element_type=jnp.float32) + bo_ref[...]

        # ---- residual + LayerNorm 1 (f32) ----
        y = x_q.astype(jnp.float32) + mh
        mu = jnp.mean(y, axis=-1, keepdims=True)
        var = jnp.mean((y - mu) ** 2, axis=-1, keepdims=True)
        y = (y - mu) * jax.lax.rsqrt(var + eps) * ln1g_ref[...] + ln1b_ref[...]

        # ---- position-wise feed forward ----
        hid = jnp.dot(y.astype(cd), w1_ref[...],
                      preferred_element_type=jnp.float32) + b1_ref[...]
        hid = jnp.maximum(hid, 0.0)
        ff = jnp.dot(hid.astype(cd), w2_ref[...],
                     preferred_element_type=jnp.float32) + b2_ref[...]

        # ---- residual + LayerNorm 2 (f32) ----
        z = y + ff
        mu2 = jnp.mean(z, axis=-1, keepdims=True)
        var2 = jnp.mean((z - mu2) ** 2, axis=-1, keepdims=True)
        z = (z - mu2) * jax.lax.rsqrt(var2 + eps) * ln2g_ref[...] + ln2b_ref[...]

        out_ref[...] = z.reshape(bt, n, d_model).astype(out_ref.dtype)

    return kernel


def encoder_layer(queries, keys, values, params,
                  d_model, d_k, d_v, h, d_ff,
                  compute_dtype=jnp.bfloat16, eps=1e-5):
    """compute_dtype: matmul operand dtype (bf16 default — MXU native on v5e/v6e/v7x).
    Softmax / LayerNorm / residual math and accumulation are always f32."""
    B, n, _ = queries.shape
    cd = jnp.dtype(compute_dtype) if compute_dtype is not None else jnp.dtype(queries.dtype)

    # ---- per-generation sizing ----
    vmem_cap = _tpu_vmem_capacity_bytes()
    big_vmem = vmem_cap >= 100 * _MiB                 # v5e / v6e (128 MiB)
    if big_vmem:
        vmem_ceiling = min(vmem_cap - 24 * _MiB, 100 * _MiB)
        target_rows, min_steps = 512, 2
    else:                                             # v7x-class (64 MiB, 2 TCs)
        vmem_ceiling = min(vmem_cap - 8 * _MiB, 56 * _MiB)
        target_rows, min_steps = 256, 4
    vmem_ceiling = max(vmem_ceiling, 32 * _MiB)

    # ---- weights: fold 1/sqrt(d_k) into wq/bq; matmul weights in compute dtype ----
    scale = 1.0 / math.sqrt(d_k)
    f32 = jnp.float32
    weight_args = [
        (params["wq"] * scale).astype(cd), (params["bq"] * scale).astype(f32),
        params["wk"].astype(cd), params["bk"].astype(f32),
        params["wv"].astype(cd), params["bv"].astype(f32),
        params["wo"].astype(cd), params["bo"].astype(f32),
        params["ln1_g"].astype(f32), params["ln1_b"].astype(f32),
        params["w1"].astype(cd), params["b1"].astype(f32),
        params["w2"].astype(cd), params["b2"].astype(f32),
        params["ln2_g"].astype(f32), params["ln2_b"].astype(f32),
    ]
    weight_bytes = sum(int(w.size) * w.dtype.itemsize for w in weight_args)

    bt = _choose_batch_tile(B, n, target_rows, min_steps)
    # Shrink the batch tile if the VMEM estimate overshoots the per-chip ceiling.
    while bt > 1 and 1.3 * _vmem_estimate_bytes(
            bt, n, d_model, d_ff, h, d_k, d_v, weight_bytes, 1, cd.itemsize) > vmem_ceiling:
        bt = _divisor_at_most(B, bt - 1)

    # queries stay in their original (f32) dtype for an exact residual path;
    # keys / values travel in the compute dtype (half the DMA bytes for bf16).
    q_in = queries
    k_in = keys.astype(cd)
    v_in = values.astype(cd)

    def build(single_buffer_weights):
        rows = bt * n
        kernel = make_encoder_layer_kernel(d_model, d_k, d_v, h, bt, n, cd, eps)

        # NOTE: for toy d_model < 128 the last dim is lane-masked; real configs
        # (d_model multiple of 128) give lane-dense loads/stores.
        seq_spec = pl.BlockSpec((bt, n, d_model), lambda b: (b, 0, 0))

        def weight_spec(x):
            nd = x.ndim
            if single_buffer_weights:
                # Constant block index + single buffer: weights DMA'd once, one VMEM copy.
                return pl.BlockSpec(x.shape, lambda b: (0,) * nd,
                                    pipeline_mode=pl.Buffered(1))
            return pl.BlockSpec(x.shape, lambda b: (0,) * nd)

        wbuf = 1 if single_buffer_weights else 2
        est = _vmem_estimate_bytes(bt, n, d_model, d_ff, h, d_k, d_v,
                                   weight_bytes, wbuf, cd.itemsize)
        vmem_limit = int(min(vmem_ceiling, max(1.5 * est, 32 * _MiB)))

        return pl.pallas_call(
            kernel,
            out_shape=jax.ShapeDtypeStruct((B, n, d_model), queries.dtype),
            grid_spec=pltpu.PrefetchScalarGridSpec(
                num_scalar_prefetch=0,
                grid=(B // bt,),
                in_specs=[seq_spec, seq_spec, seq_spec]
                         + [weight_spec(w) for w in weight_args],
                out_specs=seq_spec,
                scratch_shapes=[pltpu.VMEM((rows, h * d_v), cd)],
            ),
            compiler_params=pltpu.CompilerParams(
                dimension_semantics=("parallel",),
                vmem_limit_bytes=vmem_limit,
            ),
        )

    try:
        return build(single_buffer_weights=True)(q_in, k_in, v_in, *weight_args)
    except Exception:
        # Fallback: jax build without BlockSpec pipeline_mode support -> default buffering.
        return build(single_buffer_weights=False)(q_in, k_in, v_in, *weight_args)


def encoder_layer_reference(queries, keys, values, params,
                            d_model, d_k, d_v, h, d_ff, eps=1e-5):
    """Pure-JAX f32 reference mirroring the PyTorch module's forward."""
    def ln(x, g, b):
        mu = jnp.mean(x, axis=-1, keepdims=True)
        var = jnp.mean((x - mu) ** 2, axis=-1, keepdims=True)
        return (x - mu) * jax.lax.rsqrt(var + eps) * g + b

    B, n, _ = queries.shape
    q = queries @ params["wq"] + params["bq"]
    k = keys @ params["wk"] + params["bk"]
    v = values @ params["wv"] + params["bv"]
    qh = q.reshape(B, n, h, d_k).transpose(0, 2, 1, 3)
    kh = k.reshape(B, n, h, d_k).transpose(0, 2, 1, 3)
    vh = v.reshape(B, n, h, d_v).transpose(0, 2, 1, 3)
    att = jax.nn.softmax(
        jnp.einsum('bhqd,bhkd->bhqk', qh, kh) / math.sqrt(d_k), axis=-1)
    o = jnp.einsum('bhqk,bhkd->bhqd', att, vh).transpose(0, 2, 1, 3).reshape(B, n, h * d_v)
    o = o @ params["wo"] + params["bo"]
    y = ln(queries + o, params["ln1_g"], params["ln1_b"])
    f = jnp.maximum(y @ params["w1"] + params["b1"], 0.0) @ params["w2"] + params["b2"]
    return ln(y + f, params["ln2_g"], params["ln2_b"])


def init_params(key, d_model, d_k, d_v, h, d_ff):
    # Deterministic synthetic init (PyTorch Linear stores W as (out, in); we store
    # the transposed (in, out) layout so the kernel does x @ W directly).
    ks = jax.random.split(key, 8)
    s = 0.05
    params = {
        "wq": s * jax.random.normal(ks[0], (d_model, h * d_k), jnp.float32),
        "bq": jnp.zeros((1, h * d_k), jnp.float32),
        "wk": s * jax.random.normal(ks[1], (d_model, h * d_k), jnp.float32),
        "bk": jnp.zeros((1, h * d_k), jnp.float32),
        "wv": s * jax.random.normal(ks[2], (d_model, h * d_v), jnp.float32),
        "bv": jnp.zeros((1, h * d_v), jnp.float32),
        "wo": s * jax.random.normal(ks[3], (h * d_v, d_model), jnp.float32),
        "bo": jnp.zeros((1, d_model), jnp.float32),
        "ln1_g": jnp.ones((1, d_model), jnp.float32),
        "ln1_b": jnp.zeros((1, d_model), jnp.float32),
        "w1": s * jax.random.normal(ks[4], (d_model, d_ff), jnp.float32),
        "b1": jnp.zeros((1, d_ff), jnp.float32),
        "w2": s * jax.random.normal(ks[5], (d_ff, d_model), jnp.float32),
        "b2": jnp.zeros((1, d_model), jnp.float32),
        "ln2_g": jnp.ones((1, d_model), jnp.float32),
        "ln2_b": jnp.zeros((1, d_model), jnp.float32),
    }
    return params


if __name__ == "__main__":
    # Small shapes consistent with the module's forward: (batch, seq, d_model)
    B, n = 2, 8
    d_model, d_k, d_v, h, d_ff = 32, 8, 8, 4, 64

    key = jax.random.PRNGKey(0)
    kq, kk, kv, kp = jax.random.split(key, 4)
    queries = jax.random.normal(kq, (B, n, d_model), jnp.float32)
    keys = jax.random.normal(kk, (B, n, d_model), jnp.float32)
    values = jax.random.normal(kv, (B, n, d_model), jnp.float32)

    params = init_params(kp, d_model, d_k, d_v, h, d_ff)

    # bf16 matmul operands (MXU-native); accumulation, softmax, LayerNorm and the
    # residual stay f32. Pass compute_dtype=jnp.float32 for bit-closer parity.
    out = encoder_layer(queries, keys, values, params, d_model, d_k, d_v, h, d_ff,
                        compute_dtype=jnp.bfloat16)
    out = jax.block_until_ready(out)

    ref = encoder_layer_reference(queries, keys, values, params,
                                  d_model, d_k, d_v, h, d_ff)
    assert out.shape == (B, n, d_model)
    max_err = float(jnp.max(jnp.abs(out.astype(jnp.float32) - ref)))
    # bf16 operand tolerance (f32 accumulation); f32 operands match to ~1e-5.
    assert max_err < 3e-2, f"max abs error vs reference: {max_err}"
    print("KERNEL_OK")
</pallas_src>

<mosaic_0001>
module attributes {stable_mosaic.version = 11 : i64} {
  func.func @kernel(%arg0: i32, %arg1: memref<1x8x32xf32, #tpu.memory_space<vmem>>, %arg2: memref<1x8x32xbf16, #tpu.memory_space<vmem>>, %arg3: memref<1x8x32xbf16, #tpu.memory_space<vmem>>, %arg4: memref<32x32xbf16, #tpu.memory_space<vmem>>, %arg5: memref<1x32xf32, #tpu.memory_space<vmem>>, %arg6: memref<32x32xbf16, #tpu.memory_space<vmem>>, %arg7: memref<1x32xf32, #tpu.memory_space<vmem>>, %arg8: memref<32x32xbf16, #tpu.memory_space<vmem>>, %arg9: memref<1x32xf32, #tpu.memory_space<vmem>>, %arg10: memref<32x32xbf16, #tpu.memory_space<vmem>>, %arg11: memref<1x32xf32, #tpu.memory_space<vmem>>, %arg12: memref<1x32xf32, #tpu.memory_space<vmem>>, %arg13: memref<1x32xf32, #tpu.memory_space<vmem>>, %arg14: memref<32x64xbf16, #tpu.memory_space<vmem>>, %arg15: memref<1x64xf32, #tpu.memory_space<vmem>>, %arg16: memref<64x32xbf16, #tpu.memory_space<vmem>>, %arg17: memref<1x32xf32, #tpu.memory_space<vmem>>, %arg18: memref<1x32xf32, #tpu.memory_space<vmem>>, %arg19: memref<1x32xf32, #tpu.memory_space<vmem>>, %arg20: memref<1x8x32xf32, #tpu.memory_space<vmem>>, %arg21: memref<8x32xbf16, #tpu.memory_space<vmem>>) attributes {dimension_semantics = [#tpu.dimension_semantics<parallel>], iteration_bounds = array<i64: 2>, scalar_prefetch = 0 : i64, scratch_operands = 1 : i64, tpu.core_type = #tpu.core_type<tc>, window_params = [{transform_indices = @transform_0, window_bounds = array<i64: 1, 8, 32>}, {transform_indices = @transform_1, window_bounds = array<i64: 1, 8, 32>}, {transform_indices = @transform_2, window_bounds = array<i64: 1, 8, 32>}, {pipeline_mode = #tpu.pipeline_mode<synchronous>, transform_indices = @transform_3, window_bounds = array<i64: 32, 32>}, {pipeline_mode = #tpu.pipeline_mode<synchronous>, transform_indices = @transform_4, window_bounds = array<i64: 1, 32>}, {pipeline_mode = #tpu.pipeline_mode<synchronous>, transform_indices = @transform_5, window_bounds = array<i64: 32, 32>}, {pipeline_mode = #tpu.pipeline_mode<synchronous>, transform_indices = @transform_6, window_bounds = array<i64: 1, 32>}, {pipeline_mode = #tpu.pipeline_mode<synchronous>, transform_indices = @transform_7, window_bounds = array<i64: 32, 32>}, {pipeline_mode = #tpu.pipeline_mode<synchronous>, transform_indices = @transform_8, window_bounds = array<i64: 1, 32>}, {pipeline_mode = #tpu.pipeline_mode<synchronous>, transform_indices = @transform_9, window_bounds = array<i64: 32, 32>}, {pipeline_mode = #tpu.pipeline_mode<synchronous>, transform_indices = @transform_10, window_bounds = array<i64: 1, 32>}, {pipeline_mode = #tpu.pipeline_mode<synchronous>, transform_indices = @transform_11, window_bounds = array<i64: 1, 32>}, {pipeline_mode = #tpu.pipeline_mode<synchronous>, transform_indices = @transform_12, window_bounds = array<i64: 1, 32>}, {pipeline_mode = #tpu.pipeline_mode<synchronous>, transform_indices = @transform_13, window_bounds = array<i64: 32, 64>}, {pipeline_mode = #tpu.pipeline_mode<synchronous>, transform_indices = @transform_14, window_bounds = array<i64: 1, 64>}, {pipeline_mode = #tpu.pipeline_mode<synchronous>, transform_indices = @transform_15, window_bounds = array<i64: 64, 32>}, {pipeline_mode = #tpu.pipeline_mode<synchronous>, transform_indices = @transform_16, window_bounds = array<i64: 1, 32>}, {pipeline_mode = #tpu.pipeline_mode<synchronous>, transform_indices = @transform_17, window_bounds = array<i64: 1, 32>}, {pipeline_mode = #tpu.pipeline_mode<synchronous>, transform_indices = @transform_18, window_bounds = array<i64: 1, 32>}, {transform_indices = @transform_19, window_bounds = array<i64: 1, 8, 32>}]} {
    %c0 = arith.constant 0 : index
    %c0_0 = arith.constant 0 : index
    %c0_1 = arith.constant 0 : index
    %0 = vector.load %arg1[%c0, %c0_0, %c0_1] : memref<1x8x32xf32, #tpu.memory_space<vmem>>, vector<1x8x32xf32>
    %1 = vector.shape_cast %0 : vector<1x8x32xf32> to vector<8x32xf32>
    %c0_2 = arith.constant 0 : index
    %c0_3 = arith.constant 0 : index
    %c0_4 = arith.constant 0 : index
    %2 = vector.load %arg2[%c0_2, %c0_3, %c0_4] : memref<1x8x32xbf16, #tpu.memory_space<vmem>>, vector<1x8x32xbf16>
    %3 = vector.shape_cast %2 : vector<1x8x32xbf16> to vector<8x32xbf16>
    %c0_5 = arith.constant 0 : index
    %c0_6 = arith.constant 0 : index
    %c0_7 = arith.constant 0 : index
    %4 = vector.load %arg3[%c0_5, %c0_6, %c0_7] : memref<1x8x32xbf16, #tpu.memory_space<vmem>>, vector<1x8x32xbf16>
    %5 = vector.shape_cast %4 : vector<1x8x32xbf16> to vector<8x32xbf16>
    %6 = arith.truncf %1 : vector<8x32xf32> to vector<8x32xbf16>
    %c0_8 = arith.constant 0 : index
    %c0_9 = arith.constant 0 : index
    %7 = vector.load %arg4[%c0_8, %c0_9] : memref<32x32xbf16, #tpu.memory_space<vmem>>, vector<32x32xbf16>
    %cst = arith.constant dense<0.000000e+00> : vector<8x32xf32>
    %8 = tpu.matmul %6, %7, %cst {dimension_numbers = #tpu.dot_dimension_numbers<[1], [0], [0], [1], [0, 0, 1, 1], [], []>} : vector<8x32xbf16>, vector<32x32xbf16>, vector<8x32xf32> -> vector<8x32xf32>
    %c0_10 = arith.constant 0 : index
    %c0_11 = arith.constant 0 : index
    %9 = vector.load %arg5[%c0_10, %c0_11] : memref<1x32xf32, #tpu.memory_space<vmem>>, vector<1x32xf32>
    %10 = vector.broadcast %9 : vector<1x32xf32> to vector<8x32xf32>
    %11 = arith.addf %8, %10 : vector<8x32xf32>
    %c0_12 = arith.constant 0 : index
    %c0_13 = arith.constant 0 : index
    %12 = vector.load %arg6[%c0_12, %c0_13] : memref<32x32xbf16, #tpu.memory_space<vmem>>, vector<32x32xbf16>
    %cst_14 = arith.constant dense<0.000000e+00> : vector<8x32xf32>
    %13 = tpu.matmul %3, %12, %cst_14 {dimension_numbers = #tpu.dot_dimension_numbers<[1], [0], [0], [1], [0, 0, 1, 1], [], []>} : vector<8x32xbf16>, vector<32x32xbf16>, vector<8x32xf32> -> vector<8x32xf32>
    %c0_15 = arith.constant 0 : index
    %c0_16 = arith.constant 0 : index
    %14 = vector.load %arg7[%c0_15, %c0_16] : memref<1x32xf32, #tpu.memory_space<vmem>>, vector<1x32xf32>
    %15 = vector.broadcast %14 : vector<1x32xf32> to vector<8x32xf32>
    %16 = arith.addf %13, %15 : vector<8x32xf32>
    %c0_17 = arith.constant 0 : index
    %c0_18 = arith.constant 0 : index
    %17 = vector.load %arg8[%c0_17, %c0_18] : memref<32x32xbf16, #tpu.memory_space<vmem>>, vector<32x32xbf16>
    %cst_19 = arith.constant dense<0.000000e+00> : vector<8x32xf32>
    %18 = tpu.matmul %5, %17, %cst_19 {dimension_numbers = #tpu.dot_dimension_numbers<[1], [0], [0], [1], [0, 0, 1, 1], [], []>} : vector<8x32xbf16>, vector<32x32xbf16>, vector<8x32xf32> -> vector<8x32xf32>
    %c0_20 = arith.constant 0 : index
    %c0_21 = arith.constant 0 : index
    %19 = vector.load %arg9[%c0_20, %c0_21] : memref<1x32xf32, #tpu.memory_space<vmem>>, vector<1x32xf32>
    %20 = vector.broadcast %19 : vector<1x32xf32> to vector<8x32xf32>
    %21 = arith.addf %18, %20 : vector<8x32xf32>
    %22 = vector.extract_strided_slice %11 {offsets = [0, 0], sizes = [8, 8], strides = [1, 1]} : vector<8x32xf32> to vector<8x8xf32>
    %23 = arith.truncf %22 : vector<8x8xf32> to vector<8x8xbf16>
    %24 = vector.shape_cast %23 : vector<8x8xbf16> to vector<1x8x8xbf16>
    %25 = vector.extract_strided_slice %16 {offsets = [0, 0], sizes = [8, 8], strides = [1, 1]} : vector<8x32xf32> to vector<8x8xf32>
    %26 = arith.truncf %25 : vector<8x8xf32> to vector<8x8xbf16>
    %27 = vector.shape_cast %26 : vector<8x8xbf16> to vector<1x8x8xbf16>
    %28 = vector.extract_strided_slice %21 {offsets = [0, 0], sizes = [8, 8], strides = [1, 1]} : vector<8x32xf32> to vector<8x8xf32>
    %29 = arith.truncf %28 : vector<8x8xf32> to vector<8x8xbf16>
    %30 = vector.shape_cast %29 : vector<8x8xbf16> to vector<1x8x8xbf16>
    "tpu.trace_start"() <{level = 10 : i32, message = "bqd,bkd->bqk"}> : () -> ()
    %cst_22 = arith.constant dense<0.000000e+00> : vector<1x8x8xf32>
    %31 = tpu.matmul %24, %27, %cst_22 {dimension_numbers = #tpu.dot_dimension_numbers<[2], [2], [1], [1], [0, 0, 0, 1, 1, 1], [0], [0]>} : vector<1x8x8xbf16>, vector<1x8x8xbf16>, vector<1x8x8xf32> -> vector<1x8x8xf32>
    "tpu.trace_stop"() : () -> ()
    %cst_23 = arith.constant dense<0xFF800000> : vector<1x8xf32>
    %32 = vector.multi_reduction <maximumf>, %31, %cst_23 [2] : vector<1x8x8xf32> to vector<1x8xf32>
    %33 = vector.shape_cast %32 : vector<1x8xf32> to vector<1x8x1xf32>
    %34 = vector.broadcast %33 : vector<1x8x1xf32> to vector<1x8x8xf32>
    %35 = arith.subf %31, %34 : vector<1x8x8xf32>
    %36 = math.exp %35 : vector<1x8x8xf32>
    %cst_24 = arith.constant dense<0.000000e+00> : vector<1x8xf32>
    %37 = vector.multi_reduction <add>, %36, %cst_24 [2] : vector<1x8x8xf32> to vector<1x8xf32>
    %38 = vector.shape_cast %37 : vector<1x8xf32> to vector<1x8x1xf32>
    %39 = tpu.reciprocal %38 {approx = true} : vector<1x8x1xf32> -> vector<1x8x1xf32>
    %40 = vector.broadcast %39 : vector<1x8x1xf32> to vector<1x8x8xf32>
    %41 = arith.mulf %36, %40 : vector<1x8x8xf32>
    %42 = arith.truncf %41 : vector<1x8x8xf32> to vector<1x8x8xbf16>
    "tpu.trace_start"() <{level = 10 : i32, message = "bqk,bkd->bqd"}> : () -> ()
    %cst_25 = arith.constant dense<0.000000e+00> : vector<1x8x8xf32>
    %43 = tpu.matmul %42, %30, %cst_25 {dimension_numbers = #tpu.dot_dimension_numbers<[2], [1], [1], [2], [0, 0, 0, 1, 1, 2], [0], [0]>} : vector<1x8x8xbf16>, vector<1x8x8xbf16>, vector<1x8x8xf32> -> vector<1x8x8xf32>
    "tpu.trace_stop"() : () -> ()
    %44 = vector.shape_cast %43 : vector<1x8x8xf32> to vector<8x8xf32>
    %45 = arith.truncf %44 : vector<8x8xf32> to vector<8x8xbf16>
    %c0_26 = arith.constant 0 : index
    %c0_27 = arith.constant 0 : index
    %46 = vector.load %arg21[%c0_26, %c0_27] : memref<8x32xbf16, #tpu.memory_space<vmem>>, vector<8x8xbf16>
    tpu.vector_store %arg21[%c0_26, %c0_27], %45 {strides = array<i32>} : memref<8x32xbf16, #tpu.memory_space<vmem>>, vector<8x8xbf16>,
    %47 = vector.extract_strided_slice %11 {offsets = [0, 8], sizes = [8, 8], strides = [1, 1]} : vector<8x32xf32> to vector<8x8xf32>
    %48 = arith.truncf %47 : vector<8x8xf32> to vector<8x8xbf16>
    %49 = vector.shape_cast %48 : vector<8x8xbf16> to vector<1x8x8xbf16>
    %50 = vector.extract_strided_slice %16 {offsets = [0, 8], sizes = [8, 8], strides = [1, 1]} : vector<8x32xf32> to vector<8x8xf32>
    %51 = arith.truncf %50 : vector<8x8xf32> to vector<8x8xbf16>
    %52 = vector.shape_cast %51 : vector<8x8xbf16> to vector<1x8x8xbf16>
    %53 = vector.extract_strided_slice %21 {offsets = [0, 8], sizes = [8, 8], strides = [1, 1]} : vector<8x32xf32> to vector<8x8xf32>
    %54 = arith.truncf %53 : vector<8x8xf32> to vector<8x8xbf16>
    %55 = vector.shape_cast %54 : vector<8x8xbf16> to vector<1x8x8xbf16>
    "tpu.trace_start"() <{level = 10 : i32, message = "bqd,bkd->bqk"}> : () -> ()
    %cst_28 = arith.constant dense<0.000000e+00> : vector<1x8x8xf32>
    %56 = tpu.matmul %49, %52, %cst_28 {dimension_numbers = #tpu.dot_dimension_numbers<[2], [2], [1], [1], [0, 0, 0, 1, 1, 1], [0], [0]>} : vector<1x8x8xbf16>, vector<1x8x8xbf16>, vector<1x8x8xf32> -> vector<1x8x8xf32>
    "tpu.trace_stop"() : () -> ()
    %cst_29 = arith.constant dense<0xFF800000> : vector<1x8xf32>
    %57 = vector.multi_reduction <maximumf>, %56, %cst_29 [2] : vector<1x8x8xf32> to vector<1x8xf32>
    %58 = vector.shape_cast %57 : vector<1x8xf32> to vector<1x8x1xf32>
    %59 = vector.broadcast %58 : vector<1x8x1xf32> to vector<1x8x8xf32>
    %60 = arith.subf %56, %59 : vector<1x8x8xf32>
    %61 = math.exp %60 : vector<1x8x8xf32>
    %cst_30 = arith.constant dense<0.000000e+00> : vector<1x8xf32>
    %62 = vector.multi_reduction <add>, %61, %cst_30 [2] : vector<1x8x8xf32> to vector<1x8xf32>
    %63 = vector.shape_cast %62 : vector<1x8xf32> to vector<1x8x1xf32>
    %64 = tpu.reciprocal %63 {approx = true} : vector<1x8x1xf32> -> vector<1x8x1xf32>
    %65 = vector.broadcast %64 : vector<1x8x1xf32> to vector<1x8x8xf32>
    %66 = arith.mulf %61, %65 : vector<1x8x8xf32>
    %67 = arith.truncf %66 : vector<1x8x8xf32> to vector<1x8x8xbf16>
    "tpu.trace_start"() <{level = 10 : i32, message = "bqk,bkd->bqd"}> : () -> ()
    %cst_31 = arith.constant dense<0.000000e+00> : vector<1x8x8xf32>
    %68 = tpu.matmul %67, %55, %cst_31 {dimension_numbers = #tpu.dot_dimension_numbers<[2], [1], [1], [2], [0, 0, 0, 1, 1, 2], [0], [0]>} : vector<1x8x8xbf16>, vector<1x8x8xbf16>, vector<1x8x8xf32> -> vector<1x8x8xf32>
    "tpu.trace_stop"() : () -> ()
    %69 = vector.shape_cast %68 : vector<1x8x8xf32> to vector<8x8xf32>
    %70 = arith.truncf %69 : vector<8x8xf32> to vector<8x8xbf16>
    %c0_32 = arith.constant 0 : index
    %c8 = arith.constant 8 : index
    %71 = vector.load %arg21[%c0_32, %c8] : memref<8x32xbf16, #tpu.memory_space<vmem>>, vector<8x8xbf16>
    tpu.vector_store %arg21[%c0_32, %c8], %70 {strides = array<i32>} : memref<8x32xbf16, #tpu.memory_space<vmem>>, vector<8x8xbf16>,
    %72 = vector.extract_strided_slice %11 {offsets = [0, 16], sizes = [8, 8], strides = [1, 1]} : vector<8x32xf32> to vector<8x8xf32>
    %73 = arith.truncf %72 : vector<8x8xf32> to vector<8x8xbf16>
    %74 = vector.shape_cast %73 : vector<8x8xbf16> to vector<1x8x8xbf16>
    %75 = vector.extract_strided_slice %16 {offsets = [0, 16], sizes = [8, 8], strides = [1, 1]} : vector<8x32xf32> to vector<8x8xf32>
    %76 = arith.truncf %75 : vector<8x8xf32> to vector<8x8xbf16>
    %77 = vector.shape_cast %76 : vector<8x8xbf16> to vector<1x8x8xbf16>
    %78 = vector.extract_strided_slice %21 {offsets = [0, 16], sizes = [8, 8], strides = [1, 1]} : vector<8x32xf32> to vector<8x8xf32>
    %79 = arith.truncf %78 : vector<8x8xf32> to vector<8x8xbf16>
    %80 = vector.shape_cast %79 : vector<8x8xbf16> to vector<1x8x8xbf16>
    "tpu.trace_start"() <{level = 10 : i32, message = "bqd,bkd->bqk"}> : () -> ()
    %cst_33 = arith.constant dense<0.000000e+00> : vector<1x8x8xf32>
    %81 = tpu.matmul %74, %77, %cst_33 {dimension_numbers = #tpu.dot_dimension_numbers<[2], [2], [1], [1], [0, 0, 0, 1, 1, 1], [0], [0]>} : vector<1x8x8xbf16>, vector<1x8x8xbf16>, vector<1x8x8xf32> -> vector<1x8x8xf32>
    "tpu.trace_stop"() : () -> ()
    %cst_34 = arith.constant dense<0xFF800000> : vector<1x8xf32>
    %82 = vector.multi_reduction <maximumf>, %81, %cst_34 [2] : vector<1x8x8xf32> to vector<1x8xf32>
    %83 = vector.shape_cast %82 : vector<1x8xf32> to vector<1x8x1xf32>
    %84 = vector.broadcast %83 : vector<1x8x1xf32> to vector<1x8x8xf32>
    %85 = arith.subf %81, %84 : vector<1x8x8xf32>
    %86 = math.exp %85 : vector<1x8x8xf32>
    %cst_35 = arith.constant dense<0.000000e+00> : vector<1x8xf32>
    %87 = vector.multi_reduction <add>, %86, %cst_35 [2] : vector<1x8x8xf32> to vector<1x8xf32>
    %88 = vector.shape_cast %87 : vector<1x8xf32> to vector<1x8x1xf32>
    %89 = tpu.reciprocal %88 {approx = true} : vector<1x8x1xf32> -> vector<1x8x1xf32>
    %90 = vector.broadcast %89 : vector<1x8x1xf32> to vector<1x8x8xf32>
    %91 = arith.mulf %86, %90 : vector<1x8x8xf32>
    %92 = arith.truncf %91 : vector<1x8x8xf32> to vector<1x8x8xbf16>
    "tpu.trace_start"() <{level = 10 : i32, message = "bqk,bkd->bqd"}> : () -> ()
    %cst_36 = arith.constant dense<0.000000e+00> : vector<1x8x8xf32>
    %93 = tpu.matmul %92, %80, %cst_36 {dimension_numbers = #tpu.dot_dimension_numbers<[2], [1], [1], [2], [0, 0, 0, 1, 1, 2], [0], [0]>} : vector<1x8x8xbf16>, vector<1x8x8xbf16>, vector<1x8x8xf32> -> vector<1x8x8xf32>
    "tpu.trace_stop"() : () -> ()
    %94 = vector.shape_cast %93 : vector<1x8x8xf32> to vector<8x8xf32>
    %95 = arith.truncf %94 : vector<8x8xf32> to vector<8x8xbf16>
    %c0_37 = arith.constant 0 : index
    %c16 = arith.constant 16 : index
    %96 = vector.load %arg21[%c0_37, %c16] : memref<8x32xbf16, #tpu.memory_space<vmem>>, vector<8x8xbf16>
    tpu.vector_store %arg21[%c0_37, %c16], %95 {strides = array<i32>} : memref<8x32xbf16, #tpu.memory_space<vmem>>, vector<8x8xbf16>,
    %97 = vector.extract_strided_slice %11 {offsets = [0, 24], sizes = [8, 8], strides = [1, 1]} : vector<8x32xf32> to vector<8x8xf32>
    %98 = arith.truncf %97 : vector<8x8xf32> to vector<8x8xbf16>
    %99 = vector.shape_cast %98 : vector<8x8xbf16> to vector<1x8x8xbf16>
    %100 = vector.extract_strided_slice %16 {offsets = [0, 24], sizes = [8, 8], strides = [1, 1]} : vector<8x32xf32> to vector<8x8xf32>
    %101 = arith.truncf %100 : vector<8x8xf32> to vector<8x8xbf16>
    %102 = vector.shape_cast %101 : vector<8x8xbf16> to vector<1x8x8xbf16>
    %103 = vector.extract_strided_slice %21 {offsets = [0, 24], sizes = [8, 8], strides = [1, 1]} : vector<8x32xf32> to vector<8x8xf32>
    %104 = arith.truncf %103 : vector<8x8xf32> to vector<8x8xbf16>
    %105 = vector.shape_cast %104 : vector<8x8xbf16> to vector<1x8x8xbf16>
    "tpu.trace_start"() <{level = 10 : i32, message = "bqd,bkd->bqk"}> : () -> ()
    %cst_38 = arith.constant dense<0.000000e+00> : vector<1x8x8xf32>
    %106 = tpu.matmul %99, %102, %cst_38 {dimension_numbers = #tpu.dot_dimension_numbers<[2], [2], [1], [1], [0, 0, 0, 1, 1, 1], [0], [0]>} : vector<1x8x8xbf16>, vector<1x8x8xbf16>, vector<1x8x8xf32> -> vector<1x8x8xf32>
    "tpu.trace_stop"() : () -> ()
    %cst_39 = arith.constant dense<0xFF800000> : vector<1x8xf32>
    %107 = vector.multi_reduction <maximumf>, %106, %cst_39 [2] : vector<1x8x8xf32> to vector<1x8xf32>
    %108 = vector.shape_cast %107 : vector<1x8xf32> to vector<1x8x1xf32>
    %109 = vector.broadcast %108 : vector<1x8x1xf32> to vector<1x8x8xf32>
    %110 = arith.subf %106, %109 : vector<1x8x8xf32>
    %111 = math.exp %110 : vector<1x8x8xf32>
    %cst_40 = arith.constant dense<0.000000e+00> : vector<1x8xf32>
    %112 = vector.multi_reduction <add>, %111, %cst_40 [2] : vector<1x8x8xf32> to vector<1x8xf32>
    %113 = vector.shape_cast %112 : vector<1x8xf32> to vector<1x8x1xf32>
    %114 = tpu.reciprocal %113 {approx = true} : vector<1x8x1xf32> -> vector<1x8x1xf32>
    %115 = vector.broadcast %114 : vector<1x8x1xf32> to vector<1x8x8xf32>
    %116 = arith.mulf %111, %115 : vector<1x8x8xf32>
    %117 = arith.truncf %116 : vector<1x8x8xf32> to vector<1x8x8xbf16>
    "tpu.trace_start"() <{level = 10 : i32, message = "bqk,bkd->bqd"}> : () -> ()
    %cst_41 = arith.constant dense<0.000000e+00> : vector<1x8x8xf32>
    %118 = tpu.matmul %117, %105, %cst_41 {dimension_numbers = #tpu.dot_dimension_numbers<[2], [1], [1], [2], [0, 0, 0, 1, 1, 2], [0], [0]>} : vector<1x8x8xbf16>, vector<1x8x8xbf16>, vector<1x8x8xf32> -> vector<1x8x8xf32>
    "tpu.trace_stop"() : () -> ()
    %119 = vector.shape_cast %118 : vector<1x8x8xf32> to vector<8x8xf32>
    %120 = arith.truncf %119 : vector<8x8xf32> to vector<8x8xbf16>
    %c0_42 = arith.constant 0 : index
    %c24 = arith.constant 24 : index
    %121 = vector.load %arg21[%c0_42, %c24] : memref<8x32xbf16, #tpu.memory_space<vmem>>, vector<8x8xbf16>
    tpu.vector_store %arg21[%c0_42, %c24], %120 {strides = array<i32>} : memref<8x32xbf16, #tpu.memory_space<vmem>>, vector<8x8xbf16>,
    %c0_43 = arith.constant 0 : index
    %c0_44 = arith.constant 0 : index
    %122 = vector.load %arg21[%c0_43, %c0_44] : memref<8x32xbf16, #tpu.memory_space<vmem>>, vector<8x32xbf16>
    %c0_45 = arith.constant 0 : index
    %c0_46 = arith.constant 0 : index
    %123 = vector.load %arg10[%c0_45, %c0_46] : memref<32x32xbf16, #tpu.memory_space<vmem>>, vector<32x32xbf16>
    %cst_47 = arith.constant dense<0.000000e+00> : vector<8x32xf32>
    %124 = tpu.matmul %122, %123, %cst_47 {dimension_numbers = #tpu.dot_dimension_numbers<[1], [0], [0], [1], [0, 0, 1, 1], [], []>} : vector<8x32xbf16>, vector<32x32xbf16>, vector<8x32xf32> -> vector<8x32xf32>
    %c0_48 = arith.constant 0 : index
    %c0_49 = arith.constant 0 : index
    %125 = vector.load %arg11[%c0_48, %c0_49] : memref<1x32xf32, #tpu.memory_space<vmem>>, vector<1x32xf32>
    %126 = vector.broadcast %125 : vector<1x32xf32> to vector<8x32xf32>
    %127 = arith.addf %124, %126 : vector<8x32xf32>
    %128 = arith.addf %1, %127 : vector<8x32xf32>
    %cst_50 = arith.constant dense<0.000000e+00> : vector<8xf32>
    %129 = vector.multi_reduction <add>, %128, %cst_50 [1] : vector<8x32xf32> to vector<8xf32>
    %130 = vector.shape_cast %129 : vector<8xf32> to vector<8x1xf32>
    %cst_51 = arith.constant 3.200000e+01 : f32
    %131 = vector.broadcast %cst_51 : f32 to vector<8x1xf32>
    %132 = arith.divf %130, %131 : vector<8x1xf32>
    %133 = vector.broadcast %132 : vector<8x1xf32> to vector<8x32xf32>
    %134 = arith.subf %128, %133 : vector<8x32xf32>
    %135 = arith.mulf %134, %134 : vector<8x32xf32>
    %cst_52 = arith.constant dense<0.000000e+00> : vector<8xf32>
    %136 = vector.multi_reduction <add>, %135, %cst_52 [1] : vector<8x32xf32> to vector<8xf32>
    %137 = vector.shape_cast %136 : vector<8xf32> to vector<8x1xf32>
    %cst_53 = arith.constant 3.200000e+01 : f32
    %138 = vector.broadcast %cst_53 : f32 to vector<8x1xf32>
    %139 = arith.divf %137, %138 : vector<8x1xf32>
    %140 = vector.broadcast %132 : vector<8x1xf32> to vector<8x32xf32>
    %141 = arith.subf %128, %140 : vector<8x32xf32>
    %cst_54 = arith.constant 9.99999974E-6 : f32
    %142 = vector.broadcast %cst_54 : f32 to vector<8x1xf32>
    %143 = arith.addf %139, %142 : vector<8x1xf32>
    %144 = math.rsqrt %143 : vector<8x1xf32>
    %145 = vector.broadcast %144 : vector<8x1xf32> to vector<8x32xf32>
    %146 = arith.mulf %141, %145 : vector<8x32xf32>
    %c0_55 = arith.constant 0 : index
    %c0_56 = arith.constant 0 : index
    %147 = vector.load %arg12[%c0_55, %c0_56] : memref<1x32xf32, #tpu.memory_space<vmem>>, vector<1x32xf32>
    %148 = vector.broadcast %147 : vector<1x32xf32> to vector<8x32xf32>
    %149 = arith.mulf %146, %148 : vector<8x32xf32>
    %c0_57 = arith.constant 0 : index
    %c0_58 = arith.constant 0 : index
    %150 = vector.load %arg13[%c0_57, %c0_58] : memref<1x32xf32, #tpu.memory_space<vmem>>, vector<1x32xf32>
    %151 = vector.broadcast %150 : vector<1x32xf32> to vector<8x32xf32>
    %152 = arith.addf %149, %151 : vector<8x32xf32>
    %153 = arith.truncf %152 : vector<8x32xf32> to vector<8x32xbf16>
    %c0_59 = arith.constant 0 : index
    %c0_60 = arith.constant 0 : index
    %154 = vector.load %arg14[%c0_59, %c0_60] : memref<32x64xbf16, #tpu.memory_space<vmem>>, vector<32x64xbf16>
    %cst_61 = arith.constant dense<0.000000e+00> : vector<8x64xf32>
    %155 = tpu.matmul %153, %154, %cst_61 {dimension_numbers = #tpu.dot_dimension_numbers<[1], [0], [0], [1], [0, 0, 1, 1], [], []>} : vector<8x32xbf16>, vector<32x64xbf16>, vector<8x64xf32> -> vector<8x64xf32>
    %c0_62 = arith.constant 0 : index
    %c0_63 = arith.constant 0 : index
    %156 = vector.load %arg15[%c0_62, %c0_63] : memref<1x64xf32, #tpu.memory_space<vmem>>, vector<1x64xf32>
    %157 = vector.broadcast %156 : vector<1x64xf32> to vector<8x64xf32>
    %158 = arith.addf %155, %157 : vector<8x64xf32>
    %cst_64 = arith.constant 0.000000e+00 : f32
    %159 = vector.broadcast %cst_64 : f32 to vector<8x64xf32>
    %160 = arith.maximumf %158, %159 : vector<8x64xf32>
    %161 = arith.truncf %160 : vector<8x64xf32> to vector<8x64xbf16>
    %c0_65 = arith.constant 0 : index
    %c0_66 = arith.constant 0 : index
    %162 = vector.load %arg16[%c0_65, %c0_66] : memref<64x32xbf16, #tpu.memory_space<vmem>>, vector<64x32xbf16>
    %cst_67 = arith.constant dense<0.000000e+00> : vector<8x32xf32>
    %163 = tpu.matmul %161, %162, %cst_67 {dimension_numbers = #tpu.dot_dimension_numbers<[1], [0], [0], [1], [0, 0, 1, 1], [], []>} : vector<8x64xbf16>, vector<64x32xbf16>, vector<8x32xf32> -> vector<8x32xf32>
    %c0_68 = arith.constant 0 : index
    %c0_69 = arith.constant 0 : index
    %164 = vector.load %arg17[%c0_68, %c0_69] : memref<1x32xf32, #tpu.memory_space<vmem>>, vector<1x32xf32>
    %165 = vector.broadcast %164 : vector<1x32xf32> to vector<8x32xf32>
    %166 = arith.addf %163, %165 : vector<8x32xf32>
    %167 = arith.addf %152, %166 : vector<8x32xf32>
    %cst_70 = arith.constant dense<0.000000e+00> : vector<8xf32>
    %168 = vector.multi_reduction <add>, %167, %cst_70 [1] : vector<8x32xf32> to vector<8xf32>
    %169 = vector.shape_cast %168 : vector<8xf32> to vector<8x1xf32>
    %cst_71 = arith.constant 3.200000e+01 : f32
    %170 = vector.broadcast %cst_71 : f32 to vector<8x1xf32>
    %171 = arith.divf %169, %170 : vector<8x1xf32>
    %172 = vector.broadcast %171 : vector<8x1xf32> to vector<8x32xf32>
    %173 = arith.subf %167, %172 : vector<8x32xf32>
    %174 = arith.mulf %173, %173 : vector<8x32xf32>
    %cst_72 = arith.constant dense<0.000000e+00> : vector<8xf32>
    %175 = vector.multi_reduction <add>, %174, %cst_72 [1] : vector<8x32xf32> to vector<8xf32>
    %176 = vector.shape_cast %175 : vector<8xf32> to vector<8x1xf32>
    %cst_73 = arith.constant 3.200000e+01 : f32
    %177 = vector.broadcast %cst_73 : f32 to vector<8x1xf32>
    %178 = arith.divf %176, %177 : vector<8x1xf32>
    %179 = vector.broadcast %171 : vector<8x1xf32> to vector<8x32xf32>
    %180 = arith.subf %167, %179 : vector<8x32xf32>
    %cst_74 = arith.constant 9.99999974E-6 : f32
    %181 = vector.broadcast %cst_74 : f32 to vector<8x1xf32>
    %182 = arith.addf %178, %181 : vector<8x1xf32>
    %183 = math.rsqrt %182 : vector<8x1xf32>
    %184 = vector.broadcast %183 : vector<8x1xf32> to vector<8x32xf32>
    %185 = arith.mulf %180, %184 : vector<8x32xf32>
    %c0_75 = arith.constant 0 : index
    %c0_76 = arith.constant 0 : index
    %186 = vector.load %arg18[%c0_75, %c0_76] : memref<1x32xf32, #tpu.memory_space<vmem>>, vector<1x32xf32>
    %187 = vector.broadcast %186 : vector<1x32xf32> to vector<8x32xf32>
    %188 = arith.mulf %185, %187 : vector<8x32xf32>
    %c0_77 = arith.constant 0 : index
    %c0_78 = arith.constant 0 : index
    %189 = vector.load %arg19[%c0_77, %c0_78] : memref<1x32xf32, #tpu.memory_space<vmem>>, vector<1x32xf32>
    %190 = vector.broadcast %189 : vector<1x32xf32> to vector<8x32xf32>
    %191 = arith.addf %188, %190 : vector<8x32xf32>
    %192 = vector.shape_cast %191 : vector<8x32xf32> to vector<1x8x32xf32>
    %c0_79 = arith.constant 0 : index
    %c0_80 = arith.constant 0 : index
    %c0_81 = arith.constant 0 : index
    %193 = vector.load %arg20[%c0_79, %c0_80, %c0_81] : memref<1x8x32xf32, #tpu.memory_space<vmem>>, vector<1x8x32xf32>
    tpu.vector_store %arg20[%c0_79, %c0_80, %c0_81], %192 {strides = array<i32>} : memref<1x8x32xf32, #tpu.memory_space<vmem>>, vector<1x8x32xf32>,
    return
  }
  func.func @transform_0(%arg0: i32) -> (i32, i32, i32) {
    %c0_i32 = arith.constant 0 : i32
    %c0_i32_0 = arith.constant 0 : i32
    %c0_i32_1 = arith.constant 0 : i32
    return %arg0, %c0_i32, %c0_i32_0 : i32, i32, i32
  }
  func.func @transform_1(%arg0: i32) -> (i32, i32, i32) {
    %c0_i32 = arith.constant 0 : i32
    %c0_i32_0 = arith.constant 0 : i32
    %c0_i32_1 = arith.constant 0 : i32
    return %arg0, %c0_i32, %c0_i32_0 : i32, i32, i32
  }
  func.func @transform_2(%arg0: i32) -> (i32, i32, i32) {
    %c0_i32 = arith.constant 0 : i32
    %c0_i32_0 = arith.constant 0 : i32
    %c0_i32_1 = arith.constant 0 : i32
    return %arg0, %c0_i32, %c0_i32_0 : i32, i32, i32
  }
  func.func @transform_3(%arg0: i32) -> (i32, i32) {
    %c0_i32 = arith.constant 0 : i32
    %c0_i32_0 = arith.constant 0 : i32
    %c0_i32_1 = arith.constant 0 : i32
    return %c0_i32, %c0_i32_0 : i32, i32
  }
  func.func @transform_4(%arg0: i32) -> (i32, i32) {
    %c0_i32 = arith.constant 0 : i32
    %c0_i32_0 = arith.constant 0 : i32
    %c0_i32_1 = arith.constant 0 : i32
    return %c0_i32, %c0_i32_0 : i32, i32
  }
  func.func @transform_5(%arg0: i32) -> (i32, i32) {
    %c0_i32 = arith.constant 0 : i32
    %c0_i32_0 = arith.constant 0 : i32
    %c0_i32_1 = arith.constant 0 : i32
    return %c0_i32, %c0_i32_0 : i32, i32
  }
  func.func @transform_6(%arg0: i32) -> (i32, i32) {
    %c0_i32 = arith.constant 0 : i32
    %c0_i32_0 = arith.constant 0 : i32
    %c0_i32_1 = arith.constant 0 : i32
    return %c0_i32, %c0_i32_0 : i32, i32
  }
  func.func @transform_7(%arg0: i32) -> (i32, i32) {
    %c0_i32 = arith.constant 0 : i32
    %c0_i32_0 = arith.constant 0 : i32
    %c0_i32_1 = arith.constant 0 : i32
    return %c0_i32, %c0_i32_0 : i32, i32
  }
  func.func @transform_8(%arg0: i32) -> (i32, i32) {
    %c0_i32 = arith.constant 0 : i32
    %c0_i32_0 = arith.constant 0 : i32
    %c0_i32_1 = arith.constant 0 : i32
    return %c0_i32, %c0_i32_0 : i32, i32
  }
  func.func @transform_9(%arg0: i32) -> (i32, i32) {
    %c0_i32 = arith.constant 0 : i32
    %c0_i32_0 = arith.constant 0 : i32
    %c0_i32_1 = arith.constant 0 : i32
    return %c0_i32, %c0_i32_0 : i32, i32
  }
  func.func @transform_10(%arg0: i32) -> (i32, i32) {
    %c0_i32 = arith.constant 0 : i32
    %c0_i32_0 = arith.constant 0 : i32
    %c0_i32_1 = arith.constant 0 : i32
    return %c0_i32, %c0_i32_0 : i32, i32
  }
  func.func @transform_11(%arg0: i32) -> (i32, i32) {
    %c0_i32 = arith.constant 0 : i32
    %c0_i32_0 = arith.constant 0 : i32
    %c0_i32_1 = arith.constant 0 : i32
    return %c0_i32, %c0_i32_0 : i32, i32
  }
  func.func @transform_12(%arg0: i32) -> (i32, i32) {
    %c0_i32 = arith.constant 0 : i32
    %c0_i32_0 = arith.constant 0 : i32
    %c0_i32_1 = arith.constant 0 : i32
    return %c0_i32, %c0_i32_0 : i32, i32
  }
  func.func @transform_13(%arg0: i32) -> (i32, i32) {
    %c0_i32 = arith.constant 0 : i32
    %c0_i32_0 = arith.constant 0 : i32
    %c0_i32_1 = arith.constant 0 : i32
    return %c0_i32, %c0_i32_0 : i32, i32
  }
  func.func @transform_14(%arg0: i32) -> (i32, i32) {
    %c0_i32 = arith.constant 0 : i32
    %c0_i32_0 = arith.constant 0 : i32
    %c0_i32_1 = arith.constant 0 : i32
    return %c0_i32, %c0_i32_0 : i32, i32
  }
  func.func @transform_15(%arg0: i32) -> (i32, i32) {
    %c0_i32 = arith.constant 0 : i32
    %c0_i32_0 = arith.constant 0 : i32
    %c0_i32_1 = arith.constant 0 : i32
    return %c0_i32, %c0_i32_0 : i32, i32
  }
  func.func @transform_16(%arg0: i32) -> (i32, i32) {
    %c0_i32 = arith.constant 0 : i32
    %c0_i32_0 = arith.constant 0 : i32
    %c0_i32_1 = arith.constant 0 : i32
    return %c0_i32, %c0_i32_0 : i32, i32
  }
  func.func @transform_17(%arg0: i32) -> (i32, i32) {
    %c0_i32 = arith.constant 0 : i32
    %c0_i32_0 = arith.constant 0 : i32
    %c0_i32_1 = arith.constant 0 : i32
    return %c0_i32, %c0_i32_0 : i32, i32
  }
  func.func @transform_18(%arg0: i32) -> (i32, i32) {
    %c0_i32 = arith.constant 0 : i32
    %c0_i32_0 = arith.constant 0 : i32
    %c0_i32_1 = arith.constant 0 : i32
    return %c0_i32, %c0_i32_0 : i32, i32
  }
  func.func @transform_19(%arg0: i32) -> (i32, i32, i32) {
    %c0_i32 = arith.constant 0 : i32
    %c0_i32_0 = arith.constant 0 : i32
    %c0_i32_1 = arith.constant 0 : i32
    return %arg0, %c0_i32, %c0_i32_0 : i32, i32, i32
  }
}

module attributes {stable_mosaic.version = 11 : i64} {
  func.func @kernel(%arg0: i32, %arg1: memref<1x8x32xf32, #tpu.memory_space<vmem>>, %arg2: memref<1x8x32xbf16, #tpu.memory_space<vmem>>, %arg3: memref<1x8x32xbf16, #tpu.memory_space<vmem>>, %arg4: memref<32x32xbf16, #tpu.memory_space<vmem>>, %arg5: memref<1x32xf32, #tpu.memory_space<vmem>>, %arg6: memref<32x32xbf16, #tpu.memory_space<vmem>>, %arg7: memref<1x32xf32, #tpu.memory_space<vmem>>, %arg8: memref<32x32xbf16, #tpu.memory_space<vmem>>, %arg9: memref<1x32xf32, #tpu.memory_space<vmem>>, %arg10: memref<32x32xbf16, #tpu.memory_space<vmem>>, %arg11: memref<1x32xf32, #tpu.memory_space<vmem>>, %arg12: memref<1x32xf32, #tpu.memory_space<vmem>>, %arg13: memref<1x32xf32, #tpu.memory_space<vmem>>, %arg14: memref<32x64xbf16, #tpu.memory_space<vmem>>, %arg15: memref<1x64xf32, #tpu.memory_space<vmem>>, %arg16: memref<64x32xbf16, #tpu.memory_space<vmem>>, %arg17: memref<1x32xf32, #tpu.memory_space<vmem>>, %arg18: memref<1x32xf32, #tpu.memory_space<vmem>>, %arg19: memref<1x32xf32, #tpu.memory_space<vmem>>, %arg20: memref<1x8x32xf32, #tpu.memory_space<vmem>>, %arg21: memref<8x32xbf16, #tpu.memory_space<vmem>>) attributes {dimension_semantics = [#tpu.dimension_semantics<parallel>], iteration_bounds = array<i64: 2>, scalar_prefetch = 0 : i64, scratch_operands = 1 : i64, tpu.core_type = #tpu.core_type<tc>, window_params = [{transform_indices = @transform_0, window_bounds = array<i64: 1, 8, 32>}, {transform_indices = @transform_1, window_bounds = array<i64: 1, 8, 32>}, {transform_indices = @transform_2, window_bounds = array<i64: 1, 8, 32>}, {pipeline_mode = #tpu.pipeline_mode<synchronous>, transform_indices = @transform_3, window_bounds = array<i64: 32, 32>}, {pipeline_mode = #tpu.pipeline_mode<synchronous>, transform_indices = @transform_4, window_bounds = array<i64: 1, 32>}, {pipeline_mode = #tpu.pipeline_mode<synchronous>, transform_indices = @transform_5, window_bounds = array<i64: 32, 32>}, {pipeline_mode = #tpu.pipeline_mode<synchronous>, transform_indices = @transform_6, window_bounds = array<i64: 1, 32>}, {pipeline_mode = #tpu.pipeline_mode<synchronous>, transform_indices = @transform_7, window_bounds = array<i64: 32, 32>}, {pipeline_mode = #tpu.pipeline_mode<synchronous>, transform_indices = @transform_8, window_bounds = array<i64: 1, 32>}, {pipeline_mode = #tpu.pipeline_mode<synchronous>, transform_indices = @transform_9, window_bounds = array<i64: 32, 32>}, {pipeline_mode = #tpu.pipeline_mode<synchronous>, transform_indices = @transform_10, window_bounds = array<i64: 1, 32>}, {pipeline_mode = #tpu.pipeline_mode<synchronous>, transform_indices = @transform_11, window_bounds = array<i64: 1, 32>}, {pipeline_mode = #tpu.pipeline_mode<synchronous>, transform_indices = @transform_12, window_bounds = array<i64: 1, 32>}, {pipeline_mode = #tpu.pipeline_mode<synchronous>, transform_indices = @transform_13, window_bounds = array<i64: 32, 64>}, {pipeline_mode = #tpu.pipeline_mode<synchronous>, transform_indices = @transform_14, window_bounds = array<i64: 1, 64>}, {pipeline_mode = #tpu.pipeline_mode<synchronous>, transform_indices = @transform_15, window_bounds = array<i64: 64, 32>}, {pipeline_mode = #tpu.pipeline_mode<synchronous>, transform_indices = @transform_16, window_bounds = array<i64: 1, 32>}, {pipeline_mode = #tpu.pipeline_mode<synchronous>, transform_indices = @transform_17, window_bounds = array<i64: 1, 32>}, {pipeline_mode = #tpu.pipeline_mode<synchronous>, transform_indices = @transform_18, window_bounds = array<i64: 1, 32>}, {transform_indices = @transform_19, window_bounds = array<i64: 1, 8, 32>}]} {
    %c0 = arith.constant 0 : index
    %c0_0 = arith.constant 0 : index
    %c0_1 = arith.constant 0 : index
    %0 = vector.load %arg1[%c0, %c0_0, %c0_1] : memref<1x8x32xf32, #tpu.memory_space<vmem>>, vector<1x8x32xf32>
    %1 = vector.shape_cast %0 : vector<1x8x32xf32> to vector<8x32xf32>
    %c0_2 = arith.constant 0 : index
    %c0_3 = arith.constant 0 : index
    %c0_4 = arith.constant 0 : index
    %2 = vector.load %arg2[%c0_2, %c0_3, %c0_4] : memref<1x8x32xbf16, #tpu.memory_space<vmem>>, vector<1x8x32xbf16>
    %3 = vector.shape_cast %2 : vector<1x8x32xbf16> to vector<8x32xbf16>
    %c0_5 = arith.constant 0 : index
    %c0_6 = arith.constant 0 : index
    %c0_7 = arith.constant 0 : index
    %4 = vector.load %arg3[%c0_5, %c0_6, %c0_7] : memref<1x8x32xbf16, #tpu.memory_space<vmem>>, vector<1x8x32xbf16>
    %5 = vector.shape_cast %4 : vector<1x8x32xbf16> to vector<8x32xbf16>
    %6 = arith.truncf %1 : vector<8x32xf32> to vector<8x32xbf16>
    %c0_8 = arith.constant 0 : index
    %c0_9 = arith.constant 0 : index
    %7 = vector.load %arg4[%c0_8, %c0_9] : memref<32x32xbf16, #tpu.memory_space<vmem>>, vector<32x32xbf16>
    %cst = arith.constant dense<0.000000e+00> : vector<8x32xf32>
    %8 = tpu.matmul %6, %7, %cst {dimension_numbers = #tpu.dot_dimension_numbers<[1], [0], [0], [1], [0, 0, 1, 1], [], []>} : vector<8x32xbf16>, vector<32x32xbf16>, vector<8x32xf32> -> vector<8x32xf32>
    %c0_10 = arith.constant 0 : index
    %c0_11 = arith.constant 0 : index
    %9 = vector.load %arg5[%c0_10, %c0_11] : memref<1x32xf32, #tpu.memory_space<vmem>>, vector<1x32xf32>
    %10 = vector.broadcast %9 : vector<1x32xf32> to vector<8x32xf32>
    %11 = arith.addf %8, %10 : vector<8x32xf32>
    %c0_12 = arith.constant 0 : index
    %c0_13 = arith.constant 0 : index
    %12 = vector.load %arg6[%c0_12, %c0_13] : memref<32x32xbf16, #tpu.memory_space<vmem>>, vector<32x32xbf16>
    %cst_14 = arith.constant dense<0.000000e+00> : vector<8x32xf32>
    %13 = tpu.matmul %3, %12, %cst_14 {dimension_numbers = #tpu.dot_dimension_numbers<[1], [0], [0], [1], [0, 0, 1, 1], [], []>} : vector<8x32xbf16>, vector<32x32xbf16>, vector<8x32xf32> -> vector<8x32xf32>
    %c0_15 = arith.constant 0 : index
    %c0_16 = arith.constant 0 : index
    %14 = vector.load %arg7[%c0_15, %c0_16] : memref<1x32xf32, #tpu.memory_space<vmem>>, vector<1x32xf32>
    %15 = vector.broadcast %14 : vector<1x32xf32> to vector<8x32xf32>
    %16 = arith.addf %13, %15 : vector<8x32xf32>
    %c0_17 = arith.constant 0 : index
    %c0_18 = arith.constant 0 : index
    %17 = vector.load %arg8[%c0_17, %c0_18] : memref<32x32xbf16, #tpu.memory_space<vmem>>, vector<32x32xbf16>
    %cst_19 = arith.constant dense<0.000000e+00> : vector<8x32xf32>
    %18 = tpu.matmul %5, %17, %cst_19 {dimension_numbers = #tpu.dot_dimension_numbers<[1], [0], [0], [1], [0, 0, 1, 1], [], []>} : vector<8x32xbf16>, vector<32x32xbf16>, vector<8x32xf32> -> vector<8x32xf32>
    %c0_20 = arith.constant 0 : index
    %c0_21 = arith.constant 0 : index
    %19 = vector.load %arg9[%c0_20, %c0_21] : memref<1x32xf32, #tpu.memory_space<vmem>>, vector<1x32xf32>
    %20 = vector.broadcast %19 : vector<1x32xf32> to vector<8x32xf32>
    %21 = arith.addf %18, %20 : vector<8x32xf32>
    %22 = vector.extract_strided_slice %11 {offsets = [0, 0], sizes = [8, 8], strides = [1, 1]} : vector<8x32xf32> to vector<8x8xf32>
    %23 = arith.truncf %22 : vector<8x8xf32> to vector<8x8xbf16>
    %24 = vector.shape_cast %23 : vector<8x8xbf16> to vector<1x8x8xbf16>
    %25 = vector.extract_strided_slice %16 {offsets = [0, 0], sizes = [8, 8], strides = [1, 1]} : vector<8x32xf32> to vector<8x8xf32>
    %26 = arith.truncf %25 : vector<8x8xf32> to vector<8x8xbf16>
    %27 = vector.shape_cast %26 : vector<8x8xbf16> to vector<1x8x8xbf16>
    %28 = vector.extract_strided_slice %21 {offsets = [0, 0], sizes = [8, 8], strides = [1, 1]} : vector<8x32xf32> to vector<8x8xf32>
    %29 = arith.truncf %28 : vector<8x8xf32> to vector<8x8xbf16>
    %30 = vector.shape_cast %29 : vector<8x8xbf16> to vector<1x8x8xbf16>
    "tpu.trace_start"() <{level = 10 : i32, message = "bqd,bkd->bqk"}> : () -> ()
    %cst_22 = arith.constant dense<0.000000e+00> : vector<1x8x8xf32>
    %31 = tpu.matmul %24, %27, %cst_22 {dimension_numbers = #tpu.dot_dimension_numbers<[2], [2], [1], [1], [0, 0, 0, 1, 1, 1], [0], [0]>} : vector<1x8x8xbf16>, vector<1x8x8xbf16>, vector<1x8x8xf32> -> vector<1x8x8xf32>
    "tpu.trace_stop"() : () -> ()
    %cst_23 = arith.constant dense<0xFF800000> : vector<1x8xf32>
    %32 = vector.multi_reduction <maximumf>, %31, %cst_23 [2] : vector<1x8x8xf32> to vector<1x8xf32>
    %33 = vector.shape_cast %32 : vector<1x8xf32> to vector<1x8x1xf32>
    %34 = vector.broadcast %33 : vector<1x8x1xf32> to vector<1x8x8xf32>
    %35 = arith.subf %31, %34 : vector<1x8x8xf32>
    %36 = math.exp %35 : vector<1x8x8xf32>
    %cst_24 = arith.constant dense<0.000000e+00> : vector<1x8xf32>
    %37 = vector.multi_reduction <add>, %36, %cst_24 [2] : vector<1x8x8xf32> to vector<1x8xf32>
    %38 = vector.shape_cast %37 : vector<1x8xf32> to vector<1x8x1xf32>
    %39 = tpu.reciprocal %38 {approx = true} : vector<1x8x1xf32> -> vector<1x8x1xf32>
    %40 = vector.broadcast %39 : vector<1x8x1xf32> to vector<1x8x8xf32>
    %41 = arith.mulf %36, %40 : vector<1x8x8xf32>
    %42 = arith.truncf %41 : vector<1x8x8xf32> to vector<1x8x8xbf16>
    "tpu.trace_start"() <{level = 10 : i32, message = "bqk,bkd->bqd"}> : () -> ()
    %cst_25 = arith.constant dense<0.000000e+00> : vector<1x8x8xf32>
    %43 = tpu.matmul %42, %30, %cst_25 {dimension_numbers = #tpu.dot_dimension_numbers<[2], [1], [1], [2], [0, 0, 0, 1, 1, 2], [0], [0]>} : vector<1x8x8xbf16>, vector<1x8x8xbf16>, vector<1x8x8xf32> -> vector<1x8x8xf32>
    "tpu.trace_stop"() : () -> ()
    %44 = vector.shape_cast %43 : vector<1x8x8xf32> to vector<8x8xf32>
    %45 = arith.truncf %44 : vector<8x8xf32> to vector<8x8xbf16>
    %c0_26 = arith.constant 0 : index
    %c0_27 = arith.constant 0 : index
    %46 = vector.load %arg21[%c0_26, %c0_27] : memref<8x32xbf16, #tpu.memory_space<vmem>>, vector<8x8xbf16>
    tpu.vector_store %arg21[%c0_26, %c0_27], %45 {strides = array<i32>} : memref<8x32xbf16, #tpu.memory_space<vmem>>, vector<8x8xbf16>,
    %47 = vector.extract_strided_slice %11 {offsets = [0, 8], sizes = [8, 8], strides = [1, 1]} : vector<8x32xf32> to vector<8x8xf32>
    %48 = arith.truncf %47 : vector<8x8xf32> to vector<8x8xbf16>
    %49 = vector.shape_cast %48 : vector<8x8xbf16> to vector<1x8x8xbf16>
    %50 = vector.extract_strided_slice %16 {offsets = [0, 8], sizes = [8, 8], strides = [1, 1]} : vector<8x32xf32> to vector<8x8xf32>
    %51 = arith.truncf %50 : vector<8x8xf32> to vector<8x8xbf16>
    %52 = vector.shape_cast %51 : vector<8x8xbf16> to vector<1x8x8xbf16>
    %53 = vector.extract_strided_slice %21 {offsets = [0, 8], sizes = [8, 8], strides = [1, 1]} : vector<8x32xf32> to vector<8x8xf32>
    %54 = arith.truncf %53 : vector<8x8xf32> to vector<8x8xbf16>
    %55 = vector.shape_cast %54 : vector<8x8xbf16> to vector<1x8x8xbf16>
    "tpu.trace_start"() <{level = 10 : i32, message = "bqd,bkd->bqk"}> : () -> ()
    %cst_28 = arith.constant dense<0.000000e+00> : vector<1x8x8xf32>
    %56 = tpu.matmul %49, %52, %cst_28 {dimension_numbers = #tpu.dot_dimension_numbers<[2], [2], [1], [1], [0, 0, 0, 1, 1, 1], [0], [0]>} : vector<1x8x8xbf16>, vector<1x8x8xbf16>, vector<1x8x8xf32> -> vector<1x8x8xf32>
    "tpu.trace_stop"() : () -> ()
    %cst_29 = arith.constant dense<0xFF800000> : vector<1x8xf32>
    %57 = vector.multi_reduction <maximumf>, %56, %cst_29 [2] : vector<1x8x8xf32> to vector<1x8xf32>
    %58 = vector.shape_cast %57 : vector<1x8xf32> to vector<1x8x1xf32>
    %59 = vector.broadcast %58 : vector<1x8x1xf32> to vector<1x8x8xf32>
    %60 = arith.subf %56, %59 : vector<1x8x8xf32>
    %61 = math.exp %60 : vector<1x8x8xf32>
    %cst_30 = arith.constant dense<0.000000e+00> : vector<1x8xf32>
    %62 = vector.multi_reduction <add>, %61, %cst_30 [2] : vector<1x8x8xf32> to vector<1x8xf32>
    %63 = vector.shape_cast %62 : vector<1x8xf32> to vector<1x8x1xf32>
    %64 = tpu.reciprocal %63 {approx = true} : vector<1x8x1xf32> -> vector<1x8x1xf32>
    %65 = vector.broadcast %64 : vector<1x8x1xf32> to vector<1x8x8xf32>
    %66 = arith.mulf %61, %65 : vector<1x8x8xf32>
    %67 = arith.truncf %66 : vector<1x8x8xf32> to vector<1x8x8xbf16>
    "tpu.trace_start"() <{level = 10 : i32, message = "bqk,bkd->bqd"}> : () -> ()
    %cst_31 = arith.constant dense<0.000000e+00> : vector<1x8x8xf32>
    %68 = tpu.matmul %67, %55, %cst_31 {dimension_numbers = #tpu.dot_dimension_numbers<[2], [1], [1], [2], [0, 0, 0, 1, 1, 2], [0], [0]>} : vector<1x8x8xbf16>, vector<1x8x8xbf16>, vector<1x8x8xf32> -> vector<1x8x8xf32>
    "tpu.trace_stop"() : () -> ()
    %69 = vector.shape_cast %68 : vector<1x8x8xf32> to vector<8x8xf32>
    %70 = arith.truncf %69 : vector<8x8xf32> to vector<8x8xbf16>
    %c0_32 = arith.constant 0 : index
    %c8 = arith.constant 8 : index
    %71 = vector.load %arg21[%c0_32, %c8] : memref<8x32xbf16, #tpu.memory_space<vmem>>, vector<8x8xbf16>
    tpu.vector_store %arg21[%c0_32, %c8], %70 {strides = array<i32>} : memref<8x32xbf16, #tpu.memory_space<vmem>>, vector<8x8xbf16>,
    %72 = vector.extract_strided_slice %11 {offsets = [0, 16], sizes = [8, 8], strides = [1, 1]} : vector<8x32xf32> to vector<8x8xf32>
    %73 = arith.truncf %72 : vector<8x8xf32> to vector<8x8xbf16>
    %74 = vector.shape_cast %73 : vector<8x8xbf16> to vector<1x8x8xbf16>
    %75 = vector.extract_strided_slice %16 {offsets = [0, 16], sizes = [8, 8], strides = [1, 1]} : vector<8x32xf32> to vector<8x8xf32>
    %76 = arith.truncf %75 : vector<8x8xf32> to vector<8x8xbf16>
    %77 = vector.shape_cast %76 : vector<8x8xbf16> to vector<1x8x8xbf16>
    %78 = vector.extract_strided_slice %21 {offsets = [0, 16], sizes = [8, 8], strides = [1, 1]} : vector<8x32xf32> to vector<8x8xf32>
    %79 = arith.truncf %78 : vector<8x8xf32> to vector<8x8xbf16>
    %80 = vector.shape_cast %79 : vector<8x8xbf16> to vector<1x8x8xbf16>
    "tpu.trace_start"() <{level = 10 : i32, message = "bqd,bkd->bqk"}> : () -> ()
    %cst_33 = arith.constant dense<0.000000e+00> : vector<1x8x8xf32>
    %81 = tpu.matmul %74, %77, %cst_33 {dimension_numbers = #tpu.dot_dimension_numbers<[2], [2], [1], [1], [0, 0, 0, 1, 1, 1], [0], [0]>} : vector<1x8x8xbf16>, vector<1x8x8xbf16>, vector<1x8x8xf32> -> vector<1x8x8xf32>
    "tpu.trace_stop"() : () -> ()
    %cst_34 = arith.constant dense<0xFF800000> : vector<1x8xf32>
    %82 = vector.multi_reduction <maximumf>, %81, %cst_34 [2] : vector<1x8x8xf32> to vector<1x8xf32>
    %83 = vector.shape_cast %82 : vector<1x8xf32> to vector<1x8x1xf32>
    %84 = vector.broadcast %83 : vector<1x8x1xf32> to vector<1x8x8xf32>
    %85 = arith.subf %81, %84 : vector<1x8x8xf32>
    %86 = math.exp %85 : vector<1x8x8xf32>
    %cst_35 = arith.constant dense<0.000000e+00> : vector<1x8xf32>
    %87 = vector.multi_reduction <add>, %86, %cst_35 [2] : vector<1x8x8xf32> to vector<1x8xf32>
    %88 = vector.shape_cast %87 : vector<1x8xf32> to vector<1x8x1xf32>
    %89 = tpu.reciprocal %88 {approx = true} : vector<1x8x1xf32> -> vector<1x8x1xf32>
    %90 = vector.broadcast %89 : vector<1x8x1xf32> to vector<1x8x8xf32>
    %91 = arith.mulf %86, %90 : vector<1x8x8xf32>
    %92 = arith.truncf %91 : vector<1x8x8xf32> to vector<1x8x8xbf16>
    "tpu.trace_start"() <{level = 10 : i32, message = "bqk,bkd->bqd"}> : () -> ()
    %cst_36 = arith.constant dense<0.000000e+00> : vector<1x8x8xf32>
    %93 = tpu.matmul %92, %80, %cst_36 {dimension_numbers = #tpu.dot_dimension_numbers<[2], [1], [1], [2], [0, 0, 0, 1, 1, 2], [0], [0]>} : vector<1x8x8xbf16>, vector<1x8x8xbf16>, vector<1x8x8xf32> -> vector<1x8x8xf32>
    "tpu.trace_stop"() : () -> ()
    %94 = vector.shape_cast %93 : vector<1x8x8xf32> to vector<8x8xf32>
    %95 = arith.truncf %94 : vector<8x8xf32> to vector<8x8xbf16>
    %c0_37 = arith.constant 0 : index
    %c16 = arith.constant 16 : index
    %96 = vector.load %arg21[%c0_37, %c16] : memref<8x32xbf16, #tpu.memory_space<vmem>>, vector<8x8xbf16>
    tpu.vector_store %arg21[%c0_37, %c16], %95 {strides = array<i32>} : memref<8x32xbf16, #tpu.memory_space<vmem>>, vector<8x8xbf16>,
    %97 = vector.extract_strided_slice %11 {offsets = [0, 24], sizes = [8, 8], strides = [1, 1]} : vector<8x32xf32> to vector<8x8xf32>
    %98 = arith.truncf %97 : vector<8x8xf32> to vector<8x8xbf16>
    %99 = vector.shape_cast %98 : vector<8x8xbf16> to vector<1x8x8xbf16>
    %100 = vector.extract_strided_slice %16 {offsets = [0, 24], sizes = [8, 8], strides = [1, 1]} : vector<8x32xf32> to vector<8x8xf32>
    %101 = arith.truncf %100 : vector<8x8xf32> to vector<8x8xbf16>
    %102 = vector.shape_cast %101 : vector<8x8xbf16> to vector<1x8x8xbf16>
    %103 = vector.extract_strided_slice %21 {offsets = [0, 24], sizes = [8, 8], strides = [1, 1]} : vector<8x32xf32> to vector<8x8xf32>
    %104 = arith.truncf %103 : vector<8x8xf32> to vector<8x8xbf16>
    %105 = vector.shape_cast %104 : vector<8x8xbf16> to vector<1x8x8xbf16>
    "tpu.trace_start"() <{level = 10 : i32, message = "bqd,bkd->bqk"}> : () -> ()
    %cst_38 = arith.constant dense<0.000000e+00> : vector<1x8x8xf32>
    %106 = tpu.matmul %99, %102, %cst_38 {dimension_numbers = #tpu.dot_dimension_numbers<[2], [2], [1], [1], [0, 0, 0, 1, 1, 1], [0], [0]>} : vector<1x8x8xbf16>, vector<1x8x8xbf16>, vector<1x8x8xf32> -> vector<1x8x8xf32>
    "tpu.trace_stop"() : () -> ()
    %cst_39 = arith.constant dense<0xFF800000> : vector<1x8xf32>
    %107 = vector.multi_reduction <maximumf>, %106, %cst_39 [2] : vector<1x8x8xf32> to vector<1x8xf32>
    %108 = vector.shape_cast %107 : vector<1x8xf32> to vector<1x8x1xf32>
    %109 = vector.broadcast %108 : vector<1x8x1xf32> to vector<1x8x8xf32>
    %110 = arith.subf %106, %109 : vector<1x8x8xf32>
    %111 = math.exp %110 : vector<1x8x8xf32>
    %cst_40 = arith.constant dense<0.000000e+00> : vector<1x8xf32>
    %112 = vector.multi_reduction <add>, %111, %cst_40 [2] : vector<1x8x8xf32> to vector<1x8xf32>
    %113 = vector.shape_cast %112 : vector<1x8xf32> to vector<1x8x1xf32>
    %114 = tpu.reciprocal %113 {approx = true} : vector<1x8x1xf32> -> vector<1x8x1xf32>
    %115 = vector.broadcast %114 : vector<1x8x1xf32> to vector<1x8x8xf32>
    %116 = arith.mulf %111, %115 : vector<1x8x8xf32>
    %117 = arith.truncf %116 : vector<1x8x8xf32> to vector<1x8x8xbf16>
    "tpu.trace_start"() <{level = 10 : i32, message = "bqk,bkd->bqd"}> : () -> ()
    %cst_41 = arith.constant dense<0.000000e+00> : vector<1x8x8xf32>
    %118 = tpu.matmul %117, %105, %cst_41 {dimension_numbers = #tpu.dot_dimension_numbers<[2], [1], [1], [2], [0, 0, 0, 1, 1, 2], [0], [0]>} : vector<1x8x8xbf16>, vector<1x8x8xbf16>, vector<1x8x8xf32> -> vector<1x8x8xf32>
    "tpu.trace_stop"() : () -> ()
    %119 = vector.shape_cast %118 : vector<1x8x8xf32> to vector<8x8xf32>
    %120 = arith.truncf %119 : vector<8x8xf32> to vector<8x8xbf16>
    %c0_42 = arith.constant 0 : index
    %c24 = arith.constant 24 : index
    %121 = vector.load %arg21[%c0_42, %c24] : memref<8x32xbf16, #tpu.memory_space<vmem>>, vector<8x8xbf16>
    tpu.vector_store %arg21[%c0_42, %c24], %120 {strides = array<i32>} : memref<8x32xbf16, #tpu.memory_space<vmem>>, vector<8x8xbf16>,
    %c0_43 = arith.constant 0 : index
    %c0_44 = arith.constant 0 : index
    %122 = vector.load %arg21[%c0_43, %c0_44] : memref<8x32xbf16, #tpu.memory_space<vmem>>, vector<8x32xbf16>
    %c0_45 = arith.constant 0 : index
    %c0_46 = arith.constant 0 : index
    %123 = vector.load %arg10[%c0_45, %c0_46] : memref<32x32xbf16, #tpu.memory_space<vmem>>, vector<32x32xbf16>
    %cst_47 = arith.constant dense<0.000000e+00> : vector<8x32xf32>
    %124 = tpu.matmul %122, %123, %cst_47 {dimension_numbers = #tpu.dot_dimension_numbers<[1], [0], [0], [1], [0, 0, 1, 1], [], []>} : vector<8x32xbf16>, vector<32x32xbf16>, vector<8x32xf32> -> vector<8x32xf32>
    %c0_48 = arith.constant 0 : index
    %c0_49 = arith.constant 0 : index
    %125 = vector.load %arg11[%c0_48, %c0_49] : memref<1x32xf32, #tpu.memory_space<vmem>>, vector<1x32xf32>
    %126 = vector.broadcast %125 : vector<1x32xf32> to vector<8x32xf32>
    %127 = arith.addf %124, %126 : vector<8x32xf32>
    %128 = arith.addf %1, %127 : vector<8x32xf32>
    %cst_50 = arith.constant dense<0.000000e+00> : vector<8xf32>
    %129 = vector.multi_reduction <add>, %128, %cst_50 [1] : vector<8x32xf32> to vector<8xf32>
    %130 = vector.shape_cast %129 : vector<8xf32> to vector<8x1xf32>
    %cst_51 = arith.constant 3.200000e+01 : f32
    %131 = vector.broadcast %cst_51 : f32 to vector<8x1xf32>
    %132 = arith.divf %130, %131 : vector<8x1xf32>
    %133 = vector.broadcast %132 : vector<8x1xf32> to vector<8x32xf32>
    %134 = arith.subf %128, %133 : vector<8x32xf32>
    %135 = arith.mulf %134, %134 : vector<8x32xf32>
    %cst_52 = arith.constant dense<0.000000e+00> : vector<8xf32>
    %136 = vector.multi_reduction <add>, %135, %cst_52 [1] : vector<8x32xf32> to vector<8xf32>
    %137 = vector.shape_cast %136 : vector<8xf32> to vector<8x1xf32>
    %cst_53 = arith.constant 3.200000e+01 : f32
    %138 = vector.broadcast %cst_53 : f32 to vector<8x1xf32>
    %139 = arith.divf %137, %138 : vector<8x1xf32>
    %140 = vector.broadcast %132 : vector<8x1xf32> to vector<8x32xf32>
    %141 = arith.subf %128, %140 : vector<8x32xf32>
    %cst_54 = arith.constant 9.99999974E-6 : f32
    %142 = vector.broadcast %cst_54 : f32 to vector<8x1xf32>
    %143 = arith.addf %139, %142 : vector<8x1xf32>
    %144 = math.rsqrt %143 : vector<8x1xf32>
    %145 = vector.broadcast %144 : vector<8x1xf32> to vector<8x32xf32>
    %146 = arith.mulf %141, %145 : vector<8x32xf32>
    %c0_55 = arith.constant 0 : index
    %c0_56 = arith.constant 0 : index
    %147 = vector.load %arg12[%c0_55, %c0_56] : memref<1x32xf32, #tpu.memory_space<vmem>>, vector<1x32xf32>
    %148 = vector.broadcast %147 : vector<1x32xf32> to vector<8x32xf32>
    %149 = arith.mulf %146, %148 : vector<8x32xf32>
    %c0_57 = arith.constant 0 : index
    %c0_58 = arith.constant 0 : index
    %150 = vector.load %arg13[%c0_57, %c0_58] : memref<1x32xf32, #tpu.memory_space<vmem>>, vector<1x32xf32>
    %151 = vector.broadcast %150 : vector<1x32xf32> to vector<8x32xf32>
    %152 = arith.addf %149, %151 : vector<8x32xf32>
    %153 = arith.truncf %152 : vector<8x32xf32> to vector<8x32xbf16>
    %c0_59 = arith.constant 0 : index
    %c0_60 = arith.constant 0 : index
    %154 = vector.load %arg14[%c0_59, %c0_60] : memref<32x64xbf16, #tpu.memory_space<vmem>>, vector<32x64xbf16>
    %cst_61 = arith.constant dense<0.000000e+00> : vector<8x64xf32>
    %155 = tpu.matmul %153, %154, %cst_61 {dimension_numbers = #tpu.dot_dimension_numbers<[1], [0], [0], [1], [0, 0, 1, 1], [], []>} : vector<8x32xbf16>, vector<32x64xbf16>, vector<8x64xf32> -> vector<8x64xf32>
    %c0_62 = arith.constant 0 : index
    %c0_63 = arith.constant 0 : index
    %156 = vector.load %arg15[%c0_62, %c0_63] : memref<1x64xf32, #tpu.memory_space<vmem>>, vector<1x64xf32>
    %157 = vector.broadcast %156 : vector<1x64xf32> to vector<8x64xf32>
    %158 = arith.addf %155, %157 : vector<8x64xf32>
    %cst_64 = arith.constant 0.000000e+00 : f32
    %159 = vector.broadcast %cst_64 : f32 to vector<8x64xf32>
    %160 = arith.maximumf %158, %159 : vector<8x64xf32>
    %161 = arith.truncf %160 : vector<8x64xf32> to vector<8x64xbf16>
    %c0_65 = arith.constant 0 : index
    %c0_66 = arith.constant 0 : index
    %162 = vector.load %arg16[%c0_65, %c0_66] : memref<64x32xbf16, #tpu.memory_space<vmem>>, vector<64x32xbf16>
    %cst_67 = arith.constant dense<0.000000e+00> : vector<8x32xf32>
    %163 = tpu.matmul %161, %162, %cst_67 {dimension_numbers = #tpu.dot_dimension_numbers<[1], [0], [0], [1], [0, 0, 1, 1], [], []>} : vector<8x64xbf16>, vector<64x32xbf16>, vector<8x32xf32> -> vector<8x32xf32>
    %c0_68 = arith.constant 0 : index
    %c0_69 = arith.constant 0 : index
    %164 = vector.load %arg17[%c0_68, %c0_69] : memref<1x32xf32, #tpu.memory_space<vmem>>, vector<1x32xf32>
    %165 = vector.broadcast %164 : vector<1x32xf32> to vector<8x32xf32>
    %166 = arith.addf %163, %165 : vector<8x32xf32>
    %167 = arith.addf %152, %166 : vector<8x32xf32>
    %cst_70 = arith.constant dense<0.000000e+00> : vector<8xf32>
    %168 = vector.multi_reduction <add>, %167, %cst_70 [1] : vector<8x32xf32> to vector<8xf32>
    %169 = vector.shape_cast %168 : vector<8xf32> to vector<8x1xf32>
    %cst_71 = arith.constant 3.200000e+01 : f32
    %170 = vector.broadcast %cst_71 : f32 to vector<8x1xf32>
    %171 = arith.divf %169, %170 : vector<8x1xf32>
    %172 = vector.broadcast %171 : vector<8x1xf32> to vector<8x32xf32>
    %173 = arith.subf %167, %172 : vector<8x32xf32>
    %174 = arith.mulf %173, %173 : vector<8x32xf32>
    %cst_72 = arith.constant dense<0.000000e+00> : vector<8xf32>
    %175 = vector.multi_reduction <add>, %174, %cst_72 [1] : vector<8x32xf32> to vector<8xf32>
    %176 = vector.shape_cast %175 : vector<8xf32> to vector<8x1xf32>
    %cst_73 = arith.constant 3.200000e+01 : f32
    %177 = vector.broadcast %cst_73 : f32 to vector<8x1xf32>
    %178 = arith.divf %176, %177 : vector<8x1xf32>
    %179 = vector.broadcast %171 : vector<8x1xf32> to vector<8x32xf32>
    %180 = arith.subf %167, %179 : vector<8x32xf32>
    %cst_74 = arith.constant 9.99999974E-6 : f32
    %181 = vector.broadcast %cst_74 : f32 to vector<8x1xf32>
    %182 = arith.addf %178, %181 : vector<8x1xf32>
    %183 = math.rsqrt %182 : vector<8x1xf32>
    %184 = vector.broadcast %183 : vector<8x1xf32> to vector<8x32xf32>
    %185 = arith.mulf %180, %184 : vector<8x32xf32>
    %c0_75 = arith.constant 0 : index
    %c0_76 = arith.constant 0 : index
    %186 = vector.load %arg18[%c0_75, %c0_76] : memref<1x32xf32, #tpu.memory_space<vmem>>, vector<1x32xf32>
    %187 = vector.broadcast %186 : vector<1x32xf32> to vector<8x32xf32>
    %188 = arith.mulf %185, %187 : vector<8x32xf32>
    %c0_77 = arith.constant 0 : index
    %c0_78 = arith.constant 0 : index
    %189 = vector.load %arg19[%c0_77, %c0_78] : memref<1x32xf32, #tpu.memory_space<vmem>>, vector<1x32xf32>
    %190 = vector.broadcast %189 : vector<1x32xf32> to vector<8x32xf32>
    %191 = arith.addf %188, %190 : vector<8x32xf32>
    %192 = vector.shape_cast %191 : vector<8x32xf32> to vector<1x8x32xf32>
    %c0_79 = arith.constant 0 : index
    %c0_80 = arith.constant 0 : index
    %c0_81 = arith.constant 0 : index
    %193 = vector.load %arg20[%c0_79, %c0_80, %c0_81] : memref<1x8x32xf32, #tpu.memory_space<vmem>>, vector<1x8x32xf32>
    tpu.vector_store %arg20[%c0_79, %c0_80, %c0_81], %192 {strides = array<i32>} : memref<1x8x32xf32, #tpu.memory_space<vmem>>, vector<1x8x32xf32>,
    return
  }
  func.func @transform_0(%arg0: i32) -> (i32, i32, i32) {
    %c0_i32 = arith.constant 0 : i32
    %c0_i32_0 = arith.constant 0 : i32
    %c0_i32_1 = arith.constant 0 : i32
    return %arg0, %c0_i32, %c0_i32_0 : i32, i32, i32
  }
  func.func @transform_1(%arg0: i32) -> (i32, i32, i32) {
    %c0_i32 = arith.constant 0 : i32
    %c0_i32_0 = arith.constant 0 : i32
    %c0_i32_1 = arith.constant 0 : i32
    return %arg0, %c0_i32, %c0_i32_0 : i32, i32, i32
  }
  func.func @transform_2(%arg0: i32) -> (i32, i32, i32) {
    %c0_i32 = arith.constant 0 : i32
    %c0_i32_0 = arith.constant 0 : i32
    %c0_i32_1 = arith.constant 0 : i32
    return %arg0, %c0_i32, %c0_i32_0 : i32, i32, i32
  }
  func.func @transform_3(%arg0: i32) -> (i32, i32) {
    %c0_i32 = arith.constant 0 : i32
    %c0_i32_0 = arith.constant 0 : i32
    %c0_i32_1 = arith.constant 0 : i32
    return %c0_i32, %c0_i32_0 : i32, i32
  }
  func.func @transform_4(%arg0: i32) -> (i32, i32) {
    %c0_i32 = arith.constant 0 : i32
    %c0_i32_0 = arith.constant 0 : i32
    %c0_i32_1 = arith.constant 0 : i32
    return %c0_i32, %c0_i32_0 : i32, i32
  }
  func.func @transform_5(%arg0: i32) -> (i32, i32) {
    %c0_i32 = arith.constant 0 : i32
    %c0_i32_0 = arith.constant 0 : i32
    %c0_i32_1 = arith.constant 0 : i32
    return %c0_i32, %c0_i32_0 : i32, i32
  }
  func.func @transform_6(%arg0: i32) -> (i32, i32) {
    %c0_i32 = arith.constant 0 : i32
    %c0_i32_0 = arith.constant 0 : i32
    %c0_i32_1 = arith.constant 0 : i32
    return %c0_i32, %c0_i32_0 : i32, i32
  }
  func.func @transform_7(%arg0: i32) -> (i32, i32) {
    %c0_i32 = arith.constant 0 : i32
    %c0_i32_0 = arith.constant 0 : i32
    %c0_i32_1 = arith.constant 0 : i32
    return %c0_i32, %c0_i32_0 : i32, i32
  }
  func.func @transform_8(%arg0: i32) -> (i32, i32) {
    %c0_i32 = arith.constant 0 : i32
    %c0_i32_0 = arith.constant 0 : i32
    %c0_i32_1 = arith.constant 0 : i32
    return %c0_i32, %c0_i32_0 : i32, i32
  }
  func.func @transform_9(%arg0: i32) -> (i32, i32) {
    %c0_i32 = arith.constant 0 : i32
    %c0_i32_0 = arith.constant 0 : i32
    %c0_i32_1 = arith.constant 0 : i32
    return %c0_i32, %c0_i32_0 : i32, i32
  }
  func.func @transform_10(%arg0: i32) -> (i32, i32) {
    %c0_i32 = arith.constant 0 : i32
    %c0_i32_0 = arith.constant 0 : i32
    %c0_i32_1 = arith.constant 0 : i32
    return %c0_i32, %c0_i32_0 : i32, i32
  }
  func.func @transform_11(%arg0: i32) -> (i32, i32) {
    %c0_i32 = arith.constant 0 : i32
    %c0_i32_0 = arith.constant 0 : i32
    %c0_i32_1 = arith.constant 0 : i32
    return %c0_i32, %c0_i32_0 : i32, i32
  }
  func.func @transform_12(%arg0: i32) -> (i32, i32) {
    %c0_i32 = arith.constant 0 : i32
    %c0_i32_0 = arith.constant 0 : i32
    %c0_i32_1 = arith.constant 0 : i32
    return %c0_i32, %c0_i32_0 : i32, i32
  }
  func.func @transform_13(%arg0: i32) -> (i32, i32) {
    %c0_i32 = arith.constant 0 : i32
    %c0_i32_0 = arith.constant 0 : i32
    %c0_i32_1 = arith.constant 0 : i32
    return %c0_i32, %c0_i32_0 : i32, i32
  }
  func.func @transform_14(%arg0: i32) -> (i32, i32) {
    %c0_i32 = arith.constant 0 : i32
    %c0_i32_0 = arith.constant 0 : i32
    %c0_i32_1 = arith.constant 0 : i32
    return %c0_i32, %c0_i32_0 : i32, i32
  }
  func.func @transform_15(%arg0: i32) -> (i32, i32) {
    %c0_i32 = arith.constant 0 : i32
    %c0_i32_0 = arith.constant 0 : i32
    %c0_i32_1 = arith.constant 0 : i32
    return %c0_i32, %c0_i32_0 : i32, i32
  }
  func.func @transform_16(%arg0: i32) -> (i32, i32) {
    %c0_i32 = arith.constant 0 : i32
    %c0_i32_0 = arith.constant 0 : i32
    %c0_i32_1 = arith.constant 0 : i32
    return %c0_i32, %c0_i32_0 : i32, i32
  }
  func.func @transform_17(%arg0: i32) -> (i32, i32) {
    %c0_i32 = arith.constant 0 : i32
    %c0_i32_0 = arith.constant 0 : i32
    %c0_i32_1 = arith.constant 0 : i32
    return %c0_i32, %c0_i32_0 : i32, i32
  }
  func.func @transform_18(%arg0: i32) -> (i32, i32) {
    %c0_i32 = arith.constant 0 : i32
    %c0_i32_0 = arith.constant 0 : i32
    %c0_i32_1 = arith.constant 0 : i32
    return %c0_i32, %c0_i32_0 : i32, i32
  }
  func.func @transform_19(%arg0: i32) -> (i32, i32, i32) {
    %c0_i32 = arith.constant 0 : i32
    %c0_i32_0 = arith.constant 0 : i32
    %c0_i32_1 = arith.constant 0 : i32
    return %arg0, %c0_i32, %c0_i32_0 : i32, i32, i32
  }
}

</mosaic_0001>

<bundles_post_ra>
// kernel: tpu_custom_call.1
= control target key start
LH: loop header
LB: loop body
LE: loop exit
PB: predicated region body
PF: predicated region fallthrough
CT: control target
= control target key end

     0   :  { %s3204_s0 = inlined_call_operand.vmem [shape: f32[2,8,32], index: 0, kind: input, shape index: {}]   ;;  %s3205_s1 = inlined_call_operand.hbm [shape: bf16[2,8,32], index: 1, kind: input, shape index: {}]   ;;  %s3206_s2 = inlined_call_operand.hbm [shape: bf16[2,8,32], index: 2, kind: input, shape index: {}]   ;;  %s3207_s3 = inlined_call_operand.vmem [shape: bf16[32,32], index: 3, kind: input, shape index: {}]   ;;  %s3208_s4 = inlined_call_operand.vmem [shape: f32[1,32], index: 4, kind: input, shape index: {}]   ;;  %s3209_s5 = inlined_call_operand.vmem [shape: bf16[32,32], index: 5, kind: input, shape index: {}]   ;;  %s3210_s6 = inlined_call_operand.hbm [shape: f32[1,32], index: 6, kind: input, shape index: {}]   ;;  %s3211_s7 = inlined_call_operand.hbm [shape: bf16[32,32], index: 7, kind: input, shape index: {}]   ;;  %s3212_s8 = inlined_call_operand.hbm [shape: f32[1,32], index: 8, kind: input, shape index: {}]   ;;  %s3213_s9 = inlined_call_operand.vmem [shape: bf16[32,32], index: 9, kind: input, shape index: {}]   ;;  %s3214_s10 = inlined_call_operand.hbm [shape: f32[1,32], index: 10, kind: input, shape index: {}]   ;;  %s3215_s11 = inlined_call_operand.hbm [shape: f32[1,32], index: 11, kind: input, shape index: {}]   ;;  %s3216_s12 = inlined_call_operand.hbm [shape: f32[1,32], index: 12, kind: input, shape index: {}]   ;;  %s3217_s13 = inlined_call_operand.vmem [shape: bf16[32,64], index: 13, kind: input, shape index: {}]   ;;  %s3218_s14 = inlined_call_operand.vmem [shape: f32[1,64], index: 14, kind: input, shape index: {}]   ;;  %s3219_s15 = inlined_call_operand.vmem [shape: bf16[64,32], index: 15, kind: input, shape index: {}]   ;;  %s3220_s16 = inlined_call_operand.vmem [shape: f32[1,32], index: 16, kind: input, shape index: {}]   ;;  %s3221_s17 = inlined_call_operand.vmem [shape: f32[1,32], index: 17, kind: input, shape index: {}]   ;;  %s3222_s18 = inlined_call_operand.vmem [shape: f32[1,32], index: 18, kind: input, shape index: {}]   ;;  %s3223_s19 = inlined_call_operand.hbm [shape: f32[2,8,32], index: 19, kind: output, shape index: {}]  }
   0x1   :  { %3235 = sst [smem:[#allocation28_spill]] %s3204_s0 }
   0x2   :  { %3236 = sst [smem:[#allocation29_spill]] %s3205_s1 }
   0x3   :  { %3237 = sst [smem:[#allocation30_spill]] %s3206_s2 }
   0x4   :  { %3238 = sst [smem:[#allocation31_spill]] %s3207_s3 }
   0x5   :  { %3239 = sst [smem:[#allocation32_spill]] %s3210_s6 }
   0x6   :  { %3240 = sst [smem:[#allocation33_spill]] %s3211_s7 }
   0x7   :  { %3241 = sst [smem:[#allocation34_spill]] %s3212_s8 }
   0x8   :  { %3242 = sst [smem:[#allocation35_spill]] %s3214_s10 }
   0x9   :  { %3243 = sst [smem:[#allocation36_spill]] %s3215_s11 }
   0xa   :  { %3244 = sst [smem:[#allocation37_spill]] %s3216_s12 }
   0xb   :  { %3245 = sst [smem:[#allocation38_spill]] %s3218_s14 }
   0xc   :  { %3246 = sst [smem:[#allocation39_spill]] %s3220_s16 }
   0xd   :  { %3247 = sst [smem:[#allocation40_spill]] %s3221_s17 }
   0xe   :  { %3248 = sst [smem:[#allocation41_spill]] %s3222_s18 }
   0xf   :  { %3249 = sst [smem:[#allocation42_spill]] %s3223_s19 }
  0x10   :  { %24 = vsyncpa [#allocation4], 0 }
  0x11   :  { %26 = vsyncpa [#allocation4 + $0x1], 0 }
  0x12   :  { %27 = vsyncpa [#allocation7], 0 }
  0x13   :  { %29 = vsyncpa [#allocation7 + $0x1], 0 }
  0x14   :  { %30 = vsyncpa [#allocation10], 0 }
  0x15   :  { %31 = vsyncpa [#allocation13], 0 }
  0x16   :  { %32 = vsyncpa [#allocation16], 0 }
  0x17   :  { %33 = vsyncpa [#allocation5], 0 }
  0x18   :  { %35 = vsyncpa [#allocation5 + $0x1], 0  ;;  %s2681_s0 = smov 0   ;;  %s2683_s30 = smov 0  }
  0x19   :  { %s2685_s20 = smov 0   ;;  %s2687_s21 = smov 0  }
  0x1a LB: > { %3250 = sst [smem:[#allocation25_spill]] %s2556_s20  ;;  %s2562_s1 = smov [#allocation8]   ;;  %s2560_s21 = sphi %s2687_s21, %s3290_s21   ;;  %s2556_s20 = sphi %s2685_s20, %s3292_s20   ;;  %s2552_s30 = sphi %s2683_s30, %s3294_s30   ;;  %s2548_s0 = sphi %s2681_s0, %s3293_s0  }
  0x1b   : > { %s508_s22 = sshll.u32 %s2562_s1, 4  ;;  %s2702_s2 = sadd.s32 4294967295, %s2560_s21   ;;  %s2707_s22 = int_to_ptr.vmem [resolvable:$true] %s508_s22 }
  0x1c   : > { %p1883_p0 = scmp.ge.s32.totalorder %s2560_s21, 1  ;;  %p3228_p1 = scmp.eq.s32.totalorder %s2702_s2, 0 }
  0x1d   : > { %p486_p2 = scmp.lt.s32.totalorder %s2560_s21, 3  ;;  %s2563_s24 = smov [#allocation9]  }
  0x1e   : > { %s518_s25 = sshll.u32 %s2563_s24, 4  ;;  %s2564_s26 = smov [#allocation12]   ;;  %s2716_s25 = int_to_ptr.vmem [resolvable:$true] %s518_s25 }
  0x1f   : > { %p2709_p3 = pnand %p1883_p0, %p486_p2  ;;  %s546_s27 = sshll.u32 %s2564_s26, 4  ;;  %s2724_s27 = int_to_ptr.vmem [resolvable:$true] %s546_s27 }
  0x20   : > { %s3253_s6 = sld [smem:[#allocation32_spill]] }
  0x21   : > { %s3251_s23 = scalar_select %p2709_p3, 1, 0 }
  0x22   : > { %p2120_p5 = pneg %p2709_p3 }
  0x24   : > { %p2720_p6 = pnand %p2120_p5, %p3228_p1 }
  0x26   : > { %s2246_s1 = scalar_lea.hbm %s3253_s6, 16  ;;  %p2734_p8 = pneg %p2720_p6 }
  0x27   : > { %p2247_p7 = scmp.ne.s32.totalorder %s3253_s6, %s2246_s1  ;;  %p2253_p11 = scmp.lt.u32.totalorder %s2246_s1, %s3253_s6 }
  0x29   : > { %p2249_p9 = pnand %p2734_p8, %p2247_p7 }
  0x2b   : > { %p2250_p10 = pneg %p2249_p9 }
  0x2d   : > { %p2255_p12 = pnand %p2253_p11, %p2250_p10 }
  0x2f   : > { %2258 = shalt.err (!%p2255_p12)
}
  0x30   : > { %s2259_s18 = scalar_lea.vmem %s2707_s22, 16  ;;  %s2266_s19 = scalar_lea.vmem %s2707_s22, 32 }
  0x31   : > { %p2260_p13 = scmp.ne.s32.totalorder %s2707_s22, %s2259_s18  ;;  %p2267_p5 = scmp.lt.s32.totalorder %s2707_s22, %s2707_s22 }
  0x32   : > { %p2268_p7 = scmp.lt.s32.totalorder %s2266_s19, %s2259_s18 }
  0x33   : > { %p2262_p0 = pnand %p2260_p13, %p2734_p8 }
  0x34   : > { %p2269_p9 = por %p2268_p7, %p2267_p5 }
  0x35   : > { %p2263_p2 = pneg %p2262_p0 }
  0x37   : > { %p2270_p4 = pnand %p2269_p9, %p2263_p2 }
  0x39   : > { %2273 = shalt.err (!%p2270_p4)
}
  0x3a   : > { %2123 = dma.hbm_to_vmem [thread:$0]  (!%p2720_p6), %s3253_s6, 16, %s2707_s22, [#allocation7]  }
  0x3b   : > { %s3255_s7 = sld [smem:[#allocation33_spill]] }
  0x41   : > { %s2274_s26 = scalar_lea.hbm %s3255_s7, 256 }
  0x42   : > { %p2275_p10 = scmp.ne.s32.totalorder %s3255_s7, %s2274_s26  ;;  %p2281_p4 = scmp.lt.u32.totalorder %s2274_s26, %s3255_s7 }
  0x44   : > { %p2277_p11 = pnand %p2275_p10, %p2734_p8 }
  0x46   : > { %p2278_p12 = pneg %p2277_p11 }
  0x48   : > { %p2283_p13 = pnand %p2281_p4, %p2278_p12 }
  0x4a   : > { %2286 = shalt.err (!%p2283_p13)
}
  0x4b   : > { %s2287_s22 = scalar_lea.vmem %s2716_s25, 256  ;;  %p2295_p7 = scmp.lt.s32.totalorder %s2716_s25, %s2716_s25 }
  0x4c   : > { %p2288_p0 = scmp.ne.s32.totalorder %s2716_s25, %s2287_s22  ;;  %p2296_p9 = scmp.lt.s32.totalorder %s2287_s22, %s2287_s22 }
  0x4e   : > { %p2290_p2 = pnand %p2288_p0, %p2734_p8  ;;  %p2297_p10 = por %p2296_p9, %p2295_p7 }
  0x50   : > { %p2291_p5 = pneg %p2290_p2 }
  0x52   : > { %p2298_p11 = pnand %p2297_p10, %p2291_p5 }
  0x54   : > { %2301 = shalt.err (!%p2298_p11)
}
  0x55   : > { %s2565_s14 = smov 64   ;;  %s2566_s16 = smov 4  }
  0x56   : > { %2126 = dma.hbm_to_vmem [thread:$0]  (!%p2720_p6), %s3255_s7, 256, %s2716_s25, [#allocation10], %s2565_s14, %s2565_s14, %s2566_s16  }
  0x57   : > { %s3256_s10 = sld [smem:[#allocation35_spill]] }
  0x5d   : > { %s2302_s26 = scalar_lea.hbm %s3256_s10, 16 }
  0x5e   : > { %p2303_p12 = scmp.ne.s32.totalorder %s3256_s10, %s2302_s26  ;;  %p2309_p0 = scmp.lt.u32.totalorder %s2302_s26, %s3256_s10 }
  0x60   : > { %p2305_p4 = pnand %p2303_p12, %p2734_p8 }
  0x62   : > { %p2306_p13 = pneg %p2305_p4 }
  0x64   : > { %p2311_p2 = pnand %p2309_p0, %p2306_p13 }
  0x66   : > { %2314 = shalt.err (!%p2311_p2)
}
  0x67   : > { %s2315_s25 = scalar_lea.vmem %s2724_s27, 16  ;;  %s2322_s14 = scalar_lea.vmem %s2724_s27, 32 }
  0x68   : > { %p2316_p5 = scmp.ne.s32.totalorder %s2724_s27, %s2315_s25  ;;  %p2323_p10 = scmp.lt.s32.totalorder %s2724_s27, %s2724_s27 }
  0x69   : > { %p2324_p11 = scmp.lt.s32.totalorder %s2322_s14, %s2315_s25 }
  0x6a   : > { %p2318_p7 = pnand %p2316_p5, %p2734_p8 }
  0x6b   : > { %p2325_p12 = por %p2324_p11, %p2323_p10 }
  0x6c   : > { %p2319_p9 = pneg %p2318_p7 }
  0x6e   : > { %p2326_p4 = pnand %p2325_p12, %p2319_p9 }
  0x70   : > { %2329 = shalt.err (!%p2326_p4)
}
  0x71   : > { %2132 = dma.hbm_to_vmem [thread:$0]  (!%p2720_p6), %s3256_s10, 16, %s2724_s27, [#allocation13]  }
  0x72   : > { %s2567_s17 = smov [#allocation11]   ;;  %s2568_s29 = smov [#allocation14]  }
  0x73   : > { %s532_s28 = sshll.u32 %s2567_s17, 4  ;;  %s557_s1 = sshll.u32 %s2568_s29, 4  ;;  %s533_s28 = int_to_ptr.vmem [resolvable:$true] %s532_s28  ;;  %s558_s1 = int_to_ptr.vmem [resolvable:$true] %s557_s1 }
  0x74   : > { %s3257_s8 = sld [smem:[#allocation34_spill]] }
  0x7a   : > { %s2330_s19 = scalar_lea.hbm %s3257_s8, 16 }
  0x7b   : > { %p2331_p13 = scmp.ne.s32.totalorder %s3257_s8, %s2330_s19  ;;  %p2337_p5 = scmp.lt.u32.totalorder %s2330_s19, %s3257_s8 }
  0x7d   : > { %p2333_p0 = pnand %p2331_p13, %p2734_p8 }
  0x7f   : > { %p2334_p2 = pneg %p2333_p0 }
  0x81   : > { %p2339_p7 = pnand %p2337_p5, %p2334_p2 }
  0x83   : > { %2342 = shalt.err (!%p2339_p7)
}
  0x84   : > { %s2343_s27 = scalar_lea.vmem %s533_s28, 16  ;;  %s2350_s16 = scalar_lea.vmem %s533_s28, 32 }
  0x85   : > { %p2344_p9 = scmp.ne.s32.totalorder %s533_s28, %s2343_s27  ;;  %p2351_p12 = scmp.lt.s32.totalorder %s533_s28, %s533_s28 }
  0x86   : > { %p2352_p4 = scmp.lt.s32.totalorder %s2350_s16, %s2343_s27 }
  0x87   : > { %p2346_p10 = pnand %p2344_p9, %p2734_p8 }
  0x88   : > { %p2353_p1 = por %p2352_p4, %p2351_p12 }
  0x89   : > { %p2347_p11 = pneg %p2346_p10 }
  0x8b   : > { %p2354_p3 = pnand %p2353_p1, %p2347_p11 }
  0x8d   : > { %2357 = shalt.err (!%p2354_p3)
}
  0x8e   : > { %2129 = dma.hbm_to_vmem [thread:$0]  (!%p2720_p6), %s3257_s8, 16, %s533_s28, [#allocation10]  }
  0x8f   : > { %s3258_s11 = sld [smem:[#allocation36_spill]] }
  0x95   : > { %s2358_s19 = scalar_lea.hbm %s3258_s11, 16 }
  0x96   : > { %p2359_p13 = scmp.ne.s32.totalorder %s3258_s11, %s2358_s19  ;;  %p2365_p3 = scmp.lt.u32.totalorder %s2358_s19, %s3258_s11 }
  0x98   : > { %p2361_p0 = pnand %p2359_p13, %p2734_p8 }
  0x9a   : > { %p2362_p1 = pneg %p2361_p0 }
  0x9c   : > { %p2367_p2 = pnand %p2365_p3, %p2362_p1 }
  0x9e   : > { %2370 = shalt.err (!%p2367_p2)
}
  0x9f   : > { %s2371_s27 = scalar_lea.vmem %s558_s1, 16  ;;  %s2378_s28 = scalar_lea.vmem %s558_s1, 32 }
  0xa0   : > { %p2372_p5 = scmp.ne.s32.totalorder %s558_s1, %s2371_s27  ;;  %p2379_p10 = scmp.lt.s32.totalorder %s558_s1, %s558_s1 }
  0xa1   : > { %p2380_p11 = scmp.lt.s32.totalorder %s2378_s28, %s2371_s27 }
  0xa2   : > { %p2374_p7 = pnand %p2372_p5, %p2734_p8 }
  0xa3   : > { %p2381_p12 = por %p2380_p11, %p2379_p10 }
  0xa4   : > { %p2375_p9 = pneg %p2374_p7 }
  0xa6   : > { %p2382_p4 = pnand %p2381_p12, %p2375_p9 }
  0xa8   : > { %2385 = shalt.err (!%p2382_p4)
}
  0xa9   : > { %2135 = dma.hbm_to_vmem [thread:$0]  (!%p2720_p6), %s3258_s11, 16, %s558_s1, [#allocation13]  }
  0xaa   : > { %s2569_s29 = smov [#allocation15]   ;;  %s3259_s12 = sld [smem:[#allocation37_spill]] }
  0xab   : > { %s568_s26 = sshll.u32 %s2569_s29, 4  ;;  %s569_s26 = int_to_ptr.vmem [resolvable:$true] %s568_s26 }
  0xb0   : > { %s2386_s22 = scalar_lea.hbm %s3259_s12, 16 }
  0xb1   : > { %p2387_p13 = scmp.ne.s32.totalorder %s3259_s12, %s2386_s22  ;;  %p2393_p3 = scmp.lt.u32.totalorder %s2386_s22, %s3259_s12 }
  0xb3   : > { %p2389_p0 = pnand %p2387_p13, %p2734_p8 }
  0xb5   : > { %p2390_p1 = pneg %p2389_p0 }
  0xb7   : > { %p2395_p2 = pnand %p2393_p3, %p2390_p1 }
  0xb9   : > { %2398 = shalt.err (!%p2395_p2)
}
  0xba   : > { %s2399_s1 = scalar_lea.vmem %s569_s26, 16  ;;  %s2406_s28 = scalar_lea.vmem %s569_s26, 32 }
  0xbb   : > { %p2400_p5 = scmp.ne.s32.totalorder %s569_s26, %s2399_s1  ;;  %p2407_p10 = scmp.lt.s32.totalorder %s569_s26, %s569_s26 }
  0xbc   : > { %p2408_p11 = scmp.lt.s32.totalorder %s2406_s28, %s2399_s1 }
  0xbd   : > { %p2402_p7 = pnand %p2400_p5, %p2734_p8 }
  0xbe   : > { %p2409_p12 = por %p2408_p11, %p2407_p10 }
  0xbf   : > { %p2403_p9 = pneg %p2402_p7 }
  0xc1   : > { %p2410_p4 = pnand %p2409_p12, %p2403_p9 }
  0xc3   : > { %2413 = shalt.err (!%p2410_p4)
}
  0xc4   : > { %2138 = dma.hbm_to_vmem [thread:$0]  (!%p2720_p6), %s3259_s12, 16, %s569_s26, [#allocation16]  }
  0xc5   : > { %s1882_s24 = sadd.s32 4294967294, %s2560_s21   ;;  %s2859_s3 = sadd.s32 1, %s2560_s21  }
  0xc6   : > { %3260 = sst [smem:[#allocation26_spill]] %s2859_s3  ;;  %s71_s29 = ssub.s32 %s2560_s21, %s2859_s3 }
  0xc7   : > { %s74_s18 = sadd.s32 1, %s2556_s20  ;;  %p72_p8 = scmp.eq.s32.totalorder %s71_s29, 0 }
  0xc8   : > { %p81_p13 = scmp.ne.s32.totalorder %s2556_s20, %s2552_s30  ;;  %p82_p0 = scmp.eq.s32.totalorder %s2560_s21, 0 }
  0xc9   : > { %p87_p1 = scmp.ne.s32.totalorder %s2552_s30, %s2548_s0  ;;  %p3263_p2 = scmp.eq.s32.totalorder %s2702_s2, 0 }
  0xca   : > { %s2870_s19 = scalar_select %p72_p8, %s2556_s20, %s74_s18  }
  0xcb   : > { %p2872_p3 = por %p82_p0, %p81_p13  ;;  %p2878_p6 = por %p3263_p2, %p87_p1 }
  0xcc   : > { %3261 = sst [smem:[#allocation27_spill]] %s2870_s19  ;;  %p473_p5 = scmp.eq.s32.totalorder %s2702_s2, 1 }
  0xcd   : > { %s3264_s26 = scalar_select %p2878_p6, 1, 0 }
  0xce   : > { %p479_p7 = scmp.eq.s32.totalorder %s1882_s24, 1  ;;  %p2156_p9 = scmp.lt.s32.totalorder %s2560_s21, 2 }
  0xcf   : > { %s604_s25 = sand.u32 1, %s2556_s20   ;;  %p2885_p10 = por %p473_p5, %p81_p13 }
  0xd0   : > { %p2889_p11 = por %p479_p7, %p87_p1  ;;  %s2893_s27 = sshll.u32 %s604_s25, 2 }
  0xd1   : > { %s3265_s14 = scalar_select %p2885_p10, 1, 0 }
  0xd2   : > { %s3266_s6 = scalar_select %p2889_p11, 1, 0 }
  0xd3   : > { %s1892_s1 = sshll.u32 %s2560_s21, 6  ;;  %s3267_s17 = sld [smem:[#allocation29_spill]] }
  0xd4   : > { %s608_s24 = scalar_lea.vmem [#allocation3], %s2893_s27  ;;  %p2906_p12 = pnand %p2156_p9, %p2872_p3 }
  0xd5   : > { %s615_s18 = sshll.u32 %s608_s24, 4  ;;  %s3269_s11 = sld [smem:[#allocation30_spill]]  ;;  %s2902_s18 = int_to_ptr.vmem [resolvable:$true] %s615_s18 }
  0xd6   : > { %s622_s16 = sand.u32 1, %s2560_s21   ;;  %s605_s12 = scalar_lea.sflag [#allocation4], %s604_s25 }
  0xd7   : > { %p2416_p8 = pneg %p2906_p12 }
  0xd9   : > { %s2899_s29 = scalar_lea.hbm %s3267_s17, %s1892_s1  ;;  %s2419_s20 = scalar_lea.hbm %s3267_s17, 128 }
  0xda   : > { %s2414_s19 = scalar_lea.hbm %s2899_s29, 64  ;;  %p2420_p1 = scmp.lt.u32.totalorder %s2899_s29, %s3267_s17 }
  0xdb   : > { %s2913_s28 = scalar_lea.hbm %s3269_s11, %s1892_s1  ;;  %p2415_p4 = scmp.ne.s32.totalorder %s2899_s29, %s2414_s19 }
  0xdc   : > { %p2421_p3 = scmp.lt.u32.totalorder %s2419_s20, %s2414_s19  ;;  %p2423_p5 = scmp.lt.u32.totalorder %s2414_s19, %s2899_s29 }
  0xdd   : > { %p2417_p13 = pnand %p2416_p8, %p2415_p4 }
  0xde   : > { %p2422_p2 = por %p2421_p3, %p2420_p1 }
  0xdf   : > { %p2418_p0 = pneg %p2417_p13 }
  0xe0   : > { %p2424_p7 = por %p2423_p5, %p2422_p2 }
  0xe2   : > { %p2425_p9 = pnand %p2424_p7, %p2418_p0 }
  0xe4   : > { %2428 = shalt.err (!%p2425_p9)
}
  0xe5   : > { %s2429_s10 = scalar_lea.vmem %s2902_s18, 64  ;;  %s2570_s25 = smov [#allocation3]  }
  0xe6   : > { %p2430_p4 = scmp.ne.s32.totalorder %s2902_s18, %s2429_s10  ;;  %s2434_s1 = sshll.u32 %s2570_s25, 4  ;;  %s2435_s1 = int_to_ptr.vmem [resolvable:$false] %s2434_s1 }
  0xe7   : > { %s2436_s3 = scalar_lea.vmem %s2435_s1, 128  ;;  %p2437_p10 = scmp.lt.s32.totalorder %s2902_s18, %s2435_s1 }
  0xe8   : > { %p2432_p13 = pnand %p2430_p4, %p2416_p8  ;;  %p2438_p1 = scmp.lt.s32.totalorder %s2436_s3, %s2429_s10 }
  0xea   : > { %p2433_p11 = pneg %p2432_p13  ;;  %p2439_p3 = por %p2438_p1, %p2437_p10 }
  0xec   : > { %p2440_p2 = pnand %p2439_p3, %p2433_p11 }
  0xee   : > { %2443 = shalt.err (!%p2440_p2)
}
  0xef   : > { %2142 = dma.hbm_to_vmem [thread:$0]  (!%p2906_p12), %s2899_s29, 64, %s2902_s18, %s605_s12  }
  0xf0   : > { %s626_s20 = scalar_lea.vmem [#allocation6], %s2893_s27  ;;  %s623_s22 = scalar_lea.sflag [#allocation7], %s622_s16 }
  0xf1   : > { %s633_s19 = sshll.u32 %s626_s20, 4  ;;  %s2444_s24 = scalar_lea.hbm %s2913_s28, 64  ;;  %s634_s19 = int_to_ptr.vmem [resolvable:$true] %s633_s19 }
  0xf2   : > { %p2445_p10 = scmp.ne.s32.totalorder %s2913_s28, %s2444_s24  ;;  %s2449_s25 = scalar_lea.hbm %s3269_s11, 128 }
  0xf3   : > { %p2450_p5 = scmp.lt.u32.totalorder %s2913_s28, %s3269_s11  ;;  %p2451_p7 = scmp.lt.u32.totalorder %s2449_s25, %s2444_s24 }
  0xf4   : > { %p2447_p11 = pnand %p2445_p10, %p2416_p8  ;;  %p2453_p4 = scmp.lt.u32.totalorder %s2444_s24, %s2913_s28 }
  0xf5   : > { %p2452_p9 = por %p2451_p7, %p2450_p5 }
  0xf6   : > { %p2448_p0 = pneg %p2447_p11 }
  0xf7   : > { %p2454_p13 = por %p2453_p4, %p2452_p9 }
  0xf9   : > { %p2455_p1 = pnand %p2454_p13, %p2448_p0 }
  0xfb   : > { %2458 = shalt.err (!%p2455_p1)
}
  0xfc   : > { %s2459_s12 = scalar_lea.vmem %s634_s19, 64  ;;  %s2571_s27 = smov [#allocation6]  }
  0xfd   : > { %p2460_p3 = scmp.ne.s32.totalorder %s634_s19, %s2459_s12  ;;  %s2464_s29 = sshll.u32 %s2571_s27, 4  ;;  %s2465_s29 = int_to_ptr.vmem [resolvable:$false] %s2464_s29 }
  0xfe   : > { %s2466_s18 = scalar_lea.vmem %s2465_s29, 128  ;;  %p2467_p11 = scmp.lt.s32.totalorder %s634_s19, %s2465_s29 }
  0xff   : > { %p2462_p2 = pnand %p2460_p3, %p2416_p8  ;;  %p2468_p6 = scmp.lt.s32.totalorder %s2466_s18, %s2459_s12 }
 0x101   : > { %p2463_p10 = pneg %p2462_p2  ;;  %p2469_p5 = por %p2468_p6, %p2467_p11 }
 0x103   : > { %p2470_p7 = pnand %p2469_p5, %p2463_p10 }
 0x105   : > { %2473 = shalt.err (!%p2470_p7)
}
 0x106   : > { %2145 = dma.hbm_to_vmem [thread:$0]  (!%p2906_p12), %s2913_s28, 64, %s634_s19, %s623_s22  }
 0x107   : > { %p3270_p0 = scmp.ne.s32.totalorder %s3251_s23, 0 }
 0x108   : > { %s2966_s16 = sand.u32 (!%p3270_p0), 1, %s2552_s30   ;;  %p3271_p6 = scmp.ne.s32.totalorder (!%p3270_p0), %s3264_s26, 0 }
 0x109   : > { %642 = sbr.rel (%p3270_p0) target bundleno = 2812 (0xafc), region = 96  ;;  %s1896_s20 = sshll.u32 (!%p3270_p0), %s2966_s16, 2 }
 0x10a   : > { %s645_s24 = scalar_lea.sflag (!%p3270_p0), [#allocation4], %s2966_s16  ;;  %s2970_s8 = scalar_lea.vmem (!%p3270_p0), [#allocation3], %s1896_s20 }
 0x110   : > { %2519 = dma.done.wait (%p3271_p6), %s645_s24, 64  }
 0x111   : > { %2521 = vsyncadd (%p3271_p6), %s645_s24, 4294967232  ;;  %s653_s7 = sand.u32 1, %s2702_s2   ;;  %s2977_s28 = scalar_lea.vmem [#allocation6], %s1896_s20 }
 0x112   : > { %s654_s23 = scalar_lea.sflag [#allocation7], %s653_s7 }
 0x113   : > { %2523 = dma.done.wait (%p3271_p6), %s654_s23, 64  }
 0x114   : > { %2525 = vsyncadd (%p3271_p6), %s654_s23, 4294967232  ;;  %p3272_p12 = scmp.eq.s32.totalorder %s2702_s2, 0 }
 0x116   : > { %2527 = dma.done.wait (%p3272_p12), [#allocation7], 16   ;;  %p3273_p8 = pmov %p3272_p12 }
 0x118   : > { %2529 = vsyncadd (%p3273_p8), [#allocation7], 4294967280  ;;  %p3274_p9 = pmov %p3273_p8 }
 0x119   : > { %p3275_p4 = pmov %p3273_p8 }
 0x11a   : > { %2531 = dma.done.wait (%p3274_p9), [#allocation10], 272  }
 0x11b   : > { %2533 = vsyncadd (%p3275_p4), [#allocation10], 4294967024  ;;  %p3276_p13 = pmov %p3275_p4 }
 0x11c   : > { %p3277_p1 = pmov %p3275_p4 }
 0x11d   : > { %2535 = dma.done.wait (%p3276_p13), [#allocation13], 32  }
 0x11e   : > { %2537 = vsyncadd (%p3277_p1), [#allocation13], 4294967264  ;;  %p3278_p3 = pmov %p3277_p1 }
 0x11f   : > { %p3279_p2 = pmov %p3277_p1 }
 0x120   : > { %2539 = dma.done.wait (%p3278_p3), [#allocation16], 16  }
 0x121   : > { %2541 = vsyncadd (%p3279_p2), [#allocation16], 4294967280  ;;  %p745_p10 = scmp.lt.s32.totalorder %s2702_s2, 1  ;;  %v2572_v0 = vmov 0.0   ;;  %vm2573_vm0 = vmmov 0   ;;  %v2212_v1 = vld [vmem:[%s3209_s5] sm:$0xff]  }
 0x122   : > { %1998 = vmatprep.subr.bf16.mxu1 %v2572_v0  ;;  %1990 = vmatprep.subr.bf16.mxu0 %v2572_v0  ;;  %s3280_s3 = sld [smem:[#allocation31_spill]]  ;;  %s3281_s29 = sld [smem:[#allocation28_spill]]  ;;  %v2214_v3 = vld [vmem:[%s3209_s5 + $0x8] sm:$0xff]   ;;  %vm777_vm1 = vcmask 261120   ;;  %v1910_v8 = vld [vmem:[#allocation8] ss:$0 sm:$0xff] }
 0x123   : > { %2002 = vmatprep.mubr.msk.bf16.mxu1 %vm2573_vm0, %v2572_v0  ;;  %1994 = vmatprep.mubr.msk.bf16.mxu0 %vm2573_vm0, %v2572_v0  ;;  %s746_s26 = scalar_select %p745_p10, %s2702_s2, 1  ;;  %v751_v4 = vld [vmem:[%s2970_s8] sm:$0xf]  ;;  %v1906_v9 = vld [vmem:[%s3208_s4] ss:$0 sm:$0xff]  ;;  %vm956_vm2 = vcmask 64512  }
 0x124   : > { %1999 = vmatpush3.bf16.msra.mxu1 %v2212_v1  ;;  %s2575_s22 = smov 120   ;;  %s2576_s10 = smov 104   ;;  %v2216_v23 = vld [vmem:[#allocation9] sm:$0xff]   ;;  %v2217_v24 = vld [vmem:[#allocation9 + $0x8] sm:$0xff]   ;;  %v752_v25 = vld [vmem:[%s2977_s28] sm:$0xf] }
 0x125   : > { %s1905_s19 = sshll.u32 %s746_s26, 3  ;;  %2000 = vmatprep.subr.bf16.mxu1 %v2572_v0  ;;  %v1914_v40 = vld [vmem:[#allocation11] ss:$0 sm:$0xff]  ;;  %vm1018_vm3 = vcmask 1043456   ;;  %vm1063_vm4 = vcmask 60416   ;;  %s2577_s28 = smov 8  }
 0x126   : > { %vm1185_vm5 = vcmask 126016   ;;  %vm1304_vm6 = vcmask 191616   ;;  %vm1423_vm7 = vcmask 257216   ;;  %vm1631_vm8 = vcmask 523264   ;;  %s3283_s24 = sld [smem:[#allocation39_spill]]  ;;  %s1904_s7 = sshll.u32 %s2966_s16, 3 }
 0x127   : > { %s3284_s26 = sld [smem:[#allocation40_spill]]  ;;  %s744_s25 = scalar_lea.vmem [#allocation17], %s1904_s7 }
 0x128   : > { %v2213_v2 = vld [vmem:[%s3280_s3] sm:$0xff]   ;;  %s748_s18 = scalar_lea.vmem %s3281_s29, %s1905_s19  ;;  %v2215_v5 = vld [vmem:[%s3280_s3 + $0x8] sm:$0xff]   ;;  %2001 = vmatpush3.bf16.msra.mxu1 %v2214_v3  ;;  %s2574_s19 = smov 112  }
 0x129   : > { %1991 = vmatpush3.bf16.msra.mxu0 %v2213_v2  ;;  %v3025_v6 = vld [vmem:[%s748_s18] sm:$0xff]  ;;  %2014 = vmatprep.subr.bf16.mxu1 %v2572_v0  ;;  %s2578_s29 = smov 16   ;;  %s2579_s18 = smov 24  }
 0x12a   : > { %1992 = vmatprep.subr.bf16.mxu0 %v2572_v0  ;;  %v753_v7 = vpack.c.bf16 %v3025_v6, %v3025_v6  ;;  %s1720_s1 = sshll.u32 %s744_s25, 4  ;;  %s1707_s20 = scalar_lea.sflag [#allocation5], %s2966_s16  ;;  %s3161_s1 = int_to_ptr.vmem [resolvable:$true] %s1720_s1 }
 0x12b   : > { %2003 = vmatmul.mubr.msk.bf16.vlgmr.msra.gmra.mrb[0].mxu1 %vm777_vm1, %v751_v4  ;;  %p3287_p5 = scmp.ne.s32.totalorder %s3265_s14, 0 }
 0x12c   : > { %2016 = vmatprep.mubr.msk.bf16.mxu1 %vm2573_vm0, %v2572_v0 }
 0x12d   : > { %1993 = vmatpush3.bf16.msra.mxu0 %v2215_v5 }
 0x12e   : > { %2006 = vmatprep.subr.bf16.mxu0 %v2572_v0 }
 0x130   : > { %1995 = vmatmul.mubr.msk.bf16.vlgmr.msra.gmra.mrb[0].mxu0 %vm777_vm1, %v753_v7 }
 0x131   : > { %2010 = vmatprep.mubr.msk.bf16.mxu0 %vm2573_vm0, %v2572_v0  ;;  %2007 = vmatpush3.bf16.msra.mxu0 %v2216_v23 }
 0x132   : > { %2008 = vmatprep.subr.bf16.mxu0 %v2572_v0 }
 0x135   : > { %2009 = vmatpush3.bf16.msra.mxu0 %v2217_v24 }
 0x136   : > { %2020 = vmatprep.subr.bf16.mxu0 %v2572_v0 }
 0x138   : > { %2011 = vmatmul.mubr.msk.bf16.vlgmr.msra.gmra.mrb[4].mxu0 %vm777_vm1, %v752_v25 }
 0x139   : > { %2022 = vmatprep.mubr.msk.bf16.mxu0 %vm2573_vm0, %v2572_v0 }
 0x1fe   : > { %v881_v10 = vpop.f32.mrb[0].mxu1 }
 0x1ff   : > { %v882_v11 = vadd.f32 %v1910_v8, %v881_v10  ;;  %v2004_v12 = vpop.f32.mrb[1].mxu1 }
 0x200   : > { %v884_v14 = vpop.f32.mrb[2].mxu1 }
 0x201   : > { %v954_v17 = vpack.c.bf16 %v882_v11, %v882_v11  ;;  %v2005_v18 = vpop.f32.mrb[3].mxu1 }
 0x203   : > { %v815_v13 = vpop.f32.mrb[0].mxu0  ;;  %1189 = vrot.lane.b32.xlu1 %v954_v17, %s2574_s19  ;;  %1069 = vrot.lane.b32.xlu0 %v954_v17, %s2575_s22  ;;  %v961_v22 = vsel %vm956_vm2, %v954_v17, 0 }
 0x204   : > { %v816_v15 = vadd.f32 %v1906_v9, %v815_v13  ;;  %v1996_v16 = vpop.f32.mrb[1].mxu0  ;;  %2015 = vmatpush3.bf16.xpose.msra.mxu1 %v961_v22 }
 0x205   : > { %v818_v19 = vpop.f32.mrb[2].mxu0  ;;  %2026 = vmatprep.subr.bf16.mxu1 %v2572_v0 }
 0x206   : > { %v1997_v20 = vpop.f32.mrb[3].mxu0  ;;  %v953_v21 = vpack.c.bf16 %v816_v15, %v816_v15 }
 0x208   : > { %1187 = vrot.lane.b32.xlu1 %v953_v21, %s2574_s19  ;;  %1066 = vrot.lane.b32.xlu0 %v953_v21, %s2575_s22 }
 0x20b   : > { %2017 = vmatmul.mubr.msk.bf16.vlgmr.msra.gmra.mrb[4].mxu1 %vm956_vm2, %v953_v21  ;;  %v947_v41 = vpop.f32.mrb[4].mxu0 }
 0x20c   : > { %1306 = vrot.lane.b32.xlu1 %v953_v21, %s2576_s10  ;;  %1308 = vrot.lane.b32.xlu0 %v954_v17, %s2576_s10  ;;  %v948_v42 = vadd.f32 %v1914_v40, %v947_v41  ;;  %v2012_v43 = vpop.f32.mrb[5].mxu0 }
 0x20d   : > { %2028 = vmatprep.mubr.msk.bf16.mxu1 %vm2573_vm0, %v2572_v0  ;;  %v950_v44 = vpop.f32.mrb[6].mxu0 }
 0x20e   : > { %v955_v45 = vpack.c.bf16 %v948_v42, %v948_v42  ;;  %v2013_v46 = vpop.f32.mrb[7].mxu0 }
 0x210   : > { %v1020_v47 = vsel %vm1018_vm3, %v955_v45, 0 }
 0x211   : > { %2021 = vmatpush3.bf16.msra.mxu0 %v1020_v47 }
 0x212   : > { %2032 = vmatprep.subr.bf16.mxu0 %v2572_v0 }
 0x275   : > { %v1070_v26 = vpop.permute.xlu0 %1069  ;;  %v1190_v28 = vpop.permute.xlu1 %1189 }
 0x276   : > { %v1075_v27 = vsel %vm956_vm2, %v1070_v26, 0  ;;  %v1195_v30 = vsel %vm956_vm2, %v1190_v28, 0 }
 0x277   : > { %2027 = vmatpush3.bf16.xpose.msra.mxu1 %v1075_v27 }
 0x278   : > { %2038 = vmatprep.subr.bf16.mxu1 %v2572_v0 }
 0x27a   : > { %v1067_v29 = vpop.permute.xlu0 %1066  ;;  %v1188_v32 = vpop.permute.xlu1 %1187 }
 0x27e   : > { %2029 = vmatmul.mubr.msk.bf16.vlgmr.msra.gmra.mrb[8].mxu1 %vm956_vm2, %v1067_v29  ;;  %v1309_v31 = vpop.permute.xlu0 %1308  ;;  %v1307_v34 = vpop.permute.xlu1 %1306 }
 0x27f   : > { %2039 = vmatpush3.bf16.xpose.msra.mxu1 %v1195_v30  ;;  %2040 = vmatprep.mubr.msk.bf16.mxu1 %vm2573_vm0, %v2572_v0  ;;  %v1314_v33 = vsel %vm956_vm2, %v1309_v31, 0 }
 0x280   : > { %2050 = vmatprep.subr.bf16.mxu1 %v2572_v0 }
 0x286   : > { %2041 = vmatmul.mubr.msk.bf16.vlgmr.msra.gmra.mrb[12].mxu1 %vm956_vm2, %v1188_v32 }
 0x287   : > { %2051 = vmatpush3.bf16.xpose.msra.mxu1 %v1314_v33  ;;  %2052 = vmatprep.mubr.msk.bf16.mxu1 %vm2573_vm0, %v2572_v0 }
 0x288   : > { %2062 = vmatprep.subr.bf16.mxu1 %v2572_v0 }
 0x28e   : > { %2053 = vmatmul.mubr.msk.bf16.vlgmr.msra.gmra.mrb[16].mxu1 %vm956_vm2, %v1307_v34 }
 0x28f   : > { %2066 = vmatprep.mubr.msk.bf16.mxu1 %vm2573_vm0, %v2572_v0 }
 0x2de   : > { %v997_v35 = vpop.f32.mrb[4].mxu1 }
 0x2df   : > { %v2018_v36 = vpop.f32.mrb[5].mxu1  ;;  %v1003_v37 = vsel %vm956_vm2, %v997_v35, -inf }
 0x2e0   : > { %1004 = vmax.xlane.f32.xlu0 %v1003_v37  ;;  %v1000_v38 = vpop.f32.mrb[6].mxu1 }
 0x2e1   : > { %v2019_v39 = vpop.f32.mrb[7].mxu1 }
 0x351   : > { %v1111_v48 = vpop.f32.mrb[8].mxu1 }
 0x352   : > { %v2030_v49 = vpop.f32.mrb[9].mxu1  ;;  %v1117_v50 = vsel %vm956_vm2, %v1111_v48, -inf }
 0x353   : > { %1118 = vmax.xlane.f32.xlu1 %v1117_v50  ;;  %v1114_v51 = vpop.f32.mrb[10].mxu1 }
 0x354   : > { %v2031_v52 = vpop.f32.mrb[11].mxu1 }
 0x359   : > { %v1231_v53 = vpop.f32.mrb[12].mxu1 }
 0x35a   : > { %v2042_v54 = vpop.f32.mrb[13].mxu1  ;;  %v1237_v55 = vsel %vm956_vm2, %v1231_v53, -inf }
 0x35b   : > { %1238 = vmax.xlane.f32.xlu0 %v1237_v55  ;;  %v1234_v56 = vpop.f32.mrb[14].mxu1  ;;  %v2219_v55 = vld [vmem:[%s3213_s9 + $0x8] sm:$0xff]  }
 0x35c   : > { %v2043_v57 = vpop.f32.mrb[15].mxu1 }
 0x361   : > { %v1350_v58 = vpop.f32.mrb[16].mxu1 }
 0x362   : > { %v2054_v59 = vpop.f32.mrb[17].mxu1  ;;  %v1356_v60 = vsel %vm956_vm2, %v1350_v58, -inf }
 0x363   : > { %1357 = vmax.xlane.f32.xlu0 %v1356_v60  ;;  %v1353_v61 = vpop.f32.mrb[18].mxu1 }
 0x364   : > { %v2055_v62 = vpop.f32.mrb[19].mxu1 }
 0x36d   : > { %v1005_v63 = vpop.xlane.xlu0 %1004 }
 0x36e   : > { %v1006_v1 = vsub.f32 %v997_v35, %v1005_v63 }
 0x370   : > { %v1007_v2 = vmul.f32 1.442695, %v1006_v1 }
 0x372   : > { %2226 = vpow2.f32 %v1007_v2 }
 0x37c   : > { %v2227_v3 = vpop.eup %2226 }
 0x37d   : > { %v1009_v4 = vsel %vm956_vm2, %v2227_v3, 0.0 }
 0x37e   : > { %1010 = vadd.xlane.f32.xlu1 %v1009_v4 }
 0x38f   : > { %1130 = vrot.lane.b32.xlu1 %v955_v45, %s2575_s22 }
 0x3e0   : > { %v1119_v5 = vpop.xlane.xlu1 %1118 }
 0x3e1   : > { %v1120_v7 = vsub.f32 %v1111_v48, %v1119_v5 }
 0x3e3   : > { %v1121_v8 = vmul.f32 1.442695, %v1120_v7  ;;  %v1929_v7 = vld [vmem:[#allocation12] ss:$0 sm:$0xff] }
 0x3e5   : > { %2228 = vpow2.f32 %v1121_v8 }
 0x3e8   : > { %v1239_v9 = vpop.xlane.xlu0 %1238 }
 0x3e9   : > { %v1240_v10 = vsub.f32 %v1231_v53, %v1239_v9  ;;  %v2218_v53 = vld [vmem:[%s3213_s9] sm:$0xff]  }
 0x3ea   : > { %2063 = vmatpush3.bf16.msra.mxu1 %v2218_v53 }
 0x3eb   : > { %v1241_v11 = vmul.f32 1.442695, %v1240_v10  ;;  %2064 = vmatprep.subr.bf16.mxu1 %v2572_v0 }
 0x3ed   : > { %2230 = vpow2.f32 %v1241_v11 }
 0x3ee   : > { %2065 = vmatpush3.bf16.msra.mxu1 %v2219_v55 }
 0x3ef   : > { %v2229_v12 = vpop.eup %2228  ;;  %2078 = vmatprep.subr.bf16.mxu1 %v2572_v0 }
 0x3f0   : > { %v1358_v13 = vpop.xlane.xlu0 %1357  ;;  %v1123_v14 = vsel %vm956_vm2, %v2229_v12, 0.0 }
 0x3f1   : > { %v1359_v15 = vsub.f32 %v1350_v58, %v1358_v13  ;;  %1124 = vadd.xlane.f32.xlu0 %v1123_v14 }
 0x3f3   : > { %v1360_v16 = vmul.f32 1.442695, %v1359_v15 }
 0x3f5   : > { %2232 = vpow2.f32 %v1360_v16 }
 0x3f7   : > { %v2231_v17 = vpop.eup %2230 }
 0x3f8   : > { %v1243_v18 = vsel %vm956_vm2, %v2231_v17, 0.0 }
 0x3f9   : > { %1244 = vadd.xlane.f32.xlu1 %v1243_v18 }
 0x3ff   : > { %v2233_v19 = vpop.eup %2232 }
 0x400   : > { %v1362_v20 = vsel %vm956_vm2, %v2233_v19, 0.0 }
 0x401   : > { %1363 = vadd.xlane.f32.xlu0 %v1362_v20  ;;  %v2220_v20 = vld [vmem:[%s3217_s13] sm:$0xff]  }
 0x40a   : > { %1368 = vrot.lane.b32.xlu1 %v955_v45, %s2576_s10  ;;  %s3285_s10 = sld [smem:[#allocation41_spill]] }
 0x40b   : > { %v1011_v21 = vpop.xlane.xlu1 %1010 }
 0x40c   : > { %2234 = vrcp.f32 %v1011_v21  ;;  %v2221_v21 = vld [vmem:[%s3217_s13 + $0x8] sm:$0xff]  }
 0x40f   : > { %v1131_v23 = vpop.permute.xlu1 %1130 }
 0x410   : > { %v1136_v26 = vsel %vm1018_vm3, %v1131_v23, 0 }
 0x416   : > { %v2235_v22 = vpop.eup %2234 }
 0x417   : > { %1249 = vrot.lane.b32.xlu0 %v955_v45, %s2574_s19  ;;  %v1013_v24 = vmul.f32 %v2235_v22, %v2227_v3  ;;  %v2223_v22 = vld [vmem:[%s3219_s15 + $0x8] sm:$0xff]  }
 0x419   : > { %v1014_v25 = vpack.c.bf16 %v1013_v24, %v1013_v24 }
 0x41b   : > { %2023 = vmatmul.mubr.msk.bf16.vlgmr.msra.gmra.mrb[8].mxu0 %vm956_vm2, %v1014_v25 }
 0x41c   : > { %2033 = vmatpush3.bf16.msra.mxu0 %v1136_v26  ;;  %2034 = vmatprep.mubr.msk.bf16.mxu0 %vm2573_vm0, %v2572_v0 }
 0x41d   : > { %2044 = vmatprep.subr.bf16.mxu0 %v2572_v0 }
 0x47e   : > { %v1125_v27 = vpop.xlane.xlu0 %1124 }
 0x47f   : > { %2236 = vrcp.f32 %v1125_v27  ;;  %v1933_v27 = vld [vmem:[#allocation14] ss:$0 sm:$0xff] }
 0x486   : > { %v1245_v28 = vpop.xlane.xlu1 %1244 }
 0x487   : > { %2238 = vrcp.f32 %v1245_v28 }
 0x489   : > { %v2237_v29 = vpop.eup %2236 }
 0x48a   : > { %v1127_v30 = vmul.f32 %v2237_v29, %v2229_v12  ;;  %v1369_v37 = vpop.permute.xlu1 %1368  ;;  %v1934_v29 = vld [vmem:[#allocation15] ss:$0 sm:$0xff] }
 0x48b   : > { %v1374_v39 = vsel %vm1018_vm3, %v1369_v37, 0 }
 0x48c   : > { %v1128_v31 = vpack.c.bf16 %v1127_v30, %v1127_v30 }
 0x48e   : > { %v1364_v32 = vpop.xlane.xlu0 %1363  ;;  %2035 = vmatmul.mubr.msk.bf16.vlgmr.msra.gmra.mrb[12].mxu0 %vm956_vm2, %v1128_v31 }
 0x48f   : > { %2240 = vrcp.f32 %v1364_v32  ;;  %2046 = vmatprep.mubr.msk.bf16.mxu0 %vm2573_vm0, %v2572_v0 }
 0x491   : > { %v2239_v33 = vpop.eup %2238 }
 0x492   : > { %v1247_v34 = vmul.f32 %v2239_v33, %v2231_v17  ;;  %v1250_v35 = vpop.permute.xlu0 %1249  ;;  %v2224_v33 = vld [vmem:[%s3219_s15 + $0x10] sm:$0xff]  }
 0x493   : > { %v1255_v36 = vsel %vm1018_vm3, %v1250_v35, 0 }
 0x494   : > { %2045 = vmatpush3.bf16.msra.mxu0 %v1255_v36  ;;  %v1248_v38 = vpack.c.bf16 %v1247_v34, %v1247_v34  ;;  %v2225_v34 = vld [vmem:[%s3219_s15 + $0x18] sm:$0xff]  }
 0x495   : > { %2056 = vmatprep.subr.bf16.mxu0 %v2572_v0 }
 0x497   : > { %2047 = vmatmul.mubr.msk.bf16.vlgmr.msra.gmra.mrb[16].mxu0 %vm956_vm2, %v1248_v38 }
 0x498   : > { %2057 = vmatpush3.bf16.msra.mxu0 %v1374_v39  ;;  %2058 = vmatprep.mubr.msk.bf16.mxu0 %vm2573_vm0, %v2572_v0 }
 0x499   : > { %v2241_v40 = vpop.eup %2240  ;;  %2070 = vmatprep.subr.bf16.mxu0 %v2572_v0 }
 0x49a   : > { %v1366_v41 = vmul.f32 %v2241_v40, %v2233_v19 }
 0x49c   : > { %v1367_v42 = vpack.c.bf16 %v1366_v41, %v1366_v41 }
 0x49f   : > { %2059 = vmatmul.mubr.msk.bf16.vlgmr.msra.gmra.mrb[20].mxu0 %vm956_vm2, %v1367_v42 }
 0x4a0   : > { %2074 = vmatprep.mubr.msk.bf16.mxu0 %vm2573_vm0, %v2572_v0  ;;  %2071 = vmatpush3.bf16.msra.mxu0 %v2220_v20 }
 0x4a1   : > { %2072 = vmatprep.subr.bf16.mxu0 %v2572_v0 }
 0x4a4   : > { %2073 = vmatpush3.bf16.msra.mxu0 %v2221_v21 }
 0x4ee   : > { %v1056_v43 = vpop.f32.mrb[8].mxu0 }
 0x4ef   : > { %v1062_v44 = vpack.c.bf16 %v1056_v43, %v1056_v43  ;;  %v2024_v45 = vpop.f32.mrb[9].mxu0 }
 0x4f0   : > { %v1059_v46 = vpop.f32.mrb[10].mxu0 }
 0x4f1   : > { %1064 = vst.msk [vmem:[#allocation2] sm:$0xf] %vm1063_vm4, %v1062_v44  ;;  %v2025_v47 = vpop.f32.mrb[11].mxu0 }
 0x561   : > { %v1172_v48 = vpop.f32.mrb[12].mxu0 }
 0x562   : > { %v1951_v49 = vpack.c.bf16 %v1172_v48, %v1172_v48  ;;  %v2036_v50 = vpop.f32.mrb[13].mxu0 }
 0x563   : > { %v1175_v51 = vpop.f32.mrb[14].mxu0 }
 0x564   : > { %1182 = vrot.lane.b32.xlu1 %v1951_v49, %s2577_s28  ;;  %v2037_v52 = vpop.f32.mrb[15].mxu0  ;;  %s1948_s28 = sshll.u32 %s2702_s2, 7  ;;  %s2580_s2 = smov [#allocation17]  }
 0x565   : > { %s2478_s7 = sshll.u32 %s2580_s2, 4  ;;  %s2479_s7 = int_to_ptr.vmem [resolvable:$false] %s2478_s7 }
 0x566   : > { %s2480_s23 = scalar_lea.vmem %s2479_s7, 256  ;;  %p2481_p6 = scmp.lt.s32.totalorder %s3161_s1, %s2479_s7 }
 0x56a   : > { %v1291_v54 = vpop.f32.mrb[16].mxu0 }
 0x56b   : > { %v1952_v56 = vpack.c.bf16 %v1291_v54, %v1291_v54  ;;  %v2048_v57 = vpop.f32.mrb[17].mxu0 }
 0x56c   : > { %v1294_v58 = vpop.f32.mrb[18].mxu0 }
 0x56d   : > { %1301 = vrot.lane.b32.xlu0 %v1952_v56, %s2578_s29  ;;  %v2049_v59 = vpop.f32.mrb[19].mxu0  ;;  %s3282_s29 = sld [smem:[#allocation38_spill]] }
 0x56e   : > { %v1945_v59 = vld [vmem:[%s3284_s26] ss:$0 sm:$0xff] }
 0x572   : > { %v1410_v60 = vpop.f32.mrb[20].mxu0 }
 0x573   : > { %v1953_v61 = vpack.c.bf16 %v1410_v60, %v1410_v60  ;;  %v2060_v62 = vpop.f32.mrb[21].mxu0  ;;  %v1935_v35 = vld [vmem:[%s3282_s29] ss:$0 sm:$0xff]  ;;  %s3286_s29 = sld [smem:[#allocation42_spill]] }
 0x574   : > { %v1413_v63 = vpop.f32.mrb[22].mxu0 }
 0x575   : > { %1420 = vrot.lane.b32.xlu1 %v1953_v61, %s2579_s18  ;;  %v2061_v1 = vpop.f32.mrb[23].mxu0  ;;  %v1946_v61 = vld [vmem:[%s3285_s10] ss:$0 sm:$0xff] }
 0x579   : > { %s3159_s18 = scalar_lea.hbm %s3286_s29, %s1948_s28 }
 0x5d6   : > { %v1183_v2 = vpop.permute.xlu1 %1182 }
 0x5d7   : > { %1186 = vst.msk [vmem:[#allocation2] sm:$0xf] %vm1185_vm5, %v1183_v2 }
 0x5df   : > { %v1302_v3 = vpop.permute.xlu0 %1301 }
 0x5e0   : > { %1305 = vst.msk [vmem:[#allocation2] sm:$0xf] %vm1304_vm6, %v1302_v3 }
 0x5e7   : > { %v1421_v4 = vpop.permute.xlu1 %1420 }
 0x5e8   : > { %1424 = vst.msk [vmem:[#allocation2] sm:$0xf] %vm1423_vm7, %v1421_v4 }
 0x5ef   : > { %v1425_v5 = vld [vmem:[#allocation2] sm:$0xf] }
 0x5f0   : > { %2067 = vmatmul.mubr.msk.bf16.vlgmr.msra.gmra.mrb[20].mxu1 %vm777_vm1, %v1425_v5 }
 0x5f1   : > { %2086 = vmatprep.mubr.msk.bf16.mxu1 %vm2573_vm0, %v2572_v0 }
 0x6c3   : > { %v1486_v8 = vpop.f32.mrb[20].mxu1 }
 0x6c4   : > { %v1487_v9 = vadd.f32 %v1929_v7, %v1486_v8  ;;  %v2068_v10 = vpop.f32.mrb[21].mxu1 }
 0x6c5   : > { %v1489_v11 = vpop.f32.mrb[22].mxu1 }
 0x6c6   : > { %v2069_v12 = vpop.f32.mrb[23].mxu1  ;;  %v1492_v13 = vadd.f32 %v1487_v9, %v3025_v6  ;;  %v2222_v6 = vld [vmem:[%s3219_s15] sm:$0xff]  }
 0x6c7   : > { %2079 = vmatpush3.bf16.msra.mxu1 %v2222_v6 }
 0x6c8   : > { %v1493_v14 = vsel %vm777_vm1, %v1492_v13, 0.0  ;;  %2080 = vmatprep.subr.bf16.mxu1 %v2572_v0 }
 0x6c9   : > { %1494 = vadd.xlane.f32.xlu0 %v1493_v14 }
 0x6cb   : > { %2081 = vmatpush3.bf16.msra.mxu1 %v2223_v22 }
 0x6cc   : > { %2082 = vmatprep.subr.bf16.mxu1 %v2572_v0 }
 0x6cf   : > { %2083 = vmatpush3.bf16.msra.mxu1 %v2224_v33 }
 0x6d0   : > { %2084 = vmatprep.subr.bf16.mxu1 %v2572_v0  ;;  %v1939_v0 = vld [vmem:[%s3283_s24] ss:$0 sm:$0xff]  ;;  %s2474_s24 = scalar_lea.vmem %s3161_s1, 128 }
 0x6d1   : > { %p2475_p11 = scmp.ne.s32.totalorder %s3161_s1, %s2474_s24  ;;  %p2482_p12 = scmp.lt.s32.totalorder %s2480_s23, %s2474_s24 }
 0x6d3   : > { %2085 = vmatpush3.bf16.msra.mxu1 %v2225_v34  ;;  %p2476_p7 = pnand %p2475_p11, %p3287_p5  ;;  %p2483_p8 = por %p2482_p12, %p2481_p6 }
 0x6d5   : > { %p2477_p0 = pneg %p2476_p7 }
 0x6d7   : > { %p2484_p9 = pnand %p2483_p8, %p2477_p0 }
 0x756   : > { %v1495_v15 = vpop.xlane.xlu0 %1494 }
 0x757   : > { %v1497_v16 = vmul.f32 0.03125, %v1495_v15 }
 0x759   : > { %v1498_v17 = vsub.f32 %v1492_v13, %v1497_v16 }
 0x75b   : > { %v1499_v18 = vmul.f32 %v1498_v17, %v1498_v17 }
 0x75d   : > { %v1500_v19 = vsel %vm777_vm1, %v1499_v18, 0.0 }
 0x75e   : > { %1501 = vadd.xlane.f32.xlu1 %v1500_v19 }
 0x7eb   : > { %v1502_v23 = vpop.xlane.xlu1 %1501 }
 0x7ec   : > { %v1503_v24 = vmul.f32 0.03125, %v1502_v23 }
 0x7ee   : > { %v1504_v25 = vadd.f32 1e-05, %v1503_v24 }
 0x7f0   : > { %2242 = vrsqrt.f32 %v1504_v25 }
 0x7fa   : > { %v2243_v26 = vpop.eup %2242 }
 0x7fb   : > { %v1506_v28 = vmul.f32 %v2243_v26, %v1498_v17 }
 0x7fd   : > { %v1514_v30 = vmul.f32 %v1933_v27, %v1506_v28 }
 0x7ff   : > { %v1522_v31 = vadd.f32 %v1934_v29, %v1514_v30 }
 0x801   : > { %v1523_v32 = vpack.c.bf16 %v1522_v31, %v1522_v31 }
 0x803   : > { %2075 = vmatmul.mubr.msk.bf16.vlgmr.msra.gmra.mrb[24].mxu0 %vm777_vm1, %v1523_v32 }
 0x8d6   : > { %v1584_v36 = vpop.f32.mrb[24].mxu0 }
 0x8d7   : > { %v1585_v37 = vadd.f32 %v1935_v35, %v1584_v36  ;;  %v2076_v38 = vpop.f32.mrb[25].mxu0 }
 0x8d8   : > { %v1587_v39 = vpop.f32.mrb[26].mxu0 }
 0x8d9   : > { %v1590_v40 = vmax.f32 %v1585_v37, 0.0  ;;  %v2077_v41 = vpop.f32.mrb[27].mxu0 }
 0x8db   : > { %v1591_v42 = vpack.c.bf16 %v1590_v40, %v1590_v40 }
 0x8dd   : > { %2087 = vmatmul.mubr.msk.bf16.vlgmr.msra.gmra.mrb[24].mxu1 %vm1631_vm8, %v1591_v42 }
 0x9b0   : > { %v1669_v43 = vpop.f32.mrb[24].mxu1 }
 0x9b1   : > { %v1670_v44 = vadd.f32 %v1939_v0, %v1669_v43  ;;  %v2088_v45 = vpop.f32.mrb[25].mxu1 }
 0x9b2   : > { %v1672_v46 = vpop.f32.mrb[26].mxu1 }
 0x9b3   : > { %v2089_v47 = vpop.f32.mrb[27].mxu1  ;;  %v1675_v48 = vadd.f32 %v1670_v44, %v1522_v31 }
 0x9b5   : > { %v1676_v49 = vsel %vm777_vm1, %v1675_v48, 0.0 }
 0x9b6   : > { %1677 = vadd.xlane.f32.xlu0 %v1676_v49 }
 0xa43   : > { %v1678_v50 = vpop.xlane.xlu0 %1677 }
 0xa44   : > { %v1679_v51 = vmul.f32 0.03125, %v1678_v50 }
 0xa46   : > { %v1680_v52 = vsub.f32 %v1675_v48, %v1679_v51 }
 0xa48   : > { %v1681_v53 = vmul.f32 %v1680_v52, %v1680_v52 }
 0xa4a   : > { %v1682_v54 = vsel %vm777_vm1, %v1681_v53, 0.0 }
 0xa4b   : > { %1683 = vadd.xlane.f32.xlu0 %v1682_v54 }
 0xad8   : > { %v1684_v55 = vpop.xlane.xlu0 %1683 }
 0xad9   : > { %v1685_v56 = vmul.f32 0.03125, %v1684_v55 }
 0xadb   : > { %v1686_v57 = vadd.f32 1e-05, %v1685_v56 }
 0xadd   : > { %2244 = vrsqrt.f32 %v1686_v57 }
 0xae7   : > { %v2245_v58 = vpop.eup %2244 }
 0xae8   : > { %v1688_v60 = vmul.f32 %v2245_v58, %v1680_v52 }
 0xaea   : > { %v1696_v62 = vmul.f32 %v1945_v59, %v1688_v60 }
 0xaec   : > { %v1704_v63 = vadd.f32 %v1946_v61, %v1696_v62 }
 0xaee   : > { %1705 = vst.msk [vmem:[%s744_s25] sm:$0xff] %vm777_vm1, %v1704_v63 }
 0xaef   : > { %2487 = shalt.err (!%p2484_p9)
}
 0xaf0   : > { %s2488_s16 = scalar_lea.hbm %s3159_s18, 128  ;;  %s2492_s19 = scalar_lea.hbm %s3286_s29, 256 }
 0xaf1   : > { %p2489_p4 = scmp.ne.s32.totalorder %s3159_s18, %s2488_s16  ;;  %p2493_p3 = scmp.lt.u32.totalorder %s3159_s18, %s3286_s29 }
 0xaf2   : > { %p2494_p2 = scmp.lt.u32.totalorder %s2492_s19, %s2488_s16  ;;  %p2496_p11 = scmp.lt.u32.totalorder %s2488_s16, %s3159_s18 }
 0xaf3   : > { %p2490_p13 = pnand %p2489_p4, %p3287_p5 }
 0xaf4   : > { %p2495_p10 = por %p2494_p2, %p2493_p3 }
 0xaf5   : > { %p2491_p1 = pneg %p2490_p13 }
 0xaf6   : > { %p2497_p7 = por %p2496_p11, %p2495_p10 }
 0xaf8   : > { %p2498_p0 = pnand %p2497_p7, %p2491_p1 }
 0xafa   : > { %2501 = shalt.err (!%p2498_p0)
}
 0xafb   : > { %2118 = dma.vmem_to_hbm [thread:$0]  (%p3287_p5), %s3161_s1, 128, %s3159_s18, %s1707_s20  }
 0xafc PF: > { %s1732_s28 = sand.u32 1, %s2548_s0   ;;  %p3288_p6 = scmp.ne.s32.totalorder %s3266_s6, 0 }
 0xafd   : > { %p3289_p12 = scmp.ge.s32.totalorder %s2560_s21, 2  ;;  %s1733_s25 = scalar_lea.sflag [#allocation5], %s1732_s28 }
 0xaff   : > { %p2147_p8 = pnand %p3289_p12, %p3288_p6 }
 0xb01   : > { %2543 = dma.done.wait (!%p2147_p8), %s1733_s25, 128  }
 0xb02   : > { %2545 = vsyncadd (!%p2147_p8), %s1733_s25, 4294967168  ;;  %s3290_s21 = sld [smem:[#allocation26_spill]]  ;;  %s3291_s12 = sld [smem:[#allocation25_spill]] }
 0xb03   : > { %s3292_s20 = sld [smem:[#allocation27_spill]]  ;;  %s3293_s0 = smov %s2552_s30 }
 0xb08   : > { %p38_p9 = scmp.ge.s32.totalorder %s3290_s21, 4   ;;  %s3294_s30 = smov %s3291_s12 }
 0xb0a   :  { %40 = sbr.rel (!%p38_p9) target bundleno = 26 (0x1a), region = 181 }
 0xb11   :  { %1738 = vsyncpa [#allocation4], 1 }
 0xb12   :  { %1740 = vsyncpa [#allocation4 + $0x1], 1 }
 0xb13   :  { %1741 = vsyncpa [#allocation7], 1 }
 0xb14   :  { %1743 = vsyncpa [#allocation7 + $0x1], 1 }
 0xb15   :  { %1744 = vsyncpa [#allocation10], 1 }
 0xb16   :  { %1745 = vsyncpa [#allocation13], 1 }
 0xb17   :  { %1746 = vsyncpa [#allocation16], 1 }
 0xb18   :  { %1747 = vsyncpa [#allocation5], 1 }
 0xb19   :  { %1749 = vsyncpa [#allocation5 + $0x1], 1 }

// kernel: tpu_custom_call.1
= control target key start
LH: loop header
LB: loop body
LE: loop exit
PB: predicated region body
PF: predicated region fallthrough
CT: control target
= control target key end

     0   :  { %s3204_s0 = inlined_call_operand.vmem [shape: f32[2,8,32], index: 0, kind: input, shape index: {}]   ;;  %s3205_s1 = inlined_call_operand.hbm [shape: bf16[2,8,32], index: 1, kind: input, shape index: {}]   ;;  %s3206_s2 = inlined_call_operand.hbm [shape: bf16[2,8,32], index: 2, kind: input, shape index: {}]   ;;  %s3207_s3 = inlined_call_operand.vmem [shape: bf16[32,32], index: 3, kind: input, shape index: {}]   ;;  %s3208_s4 = inlined_call_operand.vmem [shape: f32[1,32], index: 4, kind: input, shape index: {}]   ;;  %s3209_s5 = inlined_call_operand.vmem [shape: bf16[32,32], index: 5, kind: input, shape index: {}]   ;;  %s3210_s6 = inlined_call_operand.hbm [shape: f32[1,32], index: 6, kind: input, shape index: {}]   ;;  %s3211_s7 = inlined_call_operand.hbm [shape: bf16[32,32], index: 7, kind: input, shape index: {}]   ;;  %s3212_s8 = inlined_call_operand.hbm [shape: f32[1,32], index: 8, kind: input, shape index: {}]   ;;  %s3213_s9 = inlined_call_operand.vmem [shape: bf16[32,32], index: 9, kind: input, shape index: {}]   ;;  %s3214_s10 = inlined_call_operand.hbm [shape: f32[1,32], index: 10, kind: input, shape index: {}]   ;;  %s3215_s11 = inlined_call_operand.hbm [shape: f32[1,32], index: 11, kind: input, shape index: {}]   ;;  %s3216_s12 = inlined_call_operand.hbm [shape: f32[1,32], index: 12, kind: input, shape index: {}]   ;;  %s3217_s13 = inlined_call_operand.vmem [shape: bf16[32,64], index: 13, kind: input, shape index: {}]   ;;  %s3218_s14 = inlined_call_operand.vmem [shape: f32[1,64], index: 14, kind: input, shape index: {}]   ;;  %s3219_s15 = inlined_call_operand.vmem [shape: bf16[64,32], index: 15, kind: input, shape index: {}]   ;;  %s3220_s16 = inlined_call_operand.vmem [shape: f32[1,32], index: 16, kind: input, shape index: {}]   ;;  %s3221_s17 = inlined_call_operand.vmem [shape: f32[1,32], index: 17, kind: input, shape index: {}]   ;;  %s3222_s18 = inlined_call_operand.vmem [shape: f32[1,32], index: 18, kind: input, shape index: {}]   ;;  %s3223_s19 = inlined_call_operand.hbm [shape: f32[2,8,32], index: 19, kind: output, shape index: {}]  }
   0x1   :  { %3235 = sst [smem:[#allocation28_spill]] %s3204_s0 }
   0x2   :  { %3236 = sst [smem:[#allocation29_spill]] %s3205_s1 }
   0x3   :  { %3237 = sst [smem:[#allocation30_spill]] %s3206_s2 }
   0x4   :  { %3238 = sst [smem:[#allocation31_spill]] %s3207_s3 }
   0x5   :  { %3239 = sst [smem:[#allocation32_spill]] %s3210_s6 }
   0x6   :  { %3240 = sst [smem:[#allocation33_spill]] %s3211_s7 }
   0x7   :  { %3241 = sst [smem:[#allocation34_spill]] %s3212_s8 }
   0x8   :  { %3242 = sst [smem:[#allocation35_spill]] %s3214_s10 }
   0x9   :  { %3243 = sst [smem:[#allocation36_spill]] %s3215_s11 }
   0xa   :  { %3244 = sst [smem:[#allocation37_spill]] %s3216_s12 }
   0xb   :  { %3245 = sst [smem:[#allocation38_spill]] %s3218_s14 }
   0xc   :  { %3246 = sst [smem:[#allocation39_spill]] %s3220_s16 }
   0xd   :  { %3247 = sst [smem:[#allocation40_spill]] %s3221_s17 }
   0xe   :  { %3248 = sst [smem:[#allocation41_spill]] %s3222_s18 }
   0xf   :  { %3249 = sst [smem:[#allocation42_spill]] %s3223_s19 }
  0x10   :  { %24 = vsyncpa [#allocation4], 0 }
  0x11   :  { %26 = vsyncpa [#allocation4 + $0x1], 0 }
  0x12   :  { %27 = vsyncpa [#allocation7], 0 }
  0x13   :  { %29 = vsyncpa [#allocation7 + $0x1], 0 }
  0x14   :  { %30 = vsyncpa [#allocation10], 0 }
  0x15   :  { %31 = vsyncpa [#allocation13], 0 }
  0x16   :  { %32 = vsyncpa [#allocation16], 0 }
  0x17   :  { %33 = vsyncpa [#allocation5], 0 }
  0x18   :  { %35 = vsyncpa [#allocation5 + $0x1], 0  ;;  %s2681_s0 = smov 0   ;;  %s2683_s30 = smov 0  }
  0x19   :  { %s2685_s20 = smov 0   ;;  %s2687_s21 = smov 0  }
  0x1a LB: > { %3250 = sst [smem:[#allocation25_spill]] %s2556_s20  ;;  %s2562_s1 = smov [#allocation8]   ;;  %s2560_s21 = sphi %s2687_s21, %s3290_s21   ;;  %s2556_s20 = sphi %s2685_s20, %s3292_s20   ;;  %s2552_s30 = sphi %s2683_s30, %s3294_s30   ;;  %s2548_s0 = sphi %s2681_s0, %s3293_s0  }
  0x1b   : > { %s508_s22 = sshll.u32 %s2562_s1, 4  ;;  %s2702_s2 = sadd.s32 4294967295, %s2560_s21   ;;  %s2707_s22 = int_to_ptr.vmem [resolvable:$true] %s508_s22 }
  0x1c   : > { %p1883_p0 = scmp.ge.s32.totalorder %s2560_s21, 1  ;;  %p3228_p1 = scmp.eq.s32.totalorder %s2702_s2, 0 }
  0x1d   : > { %p486_p2 = scmp.lt.s32.totalorder %s2560_s21, 3  ;;  %s2563_s24 = smov [#allocation9]  }
  0x1e   : > { %s518_s25 = sshll.u32 %s2563_s24, 4  ;;  %s2564_s26 = smov [#allocation12]   ;;  %s2716_s25 = int_to_ptr.vmem [resolvable:$true] %s518_s25 }
  0x1f   : > { %p2709_p3 = pnand %p1883_p0, %p486_p2  ;;  %s546_s27 = sshll.u32 %s2564_s26, 4  ;;  %s2724_s27 = int_to_ptr.vmem [resolvable:$true] %s546_s27 }
  0x20   : > { %s3253_s6 = sld [smem:[#allocation32_spill]] }
  0x21   : > { %s3251_s23 = scalar_select %p2709_p3, 1, 0 }
  0x22   : > { %p2120_p5 = pneg %p2709_p3 }
  0x24   : > { %p2720_p6 = pnand %p2120_p5, %p3228_p1 }
  0x26   : > { %s2246_s1 = scalar_lea.hbm %s3253_s6, 16  ;;  %p2734_p8 = pneg %p2720_p6 }
  0x27   : > { %p2247_p7 = scmp.ne.s32.totalorder %s3253_s6, %s2246_s1  ;;  %p2253_p11 = scmp.lt.u32.totalorder %s2246_s1, %s3253_s6 }
  0x29   : > { %p2249_p9 = pnand %p2734_p8, %p2247_p7 }
  0x2b   : > { %p2250_p10 = pneg %p2249_p9 }
  0x2d   : > { %p2255_p12 = pnand %p2253_p11, %p2250_p10 }
  0x2f   : > { %2258 = shalt.err (!%p2255_p12)
}
  0x30   : > { %s2259_s18 = scalar_lea.vmem %s2707_s22, 16  ;;  %s2266_s19 = scalar_lea.vmem %s2707_s22, 32 }
  0x31   : > { %p2260_p13 = scmp.ne.s32.totalorder %s2707_s22, %s2259_s18  ;;  %p2267_p5 = scmp.lt.s32.totalorder %s2707_s22, %s2707_s22 }
  0x32   : > { %p2268_p7 = scmp.lt.s32.totalorder %s2266_s19, %s2259_s18 }
  0x33   : > { %p2262_p0 = pnand %p2260_p13, %p2734_p8 }
  0x34   : > { %p2269_p9 = por %p2268_p7, %p2267_p5 }
  0x35   : > { %p2263_p2 = pneg %p2262_p0 }
  0x37   : > { %p2270_p4 = pnand %p2269_p9, %p2263_p2 }
  0x39   : > { %2273 = shalt.err (!%p2270_p4)
}
  0x3a   : > { %2123 = dma.hbm_to_vmem [thread:$0]  (!%p2720_p6), %s3253_s6, 16, %s2707_s22, [#allocation7]  }
  0x3b   : > { %s3255_s7 = sld [smem:[#allocation33_spill]] }
  0x41   : > { %s2274_s26 = scalar_lea.hbm %s3255_s7, 256 }
  0x42   : > { %p2275_p10 = scmp.ne.s32.totalorder %s3255_s7, %s2274_s26  ;;  %p2281_p4 = scmp.lt.u32.totalorder %s2274_s26, %s3255_s7 }
  0x44   : > { %p2277_p11 = pnand %p2275_p10, %p2734_p8 }
  0x46   : > { %p2278_p12 = pneg %p2277_p11 }
  0x48   : > { %p2283_p13 = pnand %p2281_p4, %p2278_p12 }
  0x4a   : > { %2286 = shalt.err (!%p2283_p13)
}
  0x4b   : > { %s2287_s22 = scalar_lea.vmem %s2716_s25, 256  ;;  %p2295_p7 = scmp.lt.s32.totalorder %s2716_s25, %s2716_s25 }
  0x4c   : > { %p2288_p0 = scmp.ne.s32.totalorder %s2716_s25, %s2287_s22  ;;  %p2296_p9 = scmp.lt.s32.totalorder %s2287_s22, %s2287_s22 }
  0x4e   : > { %p2290_p2 = pnand %p2288_p0, %p2734_p8  ;;  %p2297_p10 = por %p2296_p9, %p2295_p7 }
  0x50   : > { %p2291_p5 = pneg %p2290_p2 }
  0x52   : > { %p2298_p11 = pnand %p2297_p10, %p2291_p5 }
  0x54   : > { %2301 = shalt.err (!%p2298_p11)
}
  0x55   : > { %s2565_s14 = smov 64   ;;  %s2566_s16 = smov 4  }
  0x56   : > { %2126 = dma.hbm_to_vmem [thread:$0]  (!%p2720_p6), %s3255_s7, 256, %s2716_s25, [#allocation10], %s2565_s14, %s2565_s14, %s2566_s16  }
  0x57   : > { %s3256_s10 = sld [smem:[#allocation35_spill]] }
  0x5d   : > { %s2302_s26 = scalar_lea.hbm %s3256_s10, 16 }
  0x5e   : > { %p2303_p12 = scmp.ne.s32.totalorder %s3256_s10, %s2302_s26  ;;  %p2309_p0 = scmp.lt.u32.totalorder %s2302_s26, %s3256_s10 }
  0x60   : > { %p2305_p4 = pnand %p2303_p12, %p2734_p8 }
  0x62   : > { %p2306_p13 = pneg %p2305_p4 }
  0x64   : > { %p2311_p2 = pnand %p2309_p0, %p2306_p13 }
  0x66   : > { %2314 = shalt.err (!%p2311_p2)
}
  0x67   : > { %s2315_s25 = scalar_lea.vmem %s2724_s27, 16  ;;  %s2322_s14 = scalar_lea.vmem %s2724_s27, 32 }
  0x68   : > { %p2316_p5 = scmp.ne.s32.totalorder %s2724_s27, %s2315_s25  ;;  %p2323_p10 = scmp.lt.s32.totalorder %s2724_s27, %s2724_s27 }
  0x69   : > { %p2324_p11 = scmp.lt.s32.totalorder %s2322_s14, %s2315_s25 }
  0x6a   : > { %p2318_p7 = pnand %p2316_p5, %p2734_p8 }
  0x6b   : > { %p2325_p12 = por %p2324_p11, %p2323_p10 }
  0x6c   : > { %p2319_p9 = pneg %p2318_p7 }
  0x6e   : > { %p2326_p4 = pnand %p2325_p12, %p2319_p9 }
  0x70   : > { %2329 = shalt.err (!%p2326_p4)
}
  0x71   : > { %2132 = dma.hbm_to_vmem [thread:$0]  (!%p2720_p6), %s3256_s10, 16, %s2724_s27, [#allocation13]  }
  0x72   : > { %s2567_s17 = smov [#allocation11]   ;;  %s2568_s29 = smov [#allocation14]  }
  0x73   : > { %s532_s28 = sshll.u32 %s2567_s17, 4  ;;  %s557_s1 = sshll.u32 %s2568_s29, 4  ;;  %s533_s28 = int_to_ptr.vmem [resolvable:$true] %s532_s28  ;;  %s558_s1 = int_to_ptr.vmem [resolvable:$true] %s557_s1 }
  0x74   : > { %s3257_s8 = sld [smem:[#allocation34_spill]] }
  0x7a   : > { %s2330_s19 = scalar_lea.hbm %s3257_s8, 16 }
  0x7b   : > { %p2331_p13 = scmp.ne.s32.totalorder %s3257_s8, %s2330_s19  ;;  %p2337_p5 = scmp.lt.u32.totalorder %s2330_s19, %s3257_s8 }
  0x7d   : > { %p2333_p0 = pnand %p2331_p13, %p2734_p8 }
  0x7f   : > { %p2334_p2 = pneg %p2333_p0 }
  0x81   : > { %p2339_p7 = pnand %p2337_p5, %p2334_p2 }
  0x83   : > { %2342 = shalt.err (!%p2339_p7)
}
  0x84   : > { %s2343_s27 = scalar_lea.vmem %s533_s28, 16  ;;  %s2350_s16 = scalar_lea.vmem %s533_s28, 32 }
  0x85   : > { %p2344_p9 = scmp.ne.s32.totalorder %s533_s28, %s2343_s27  ;;  %p2351_p12 = scmp.lt.s32.totalorder %s533_s28, %s533_s28 }
  0x86   : > { %p2352_p4 = scmp.lt.s32.totalorder %s2350_s16, %s2343_s27 }
  0x87   : > { %p2346_p10 = pnand %p2344_p9, %p2734_p8 }
  0x88   : > { %p2353_p1 = por %p2352_p4, %p2351_p12 }
  0x89   : > { %p2347_p11 = pneg %p2346_p10 }
  0x8b   : > { %p2354_p3 = pnand %p2353_p1, %p2347_p11 }
  0x8d   : > { %2357 = shalt.err (!%p2354_p3)
}
  0x8e   : > { %2129 = dma.hbm_to_vmem [thread:$0]  (!%p2720_p6), %s3257_s8, 16, %s533_s28, [#allocation10]  }
  0x8f   : > { %s3258_s11 = sld [smem:[#allocation36_spill]] }
  0x95   : > { %s2358_s19 = scalar_lea.hbm %s3258_s11, 16 }
  0x96   : > { %p2359_p13 = scmp.ne.s32.totalorder %s3258_s11, %s2358_s19  ;;  %p2365_p3 = scmp.lt.u32.totalorder %s2358_s19, %s3258_s11 }
  0x98   : > { %p2361_p0 = pnand %p2359_p13, %p2734_p8 }
  0x9a   : > { %p2362_p1 = pneg %p2361_p0 }
  0x9c   : > { %p2367_p2 = pnand %p2365_p3, %p2362_p1 }
  0x9e   : > { %2370 = shalt.err (!%p2367_p2)
}
  0x9f   : > { %s2371_s27 = scalar_lea.vmem %s558_s1, 16  ;;  %s2378_s28 = scalar_lea.vmem %s558_s1, 32 }
  0xa0   : > { %p2372_p5 = scmp.ne.s32.totalorder %s558_s1, %s2371_s27  ;;  %p2379_p10 = scmp.lt.s32.totalorder %s558_s1, %s558_s1 }
  0xa1   : > { %p2380_p11 = scmp.lt.s32.totalorder %s2378_s28, %s2371_s27 }
  0xa2   : > { %p2374_p7 = pnand %p2372_p5, %p2734_p8 }
  0xa3   : > { %p2381_p12 = por %p2380_p11, %p2379_p10 }
  0xa4   : > { %p2375_p9 = pneg %p2374_p7 }
  0xa6   : > { %p2382_p4 = pnand %p2381_p12, %p2375_p9 }
  0xa8   : > { %2385 = shalt.err (!%p2382_p4)
}
  0xa9   : > { %2135 = dma.hbm_to_vmem [thread:$0]  (!%p2720_p6), %s3258_s11, 16, %s558_s1, [#allocation13]  }
  0xaa   : > { %s2569_s29 = smov [#allocation15]   ;;  %s3259_s12 = sld [smem:[#allocation37_spill]] }
  0xab   : > { %s568_s26 = sshll.u32 %s2569_s29, 4  ;;  %s569_s26 = int_to_ptr.vmem [resolvable:$true] %s568_s26 }
  0xb0   : > { %s2386_s22 = scalar_lea.hbm %s3259_s12, 16 }
  0xb1   : > { %p2387_p13 = scmp.ne.s32.totalorder %s3259_s12, %s2386_s22  ;;  %p2393_p3 = scmp.lt.u32.totalorder %s2386_s22, %s3259_s12 }
  0xb3   : > { %p2389_p0 = pnand %p2387_p13, %p2734_p8 }
  0xb5   : > { %p2390_p1 = pneg %p2389_p0 }
  0xb7   : > { %p2395_p2 = pnand %p2393_p3, %p2390_p1 }
  0xb9   : > { %2398 = shalt.err (!%p2395_p2)
}
  0xba   : > { %s2399_s1 = scalar_lea.vmem %s569_s26, 16  ;;  %s2406_s28 = scalar_lea.vmem %s569_s26, 32 }
  0xbb   : > { %p2400_p5 = scmp.ne.s32.totalorder %s569_s26, %s2399_s1  ;;  %p2407_p10 = scmp.lt.s32.totalorder %s569_s26, %s569_s26 }
  0xbc   : > { %p2408_p11 = scmp.lt.s32.totalorder %s2406_s28, %s2399_s1 }
  0xbd   : > { %p2402_p7 = pnand %p2400_p5, %p2734_p8 }
  0xbe   : > { %p2409_p12 = por %p2408_p11, %p2407_p10 }
  0xbf   : > { %p2403_p9 = pneg %p2402_p7 }
  0xc1   : > { %p2410_p4 = pnand %p2409_p12, %p2403_p9 }
  0xc3   : > { %2413 = shalt.err (!%p2410_p4)
}
  0xc4   : > { %2138 = dma.hbm_to_vmem [thread:$0]  (!%p2720_p6), %s3259_s12, 16, %s569_s26, [#allocation16]  }
  0xc5   : > { %s1882_s24 = sadd.s32 4294967294, %s2560_s21   ;;  %s2859_s3 = sadd.s32 1, %s2560_s21  }
  0xc6   : > { %3260 = sst [smem:[#allocation26_spill]] %s2859_s3  ;;  %s71_s29 = ssub.s32 %s2560_s21, %s2859_s3 }
  0xc7   : > { %s74_s18 = sadd.s32 1, %s2556_s20  ;;  %p72_p8 = scmp.eq.s32.totalorder %s71_s29, 0 }
  0xc8   : > { %p81_p13 = scmp.ne.s32.totalorder %s2556_s20, %s2552_s30  ;;  %p82_p0 = scmp.eq.s32.totalorder %s2560_s21, 0 }
  0xc9   : > { %p87_p1 = scmp.ne.s32.totalorder %s2552_s30, %s2548_s0  ;;  %p3263_p2 = scmp.eq.s32.totalorder %s2702_s2, 0 }
  0xca   : > { %s2870_s19 = scalar_select %p72_p8, %s2556_s20, %s74_s18  }
  0xcb   : > { %p2872_p3 = por %p82_p0, %p81_p13  ;;  %p2878_p6 = por %p3263_p2, %p87_p1 }
  0xcc   : > { %3261 = sst [smem:[#allocation27_spill]] %s2870_s19  ;;  %p473_p5 = scmp.eq.s32.totalorder %s2702_s2, 1 }
  0xcd   : > { %s3264_s26 = scalar_select %p2878_p6, 1, 0 }
  0xce   : > { %p479_p7 = scmp.eq.s32.totalorder %s1882_s24, 1  ;;  %p2156_p9 = scmp.lt.s32.totalorder %s2560_s21, 2 }
  0xcf   : > { %s604_s25 = sand.u32 1, %s2556_s20   ;;  %p2885_p10 = por %p473_p5, %p81_p13 }
  0xd0   : > { %p2889_p11 = por %p479_p7, %p87_p1  ;;  %s2893_s27 = sshll.u32 %s604_s25, 2 }
  0xd1   : > { %s3265_s14 = scalar_select %p2885_p10, 1, 0 }
  0xd2   : > { %s3266_s6 = scalar_select %p2889_p11, 1, 0 }
  0xd3   : > { %s1892_s1 = sshll.u32 %s2560_s21, 6  ;;  %s3267_s17 = sld [smem:[#allocation29_spill]] }
  0xd4   : > { %s608_s24 = scalar_lea.vmem [#allocation3], %s2893_s27  ;;  %p2906_p12 = pnand %p2156_p9, %p2872_p3 }
  0xd5   : > { %s615_s18 = sshll.u32 %s608_s24, 4  ;;  %s3269_s11 = sld [smem:[#allocation30_spill]]  ;;  %s2902_s18 = int_to_ptr.vmem [resolvable:$true] %s615_s18 }
  0xd6   : > { %s622_s16 = sand.u32 1, %s2560_s21   ;;  %s605_s12 = scalar_lea.sflag [#allocation4], %s604_s25 }
  0xd7   : > { %p2416_p8 = pneg %p2906_p12 }
  0xd9   : > { %s2899_s29 = scalar_lea.hbm %s3267_s17, %s1892_s1  ;;  %s2419_s20 = scalar_lea.hbm %s3267_s17, 128 }
  0xda   : > { %s2414_s19 = scalar_lea.hbm %s2899_s29, 64  ;;  %p2420_p1 = scmp.lt.u32.totalorder %s2899_s29, %s3267_s17 }
  0xdb   : > { %s2913_s28 = scalar_lea.hbm %s3269_s11, %s1892_s1  ;;  %p2415_p4 = scmp.ne.s32.totalorder %s2899_s29, %s2414_s19 }
  0xdc   : > { %p2421_p3 = scmp.lt.u32.totalorder %s2419_s20, %s2414_s19  ;;  %p2423_p5 = scmp.lt.u32.totalorder %s2414_s19, %s2899_s29 }
  0xdd   : > { %p2417_p13 = pnand %p2416_p8, %p2415_p4 }
  0xde   : > { %p2422_p2 = por %p2421_p3, %p2420_p1 }
  0xdf   : > { %p2418_p0 = pneg %p2417_p13 }
  0xe0   : > { %p2424_p7 = por %p2423_p5, %p2422_p2 }
  0xe2   : > { %p2425_p9 = pnand %p2424_p7, %p2418_p0 }
  0xe4   : > { %2428 = shalt.err (!%p2425_p9)
}
  0xe5   : > { %s2429_s10 = scalar_lea.vmem %s2902_s18, 64  ;;  %s2570_s25 = smov [#allocation3]  }
  0xe6   : > { %p2430_p4 = scmp.ne.s32.totalorder %s2902_s18, %s2429_s10  ;;  %s2434_s1 = sshll.u32 %s2570_s25, 4  ;;  %s2435_s1 = int_to_ptr.vmem [resolvable:$false] %s2434_s1 }
  0xe7   : > { %s2436_s3 = scalar_lea.vmem %s2435_s1, 128  ;;  %p2437_p10 = scmp.lt.s32.totalorder %s2902_s18, %s2435_s1 }
  0xe8   : > { %p2432_p13 = pnand %p2430_p4, %p2416_p8  ;;  %p2438_p1 = scmp.lt.s32.totalorder %s2436_s3, %s2429_s10 }
  0xea   : > { %p2433_p11 = pneg %p2432_p13  ;;  %p2439_p3 = por %p2438_p1, %p2437_p10 }
  0xec   : > { %p2440_p2 = pnand %p2439_p3, %p2433_p11 }
  0xee   : > { %2443 = shalt.err (!%p2440_p2)
}
  0xef   : > { %2142 = dma.hbm_to_vmem [thread:$0]  (!%p2906_p12), %s2899_s29, 64, %s2902_s18, %s605_s12  }
  0xf0   : > { %s626_s20 = scalar_lea.vmem [#allocation6], %s2893_s27  ;;  %s623_s22 = scalar_lea.sflag [#allocation7], %s622_s16 }
  0xf1   : > { %s633_s19 = sshll.u32 %s626_s20, 4  ;;  %s2444_s24 = scalar_lea.hbm %s2913_s28, 64  ;;  %s634_s19 = int_to_ptr.vmem [resolvable:$true] %s633_s19 }
  0xf2   : > { %p2445_p10 = scmp.ne.s32.totalorder %s2913_s28, %s2444_s24  ;;  %s2449_s25 = scalar_lea.hbm %s3269_s11, 128 }
  0xf3   : > { %p2450_p5 = scmp.lt.u32.totalorder %s2913_s28, %s3269_s11  ;;  %p2451_p7 = scmp.lt.u32.totalorder %s2449_s25, %s2444_s24 }
  0xf4   : > { %p2447_p11 = pnand %p2445_p10, %p2416_p8  ;;  %p2453_p4 = scmp.lt.u32.totalorder %s2444_s24, %s2913_s28 }
  0xf5   : > { %p2452_p9 = por %p2451_p7, %p2450_p5 }
  0xf6   : > { %p2448_p0 = pneg %p2447_p11 }
  0xf7   : > { %p2454_p13 = por %p2453_p4, %p2452_p9 }
  0xf9   : > { %p2455_p1 = pnand %p2454_p13, %p2448_p0 }
  0xfb   : > { %2458 = shalt.err (!%p2455_p1)
}
  0xfc   : > { %s2459_s12 = scalar_lea.vmem %s634_s19, 64  ;;  %s2571_s27 = smov [#allocation6]  }
  0xfd   : > { %p2460_p3 = scmp.ne.s32.totalorder %s634_s19, %s2459_s12  ;;  %s2464_s29 = sshll.u32 %s2571_s27, 4  ;;  %s2465_s29 = int_to_ptr.vmem [resolvable:$false] %s2464_s29 }
  0xfe   : > { %s2466_s18 = scalar_lea.vmem %s2465_s29, 128  ;;  %p2467_p11 = scmp.lt.s32.totalorder %s634_s19, %s2465_s29 }
  0xff   : > { %p2462_p2 = pnand %p2460_p3, %p2416_p8  ;;  %p2468_p6 = scmp.lt.s32.totalorder %s2466_s18, %s2459_s12 }
 0x101   : > { %p2463_p10 = pneg %p2462_p2  ;;  %p2469_p5 = por %p2468_p6, %p2467_p11 }
 0x103   : > { %p2470_p7 = pnand %p2469_p5, %p2463_p10 }
 0x105   : > { %2473 = shalt.err (!%p2470_p7)
}
 0x106   : > { %2145 = dma.hbm_to_vmem [thread:$0]  (!%p2906_p12), %s2913_s28, 64, %s634_s19, %s623_s22  }
 0x107   : > { %p3270_p0 = scmp.ne.s32.totalorder %s3251_s23, 0 }
 0x108   : > { %s2966_s16 = sand.u32 (!%p3270_p0), 1, %s2552_s30   ;;  %p3271_p6 = scmp.ne.s32.totalorder (!%p3270_p0), %s3264_s26, 0 }
 0x109   : > { %642 = sbr.rel (%p3270_p0) target bundleno = 2812 (0xafc), region = 96  ;;  %s1896_s20 = sshll.u32 (!%p3270_p0), %s2966_s16, 2 }
 0x10a   : > { %s645_s24 = scalar_lea.sflag (!%p3270_p0), [#allocation4], %s2966_s16  ;;  %s2970_s8 = scalar_lea.vmem (!%p3270_p0), [#allocation3], %s1896_s20 }
 0x110   : > { %2519 = dma.done.wait (%p3271_p6), %s645_s24, 64  }
 0x111   : > { %2521 = vsyncadd (%p3271_p6), %s645_s24, 4294967232  ;;  %s653_s7 = sand.u32 1, %s2702_s2   ;;  %s2977_s28 = scalar_lea.vmem [#allocation6], %s1896_s20 }
 0x112   : > { %s654_s23 = scalar_lea.sflag [#allocation7], %s653_s7 }
 0x113   : > { %2523 = dma.done.wait (%p3271_p6), %s654_s23, 64  }
 0x114   : > { %2525 = vsyncadd (%p3271_p6), %s654_s23, 4294967232  ;;  %p3272_p12 = scmp.eq.s32.totalorder %s2702_s2, 0 }
 0x116   : > { %2527 = dma.done.wait (%p3272_p12), [#allocation7], 16   ;;  %p3273_p8 = pmov %p3272_p12 }
 0x118   : > { %2529 = vsyncadd (%p3273_p8), [#allocation7], 4294967280  ;;  %p3274_p9 = pmov %p3273_p8 }
 0x119   : > { %p3275_p4 = pmov %p3273_p8 }
 0x11a   : > { %2531 = dma.done.wait (%p3274_p9), [#allocation10], 272  }
 0x11b   : > { %2533 = vsyncadd (%p3275_p4), [#allocation10], 4294967024  ;;  %p3276_p13 = pmov %p3275_p4 }
 0x11c   : > { %p3277_p1 = pmov %p3275_p4 }
 0x11d   : > { %2535 = dma.done.wait (%p3276_p13), [#allocation13], 32  }
 0x11e   : > { %2537 = vsyncadd (%p3277_p1), [#allocation13], 4294967264  ;;  %p3278_p3 = pmov %p3277_p1 }
 0x11f   : > { %p3279_p2 = pmov %p3277_p1 }
 0x120   : > { %2539 = dma.done.wait (%p3278_p3), [#allocation16], 16  }
 0x121   : > { %2541 = vsyncadd (%p3279_p2), [#allocation16], 4294967280  ;;  %p745_p10 = scmp.lt.s32.totalorder %s2702_s2, 1  ;;  %v2572_v0 = vmov 0.0   ;;  %vm2573_vm0 = vmmov 0   ;;  %v2212_v1 = vld [vmem:[%s3209_s5] sm:$0xff]  }
 0x122   : > { %1998 = vmatprep.subr.bf16.mxu1 %v2572_v0  ;;  %1990 = vmatprep.subr.bf16.mxu0 %v2572_v0  ;;  %s3280_s3 = sld [smem:[#allocation31_spill]]  ;;  %s3281_s29 = sld [smem:[#allocation28_spill]]  ;;  %v2214_v3 = vld [vmem:[%s3209_s5 + $0x8] sm:$0xff]   ;;  %vm777_vm1 = vcmask 261120   ;;  %v1910_v8 = vld [vmem:[#allocation8] ss:$0 sm:$0xff] }
 0x123   : > { %2002 = vmatprep.mubr.msk.bf16.mxu1 %vm2573_vm0, %v2572_v0  ;;  %1994 = vmatprep.mubr.msk.bf16.mxu0 %vm2573_vm0, %v2572_v0  ;;  %s746_s26 = scalar_select %p745_p10, %s2702_s2, 1  ;;  %v751_v4 = vld [vmem:[%s2970_s8] sm:$0xf]  ;;  %v1906_v9 = vld [vmem:[%s3208_s4] ss:$0 sm:$0xff]  ;;  %vm956_vm2 = vcmask 64512  }
 0x124   : > { %1999 = vmatpush3.bf16.msra.mxu1 %v2212_v1  ;;  %s2575_s22 = smov 120   ;;  %s2576_s10 = smov 104   ;;  %v2216_v23 = vld [vmem:[#allocation9] sm:$0xff]   ;;  %v2217_v24 = vld [vmem:[#allocation9 + $0x8] sm:$0xff]   ;;  %v752_v25 = vld [vmem:[%s2977_s28] sm:$0xf] }
 0x125   : > { %s1905_s19 = sshll.u32 %s746_s26, 3  ;;  %2000 = vmatprep.subr.bf16.mxu1 %v2572_v0  ;;  %v1914_v40 = vld [vmem:[#allocation11] ss:$0 sm:$0xff]  ;;  %vm1018_vm3 = vcmask 1043456   ;;  %vm1063_vm4 = vcmask 60416   ;;  %s2577_s28 = smov 8  }
 0x126   : > { %vm1185_vm5 = vcmask 126016   ;;  %vm1304_vm6 = vcmask 191616   ;;  %vm1423_vm7 = vcmask 257216   ;;  %vm1631_vm8 = vcmask 523264   ;;  %s3283_s24 = sld [smem:[#allocation39_spill]]  ;;  %s1904_s7 = sshll.u32 %s2966_s16, 3 }
 0x127   : > { %s3284_s26 = sld [smem:[#allocation40_spill]]  ;;  %s744_s25 = scalar_lea.vmem [#allocation17], %s1904_s7 }
 0x128   : > { %v2213_v2 = vld [vmem:[%s3280_s3] sm:$0xff]   ;;  %s748_s18 = scalar_lea.vmem %s3281_s29, %s1905_s19  ;;  %v2215_v5 = vld [vmem:[%s3280_s3 + $0x8] sm:$0xff]   ;;  %2001 = vmatpush3.bf16.msra.mxu1 %v2214_v3  ;;  %s2574_s19 = smov 112  }
 0x129   : > { %1991 = vmatpush3.bf16.msra.mxu0 %v2213_v2  ;;  %v3025_v6 = vld [vmem:[%s748_s18] sm:$0xff]  ;;  %2014 = vmatprep.subr.bf16.mxu1 %v2572_v0  ;;  %s2578_s29 = smov 16   ;;  %s2579_s18 = smov 24  }
 0x12a   : > { %1992 = vmatprep.subr.bf16.mxu0 %v2572_v0  ;;  %v753_v7 = vpack.c.bf16 %v3025_v6, %v3025_v6  ;;  %s1720_s1 = sshll.u32 %s744_s25, 4  ;;  %s1707_s20 = scalar_lea.sflag [#allocation5], %s2966_s16  ;;  %s3161_s1 = int_to_ptr.vmem [resolvable:$true] %s1720_s1 }
 0x12b   : > { %2003 = vmatmul.mubr.msk.bf16.vlgmr.msra.gmra.mrb[0].mxu1 %vm777_vm1, %v751_v4  ;;  %p3287_p5 = scmp.ne.s32.totalorder %s3265_s14, 0 }
 0x12c   : > { %2016 = vmatprep.mubr.msk.bf16.mxu1 %vm2573_vm0, %v2572_v0 }
 0x12d   : > { %1993 = vmatpush3.bf16.msra.mxu0 %v2215_v5 }
 0x12e   : > { %2006 = vmatprep.subr.bf16.mxu0 %v2572_v0 }
 0x130   : > { %1995 = vmatmul.mubr.msk.bf16.vlgmr.msra.gmra.mrb[0].mxu0 %vm777_vm1, %v753_v7 }
 0x131   : > { %2010 = vmatprep.mubr.msk.bf16.mxu0 %vm2573_vm0, %v2572_v0  ;;  %2007 = vmatpush3.bf16.msra.mxu0 %v2216_v23 }
 0x132   : > { %2008 = vmatprep.subr.bf16.mxu0 %v2572_v0 }
 0x135   : > { %2009 = vmatpush3.bf16.msra.mxu0 %v2217_v24 }
 0x136   : > { %2020 = vmatprep.subr.bf16.mxu0 %v2572_v0 }
 0x138   : > { %2011 = vmatmul.mubr.msk.bf16.vlgmr.msra.gmra.mrb[4].mxu0 %vm777_vm1, %v752_v25 }
 0x139   : > { %2022 = vmatprep.mubr.msk.bf16.mxu0 %vm2573_vm0, %v2572_v0 }
 0x1fe   : > { %v881_v10 = vpop.f32.mrb[0].mxu1 }
 0x1ff   : > { %v882_v11 = vadd.f32 %v1910_v8, %v881_v10  ;;  %v2004_v12 = vpop.f32.mrb[1].mxu1 }
 0x200   : > { %v884_v14 = vpop.f32.mrb[2].mxu1 }
 0x201   : > { %v954_v17 = vpack.c.bf16 %v882_v11, %v882_v11  ;;  %v2005_v18 = vpop.f32.mrb[3].mxu1 }
 0x203   : > { %v815_v13 = vpop.f32.mrb[0].mxu0  ;;  %1189 = vrot.lane.b32.xlu1 %v954_v17, %s2574_s19  ;;  %1069 = vrot.lane.b32.xlu0 %v954_v17, %s2575_s22  ;;  %v961_v22 = vsel %vm956_vm2, %v954_v17, 0 }
 0x204   : > { %v816_v15 = vadd.f32 %v1906_v9, %v815_v13  ;;  %v1996_v16 = vpop.f32.mrb[1].mxu0  ;;  %2015 = vmatpush3.bf16.xpose.msra.mxu1 %v961_v22 }
 0x205   : > { %v818_v19 = vpop.f32.mrb[2].mxu0  ;;  %2026 = vmatprep.subr.bf16.mxu1 %v2572_v0 }
 0x206   : > { %v1997_v20 = vpop.f32.mrb[3].mxu0  ;;  %v953_v21 = vpack.c.bf16 %v816_v15, %v816_v15 }
 0x208   : > { %1187 = vrot.lane.b32.xlu1 %v953_v21, %s2574_s19  ;;  %1066 = vrot.lane.b32.xlu0 %v953_v21, %s2575_s22 }
 0x20b   : > { %2017 = vmatmul.mubr.msk.bf16.vlgmr.msra.gmra.mrb[4].mxu1 %vm956_vm2, %v953_v21  ;;  %v947_v41 = vpop.f32.mrb[4].mxu0 }
 0x20c   : > { %1306 = vrot.lane.b32.xlu1 %v953_v21, %s2576_s10  ;;  %1308 = vrot.lane.b32.xlu0 %v954_v17, %s2576_s10  ;;  %v948_v42 = vadd.f32 %v1914_v40, %v947_v41  ;;  %v2012_v43 = vpop.f32.mrb[5].mxu0 }
 0x20d   : > { %2028 = vmatprep.mubr.msk.bf16.mxu1 %vm2573_vm0, %v2572_v0  ;;  %v950_v44 = vpop.f32.mrb[6].mxu0 }
 0x20e   : > { %v955_v45 = vpack.c.bf16 %v948_v42, %v948_v42  ;;  %v2013_v46 = vpop.f32.mrb[7].mxu0 }
 0x210   : > { %v1020_v47 = vsel %vm1018_vm3, %v955_v45, 0 }
 0x211   : > { %2021 = vmatpush3.bf16.msra.mxu0 %v1020_v47 }
 0x212   : > { %2032 = vmatprep.subr.bf16.mxu0 %v2572_v0 }
 0x275   : > { %v1070_v26 = vpop.permute.xlu0 %1069  ;;  %v1190_v28 = vpop.permute.xlu1 %1189 }
 0x276   : > { %v1075_v27 = vsel %vm956_vm2, %v1070_v26, 0  ;;  %v1195_v30 = vsel %vm956_vm2, %v1190_v28, 0 }
 0x277   : > { %2027 = vmatpush3.bf16.xpose.msra.mxu1 %v1075_v27 }
 0x278   : > { %2038 = vmatprep.subr.bf16.mxu1 %v2572_v0 }
 0x27a   : > { %v1067_v29 = vpop.permute.xlu0 %1066  ;;  %v1188_v32 = vpop.permute.xlu1 %1187 }
 0x27e   : > { %2029 = vmatmul.mubr.msk.bf16.vlgmr.msra.gmra.mrb[8].mxu1 %vm956_vm2, %v1067_v29  ;;  %v1309_v31 = vpop.permute.xlu0 %1308  ;;  %v1307_v34 = vpop.permute.xlu1 %1306 }
 0x27f   : > { %2039 = vmatpush3.bf16.xpose.msra.mxu1 %v1195_v30  ;;  %2040 = vmatprep.mubr.msk.bf16.mxu1 %vm2573_vm0, %v2572_v0  ;;  %v1314_v33 = vsel %vm956_vm2, %v1309_v31, 0 }
 0x280   : > { %2050 = vmatprep.subr.bf16.mxu1 %v2572_v0 }
 0x286   : > { %2041 = vmatmul.mubr.msk.bf16.vlgmr.msra.gmra.mrb[12].mxu1 %vm956_vm2, %v1188_v32 }
 0x287   : > { %2051 = vmatpush3.bf16.xpose.msra.mxu1 %v1314_v33  ;;  %2052 = vmatprep.mubr.msk.bf16.mxu1 %vm2573_vm0, %v2572_v0 }
 0x288   : > { %2062 = vmatprep.subr.bf16.mxu1 %v2572_v0 }
 0x28e   : > { %2053 = vmatmul.mubr.msk.bf16.vlgmr.msra.gmra.mrb[16].mxu1 %vm956_vm2, %v1307_v34 }
 0x28f   : > { %2066 = vmatprep.mubr.msk.bf16.mxu1 %vm2573_vm0, %v2572_v0 }
 0x2de   : > { %v997_v35 = vpop.f32.mrb[4].mxu1 }
 0x2df   : > { %v2018_v36 = vpop.f32.mrb[5].mxu1  ;;  %v1003_v37 = vsel %vm956_vm2, %v997_v35, -inf }
 0x2e0   : > { %1004 = vmax.xlane.f32.xlu0 %v1003_v37  ;;  %v1000_v38 = vpop.f32.mrb[6].mxu1 }
 0x2e1   : > { %v2019_v39 = vpop.f32.mrb[7].mxu1 }
 0x351   : > { %v1111_v48 = vpop.f32.mrb[8].mxu1 }
 0x352   : > { %v2030_v49 = vpop.f32.mrb[9].mxu1  ;;  %v1117_v50 = vsel %vm956_vm2, %v1111_v48, -inf }
 0x353   : > { %1118 = vmax.xlane.f32.xlu1 %v1117_v50  ;;  %v1114_v51 = vpop.f32.mrb[10].mxu1 }
 0x354   : > { %v2031_v52 = vpop.f32.mrb[11].mxu1 }
 0x359   : > { %v1231_v53 = vpop.f32.mrb[12].mxu1 }
 0x35a   : > { %v2042_v54 = vpop.f32.mrb[13].mxu1  ;;  %v1237_v55 = vsel %vm956_vm2, %v1231_v53, -inf }
 0x35b   : > { %1238 = vmax.xlane.f32.xlu0 %v1237_v55  ;;  %v1234_v56 = vpop.f32.mrb[14].mxu1  ;;  %v2219_v55 = vld [vmem:[%s3213_s9 + $0x8] sm:$0xff]  }
 0x35c   : > { %v2043_v57 = vpop.f32.mrb[15].mxu1 }
 0x361   : > { %v1350_v58 = vpop.f32.mrb[16].mxu1 }
 0x362   : > { %v2054_v59 = vpop.f32.mrb[17].mxu1  ;;  %v1356_v60 = vsel %vm956_vm2, %v1350_v58, -inf }
 0x363   : > { %1357 = vmax.xlane.f32.xlu0 %v1356_v60  ;;  %v1353_v61 = vpop.f32.mrb[18].mxu1 }
 0x364   : > { %v2055_v62 = vpop.f32.mrb[19].mxu1 }
 0x36d   : > { %v1005_v63 = vpop.xlane.xlu0 %1004 }
 0x36e   : > { %v1006_v1 = vsub.f32 %v997_v35, %v1005_v63 }
 0x370   : > { %v1007_v2 = vmul.f32 1.442695, %v1006_v1 }
 0x372   : > { %2226 = vpow2.f32 %v1007_v2 }
 0x37c   : > { %v2227_v3 = vpop.eup %2226 }
 0x37d   : > { %v1009_v4 = vsel %vm956_vm2, %v2227_v3, 0.0 }
 0x37e   : > { %1010 = vadd.xlane.f32.xlu1 %v1009_v4 }
 0x38f   : > { %1130 = vrot.lane.b32.xlu1 %v955_v45, %s2575_s22 }
 0x3e0   : > { %v1119_v5 = vpop.xlane.xlu1 %1118 }
 0x3e1   : > { %v1120_v7 = vsub.f32 %v1111_v48, %v1119_v5 }
 0x3e3   : > { %v1121_v8 = vmul.f32 1.442695, %v1120_v7  ;;  %v1929_v7 = vld [vmem:[#allocation12] ss:$0 sm:$0xff] }
 0x3e5   : > { %2228 = vpow2.f32 %v1121_v8 }
 0x3e8   : > { %v1239_v9 = vpop.xlane.xlu0 %1238 }
 0x3e9   : > { %v1240_v10 = vsub.f32 %v1231_v53, %v1239_v9  ;;  %v2218_v53 = vld [vmem:[%s3213_s9] sm:$0xff]  }
 0x3ea   : > { %2063 = vmatpush3.bf16.msra.mxu1 %v2218_v53 }
 0x3eb   : > { %v1241_v11 = vmul.f32 1.442695, %v1240_v10  ;;  %2064 = vmatprep.subr.bf16.mxu1 %v2572_v0 }
 0x3ed   : > { %2230 = vpow2.f32 %v1241_v11 }
 0x3ee   : > { %2065 = vmatpush3.bf16.msra.mxu1 %v2219_v55 }
 0x3ef   : > { %v2229_v12 = vpop.eup %2228  ;;  %2078 = vmatprep.subr.bf16.mxu1 %v2572_v0 }
 0x3f0   : > { %v1358_v13 = vpop.xlane.xlu0 %1357  ;;  %v1123_v14 = vsel %vm956_vm2, %v2229_v12, 0.0 }
 0x3f1   : > { %v1359_v15 = vsub.f32 %v1350_v58, %v1358_v13  ;;  %1124 = vadd.xlane.f32.xlu0 %v1123_v14 }
 0x3f3   : > { %v1360_v16 = vmul.f32 1.442695, %v1359_v15 }
 0x3f5   : > { %2232 = vpow2.f32 %v1360_v16 }
 0x3f7   : > { %v2231_v17 = vpop.eup %2230 }
 0x3f8   : > { %v1243_v18 = vsel %vm956_vm2, %v2231_v17, 0.0 }
 0x3f9   : > { %1244 = vadd.xlane.f32.xlu1 %v1243_v18 }
 0x3ff   : > { %v2233_v19 = vpop.eup %2232 }
 0x400   : > { %v1362_v20 = vsel %vm956_vm2, %v2233_v19, 0.0 }
 0x401   : > { %1363 = vadd.xlane.f32.xlu0 %v1362_v20  ;;  %v2220_v20 = vld [vmem:[%s3217_s13] sm:$0xff]  }
 0x40a   : > { %1368 = vrot.lane.b32.xlu1 %v955_v45, %s2576_s10  ;;  %s3285_s10 = sld [smem:[#allocation41_spill]] }
 0x40b   : > { %v1011_v21 = vpop.xlane.xlu1 %1010 }
 0x40c   : > { %2234 = vrcp.f32 %v1011_v21  ;;  %v2221_v21 = vld [vmem:[%s3217_s13 + $0x8] sm:$0xff]  }
 0x40f   : > { %v1131_v23 = vpop.permute.xlu1 %1130 }
 0x410   : > { %v1136_v26 = vsel %vm1018_vm3, %v1131_v23, 0 }
 0x416   : > { %v2235_v22 = vpop.eup %2234 }
 0x417   : > { %1249 = vrot.lane.b32.xlu0 %v955_v45, %s2574_s19  ;;  %v1013_v24 = vmul.f32 %v2235_v22, %v2227_v3  ;;  %v2223_v22 = vld [vmem:[%s3219_s15 + $0x8] sm:$0xff]  }
 0x419   : > { %v1014_v25 = vpack.c.bf16 %v1013_v24, %v1013_v24 }
 0x41b   : > { %2023 = vmatmul.mubr.msk.bf16.vlgmr.msra.gmra.mrb[8].mxu0 %vm956_vm2, %v1014_v25 }
 0x41c   : > { %2033 = vmatpush3.bf16.msra.mxu0 %v1136_v26  ;;  %2034 = vmatprep.mubr.msk.bf16.mxu0 %vm2573_vm0, %v2572_v0 }
 0x41d   : > { %2044 = vmatprep.subr.bf16.mxu0 %v2572_v0 }
 0x47e   : > { %v1125_v27 = vpop.xlane.xlu0 %1124 }
 0x47f   : > { %2236 = vrcp.f32 %v1125_v27  ;;  %v1933_v27 = vld [vmem:[#allocation14] ss:$0 sm:$0xff] }
 0x486   : > { %v1245_v28 = vpop.xlane.xlu1 %1244 }
 0x487   : > { %2238 = vrcp.f32 %v1245_v28 }
 0x489   : > { %v2237_v29 = vpop.eup %2236 }
 0x48a   : > { %v1127_v30 = vmul.f32 %v2237_v29, %v2229_v12  ;;  %v1369_v37 = vpop.permute.xlu1 %1368  ;;  %v1934_v29 = vld [vmem:[#allocation15] ss:$0 sm:$0xff] }
 0x48b   : > { %v1374_v39 = vsel %vm1018_vm3, %v1369_v37, 0 }
 0x48c   : > { %v1128_v31 = vpack.c.bf16 %v1127_v30, %v1127_v30 }
 0x48e   : > { %v1364_v32 = vpop.xlane.xlu0 %1363  ;;  %2035 = vmatmul.mubr.msk.bf16.vlgmr.msra.gmra.mrb[12].mxu0 %vm956_vm2, %v1128_v31 }
 0x48f   : > { %2240 = vrcp.f32 %v1364_v32  ;;  %2046 = vmatprep.mubr.msk.bf16.mxu0 %vm2573_vm0, %v2572_v0 }
 0x491   : > { %v2239_v33 = vpop.eup %2238 }
 0x492   : > { %v1247_v34 = vmul.f32 %v2239_v33, %v2231_v17  ;;  %v1250_v35 = vpop.permute.xlu0 %1249  ;;  %v2224_v33 = vld [vmem:[%s3219_s15 + $0x10] sm:$0xff]  }
 0x493   : > { %v1255_v36 = vsel %vm1018_vm3, %v1250_v35, 0 }
 0x494   : > { %2045 = vmatpush3.bf16.msra.mxu0 %v1255_v36  ;;  %v1248_v38 = vpack.c.bf16 %v1247_v34, %v1247_v34  ;;  %v2225_v34 = vld [vmem:[%s3219_s15 + $0x18] sm:$0xff]  }
 0x495   : > { %2056 = vmatprep.subr.bf16.mxu0 %v2572_v0 }
 0x497   : > { %2047 = vmatmul.mubr.msk.bf16.vlgmr.msra.gmra.mrb[16].mxu0 %vm956_vm2, %v1248_v38 }
 0x498   : > { %2057 = vmatpush3.bf16.msra.mxu0 %v1374_v39  ;;  %2058 = vmatprep.mubr.msk.bf16.mxu0 %vm2573_vm0, %v2572_v0 }
 0x499   : > { %v2241_v40 = vpop.eup %2240  ;;  %2070 = vmatprep.subr.bf16.mxu0 %v2572_v0 }
 0x49a   : > { %v1366_v41 = vmul.f32 %v2241_v40, %v2233_v19 }
 0x49c   : > { %v1367_v42 = vpack.c.bf16 %v1366_v41, %v1366_v41 }
 0x49f   : > { %2059 = vmatmul.mubr.msk.bf16.vlgmr.msra.gmra.mrb[20].mxu0 %vm956_vm2, %v1367_v42 }
 0x4a0   : > { %2074 = vmatprep.mubr.msk.bf16.mxu0 %vm2573_vm0, %v2572_v0  ;;  %2071 = vmatpush3.bf16.msra.mxu0 %v2220_v20 }
 0x4a1   : > { %2072 = vmatprep.subr.bf16.mxu0 %v2572_v0 }
 0x4a4   : > { %2073 = vmatpush3.bf16.msra.mxu0 %v2221_v21 }
 0x4ee   : > { %v1056_v43 = vpop.f32.mrb[8].mxu0 }
 0x4ef   : > { %v1062_v44 = vpack.c.bf16 %v1056_v43, %v1056_v43  ;;  %v2024_v45 = vpop.f32.mrb[9].mxu0 }
 0x4f0   : > { %v1059_v46 = vpop.f32.mrb[10].mxu0 }
 0x4f1   : > { %1064 = vst.msk [vmem:[#allocation2] sm:$0xf] %vm1063_vm4, %v1062_v44  ;;  %v2025_v47 = vpop.f32.mrb[11].mxu0 }
 0x561   : > { %v1172_v48 = vpop.f32.mrb[12].mxu0 }
 0x562   : > { %v1951_v49 = vpack.c.bf16 %v1172_v48, %v1172_v48  ;;  %v2036_v50 = vpop.f32.mrb[13].mxu0 }
 0x563   : > { %v1175_v51 = vpop.f32.mrb[14].mxu0 }
 0x564   : > { %1182 = vrot.lane.b32.xlu1 %v1951_v49, %s2577_s28  ;;  %v2037_v52 = vpop.f32.mrb[15].mxu0  ;;  %s1948_s28 = sshll.u32 %s2702_s2, 7  ;;  %s2580_s2 = smov [#allocation17]  }
 0x565   : > { %s2478_s7 = sshll.u32 %s2580_s2, 4  ;;  %s2479_s7 = int_to_ptr.vmem [resolvable:$false] %s2478_s7 }
 0x566   : > { %s2480_s23 = scalar_lea.vmem %s2479_s7, 256  ;;  %p2481_p6 = scmp.lt.s32.totalorder %s3161_s1, %s2479_s7 }
 0x56a   : > { %v1291_v54 = vpop.f32.mrb[16].mxu0 }
 0x56b   : > { %v1952_v56 = vpack.c.bf16 %v1291_v54, %v1291_v54  ;;  %v2048_v57 = vpop.f32.mrb[17].mxu0 }
 0x56c   : > { %v1294_v58 = vpop.f32.mrb[18].mxu0 }
 0x56d   : > { %1301 = vrot.lane.b32.xlu0 %v1952_v56, %s2578_s29  ;;  %v2049_v59 = vpop.f32.mrb[19].mxu0  ;;  %s3282_s29 = sld [smem:[#allocation38_spill]] }
 0x56e   : > { %v1945_v59 = vld [vmem:[%s3284_s26] ss:$0 sm:$0xff] }
 0x572   : > { %v1410_v60 = vpop.f32.mrb[20].mxu0 }
 0x573   : > { %v1953_v61 = vpack.c.bf16 %v1410_v60, %v1410_v60  ;;  %v2060_v62 = vpop.f32.mrb[21].mxu0  ;;  %v1935_v35 = vld [vmem:[%s3282_s29] ss:$0 sm:$0xff]  ;;  %s3286_s29 = sld [smem:[#allocation42_spill]] }
 0x574   : > { %v1413_v63 = vpop.f32.mrb[22].mxu0 }
 0x575   : > { %1420 = vrot.lane.b32.xlu1 %v1953_v61, %s2579_s18  ;;  %v2061_v1 = vpop.f32.mrb[23].mxu0  ;;  %v1946_v61 = vld [vmem:[%s3285_s10] ss:$0 sm:$0xff] }
 0x579   : > { %s3159_s18 = scalar_lea.hbm %s3286_s29, %s1948_s28 }
 0x5d6   : > { %v1183_v2 = vpop.permute.xlu1 %1182 }
 0x5d7   : > { %1186 = vst.msk [vmem:[#allocation2] sm:$0xf] %vm1185_vm5, %v1183_v2 }
 0x5df   : > { %v1302_v3 = vpop.permute.xlu0 %1301 }
 0x5e0   : > { %1305 = vst.msk [vmem:[#allocation2] sm:$0xf] %vm1304_vm6, %v1302_v3 }
 0x5e7   : > { %v1421_v4 = vpop.permute.xlu1 %1420 }
 0x5e8   : > { %1424 = vst.msk [vmem:[#allocation2] sm:$0xf] %vm1423_vm7, %v1421_v4 }
 0x5ef   : > { %v1425_v5 = vld [vmem:[#allocation2] sm:$0xf] }
 0x5f0   : > { %2067 = vmatmul.mubr.msk.bf16.vlgmr.msra.gmra.mrb[20].mxu1 %vm777_vm1, %v1425_v5 }
 0x5f1   : > { %2086 = vmatprep.mubr.msk.bf16.mxu1 %vm2573_vm0, %v2572_v0 }
 0x6c3   : > { %v1486_v8 = vpop.f32.mrb[20].mxu1 }
 0x6c4   : > { %v1487_v9 = vadd.f32 %v1929_v7, %v1486_v8  ;;  %v2068_v10 = vpop.f32.mrb[21].mxu1 }
 0x6c5   : > { %v1489_v11 = vpop.f32.mrb[22].mxu1 }
 0x6c6   : > { %v2069_v12 = vpop.f32.mrb[23].mxu1  ;;  %v1492_v13 = vadd.f32 %v1487_v9, %v3025_v6  ;;  %v2222_v6 = vld [vmem:[%s3219_s15] sm:$0xff]  }
 0x6c7   : > { %2079 = vmatpush3.bf16.msra.mxu1 %v2222_v6 }
 0x6c8   : > { %v1493_v14 = vsel %vm777_vm1, %v1492_v13, 0.0  ;;  %2080 = vmatprep.subr.bf16.mxu1 %v2572_v0 }
 0x6c9   : > { %1494 = vadd.xlane.f32.xlu0 %v1493_v14 }
 0x6cb   : > { %2081 = vmatpush3.bf16.msra.mxu1 %v2223_v22 }
 0x6cc   : > { %2082 = vmatprep.subr.bf16.mxu1 %v2572_v0 }
 0x6cf   : > { %2083 = vmatpush3.bf16.msra.mxu1 %v2224_v33 }
 0x6d0   : > { %2084 = vmatprep.subr.bf16.mxu1 %v2572_v0  ;;  %v1939_v0 = vld [vmem:[%s3283_s24] ss:$0 sm:$0xff]  ;;  %s2474_s24 = scalar_lea.vmem %s3161_s1, 128 }
 0x6d1   : > { %p2475_p11 = scmp.ne.s32.totalorder %s3161_s1, %s2474_s24  ;;  %p2482_p12 = scmp.lt.s32.totalorder %s2480_s23, %s2474_s24 }
 0x6d3   : > { %2085 = vmatpush3.bf16.msra.mxu1 %v2225_v34  ;;  %p2476_p7 = pnand %p2475_p11, %p3287_p5  ;;  %p2483_p8 = por %p2482_p12, %p2481_p6 }
 0x6d5   : > { %p2477_p0 = pneg %p2476_p7 }
 0x6d7   : > { %p2484_p9 = pnand %p2483_p8, %p2477_p0 }
 0x756   : > { %v1495_v15 = vpop.xlane.xlu0 %1494 }
 0x757   : > { %v1497_v16 = vmul.f32 0.03125, %v1495_v15 }
 0x759   : > { %v1498_v17 = vsub.f32 %v1492_v13, %v1497_v16 }
 0x75b   : > { %v1499_v18 = vmul.f32 %v1498_v17, %v1498_v17 }
 0x75d   : > { %v1500_v19 = vsel %vm777_vm1, %v1499_v18, 0.0 }
 0x75e   : > { %1501 = vadd.xlane.f32.xlu1 %v1500_v19 }
 0x7eb   : > { %v1502_v23 = vpop.xlane.xlu1 %1501 }
 0x7ec   : > { %v1503_v24 = vmul.f32 0.03125, %v1502_v23 }
 0x7ee   : > { %v1504_v25 = vadd.f32 1e-05, %v1503_v24 }
 0x7f0   : > { %2242 = vrsqrt.f32 %v1504_v25 }
 0x7fa   : > { %v2243_v26 = vpop.eup %2242 }
 0x7fb   : > { %v1506_v28 = vmul.f32 %v2243_v26, %v1498_v17 }
 0x7fd   : > { %v1514_v30 = vmul.f32 %v1933_v27, %v1506_v28 }
 0x7ff   : > { %v1522_v31 = vadd.f32 %v1934_v29, %v1514_v30 }
 0x801   : > { %v1523_v32 = vpack.c.bf16 %v1522_v31, %v1522_v31 }
 0x803   : > { %2075 = vmatmul.mubr.msk.bf16.vlgmr.msra.gmra.mrb[24].mxu0 %vm777_vm1, %v1523_v32 }
 0x8d6   : > { %v1584_v36 = vpop.f32.mrb[24].mxu0 }
 0x8d7   : > { %v1585_v37 = vadd.f32 %v1935_v35, %v1584_v36  ;;  %v2076_v38 = vpop.f32.mrb[25].mxu0 }
 0x8d8   : > { %v1587_v39 = vpop.f32.mrb[26].mxu0 }
 0x8d9   : > { %v1590_v40 = vmax.f32 %v1585_v37, 0.0  ;;  %v2077_v41 = vpop.f32.mrb[27].mxu0 }
 0x8db   : > { %v1591_v42 = vpack.c.bf16 %v1590_v40, %v1590_v40 }
 0x8dd   : > { %2087 = vmatmul.mubr.msk.bf16.vlgmr.msra.gmra.mrb[24].mxu1 %vm1631_vm8, %v1591_v42 }
 0x9b0   : > { %v1669_v43 = vpop.f32.mrb[24].mxu1 }
 0x9b1   : > { %v1670_v44 = vadd.f32 %v1939_v0, %v1669_v43  ;;  %v2088_v45 = vpop.f32.mrb[25].mxu1 }
 0x9b2   : > { %v1672_v46 = vpop.f32.mrb[26].mxu1 }
 0x9b3   : > { %v2089_v47 = vpop.f32.mrb[27].mxu1  ;;  %v1675_v48 = vadd.f32 %v1670_v44, %v1522_v31 }
 0x9b5   : > { %v1676_v49 = vsel %vm777_vm1, %v1675_v48, 0.0 }
 0x9b6   : > { %1677 = vadd.xlane.f32.xlu0 %v1676_v49 }
 0xa43   : > { %v1678_v50 = vpop.xlane.xlu0 %1677 }
 0xa44   : > { %v1679_v51 = vmul.f32 0.03125, %v1678_v50 }
 0xa46   : > { %v1680_v52 = vsub.f32 %v1675_v48, %v1679_v51 }
 0xa48   : > { %v1681_v53 = vmul.f32 %v1680_v52, %v1680_v52 }
 0xa4a   : > { %v1682_v54 = vsel %vm777_vm1, %v1681_v53, 0.0 }
 0xa4b   : > { %1683 = vadd.xlane.f32.xlu0 %v1682_v54 }
 0xad8   : > { %v1684_v55 = vpop.xlane.xlu0 %1683 }
 0xad9   : > { %v1685_v56 = vmul.f32 0.03125, %v1684_v55 }
 0xadb   : > { %v1686_v57 = vadd.f32 1e-05, %v1685_v56 }
 0xadd   : > { %2244 = vrsqrt.f32 %v1686_v57 }
 0xae7   : > { %v2245_v58 = vpop.eup %2244 }
 0xae8   : > { %v1688_v60 = vmul.f32 %v2245_v58, %v1680_v52 }
 0xaea   : > { %v1696_v62 = vmul.f32 %v1945_v59, %v1688_v60 }
 0xaec   : > { %v1704_v63 = vadd.f32 %v1946_v61, %v1696_v62 }
 0xaee   : > { %1705 = vst.msk [vmem:[%s744_s25] sm:$0xff] %vm777_vm1, %v1704_v63 }
 0xaef   : > { %2487 = shalt.err (!%p2484_p9)
}
 0xaf0   : > { %s2488_s16 = scalar_lea.hbm %s3159_s18, 128  ;;  %s2492_s19 = scalar_lea.hbm %s3286_s29, 256 }
 0xaf1   : > { %p2489_p4 = scmp.ne.s32.totalorder %s3159_s18, %s2488_s16  ;;  %p2493_p3 = scmp.lt.u32.totalorder %s3159_s18, %s3286_s29 }
 0xaf2   : > { %p2494_p2 = scmp.lt.u32.totalorder %s2492_s19, %s2488_s16  ;;  %p2496_p11 = scmp.lt.u32.totalorder %s2488_s16, %s3159_s18 }
 0xaf3   : > { %p2490_p13 = pnand %p2489_p4, %p3287_p5 }
 0xaf4   : > { %p2495_p10 = por %p2494_p2, %p2493_p3 }
 0xaf5   : > { %p2491_p1 = pneg %p2490_p13 }
 0xaf6   : > { %p2497_p7 = por %p2496_p11, %p2495_p10 }
 0xaf8   : > { %p2498_p0 = pnand %p2497_p7, %p2491_p1 }
 0xafa   : > { %2501 = shalt.err (!%p2498_p0)
}
 0xafb   : > { %2118 = dma.vmem_to_hbm [thread:$0]  (%p3287_p5), %s3161_s1, 128, %s3159_s18, %s1707_s20  }
 0xafc PF: > { %s1732_s28 = sand.u32 1, %s2548_s0   ;;  %p3288_p6 = scmp.ne.s32.totalorder %s3266_s6, 0 }
 0xafd   : > { %p3289_p12 = scmp.ge.s32.totalorder %s2560_s21, 2  ;;  %s1733_s25 = scalar_lea.sflag [#allocation5], %s1732_s28 }
 0xaff   : > { %p2147_p8 = pnand %p3289_p12, %p3288_p6 }
 0xb01   : > { %2543 = dma.done.wait (!%p2147_p8), %s1733_s25, 128  }
 0xb02   : > { %2545 = vsyncadd (!%p2147_p8), %s1733_s25, 4294967168  ;;  %s3290_s21 = sld [smem:[#allocation26_spill]]  ;;  %s3291_s12 = sld [smem:[#allocation25_spill]] }
 0xb03   : > { %s3292_s20 = sld [smem:[#allocation27_spill]]  ;;  %s3293_s0 = smov %s2552_s30 }
 0xb08   : > { %p38_p9 = scmp.ge.s32.totalorder %s3290_s21, 4   ;;  %s3294_s30 = smov %s3291_s12 }
 0xb0a   :  { %40 = sbr.rel (!%p38_p9) target bundleno = 26 (0x1a), region = 181 }
 0xb11   :  { %1738 = vsyncpa [#allocation4], 1 }
 0xb12   :  { %1740 = vsyncpa [#allocation4 + $0x1], 1 }
 0xb13   :  { %1741 = vsyncpa [#allocation7], 1 }
 0xb14   :  { %1743 = vsyncpa [#allocation7 + $0x1], 1 }
 0xb15   :  { %1744 = vsyncpa [#allocation10], 1 }
 0xb16   :  { %1745 = vsyncpa [#allocation13], 1 }
 0xb17   :  { %1746 = vsyncpa [#allocation16], 1 }
 0xb18   :  { %1747 = vsyncpa [#allocation5], 1 }
 0xb19   :  { %1749 = vsyncpa [#allocation5 + $0x1], 1 }

</bundles_post_ra>
